<compile_context>
chip_gen: v7x
topology: tpu7x:2x2x1
jax: 0.10.0
libtpu: 0.0.40
codegen_flags: <defaults>
</compile_context>

<pallas_src>
import functools

import jax
import jax.numpy as jnp
import numpy as np
from jax.experimental import pallas as pl
from jax.experimental.pallas import tpu as pltpu

# Channel sizes from the module definition.
C_IN, C1, C2, C3, C_OUT = 3756, 1252, 417, 139, 1

TK = 1280            # conv1 contraction tile (10 x 128)
K_PAD = 3 * TK       # 3840 = 30 x 128 >= 3756  (minimal 128-multiple cover with TK=1280)


def net_kernel(x_ref, w1_ref, b1_ref, w2_ref, b2_ref, w3_ref, b3_ref,
               w4_ref, b4_ref, o_ref, acc_ref):
    """Grid = (batch tiles [parallel], conv1-K tiles [arbitrary]).

    conv1 (1x1) is accumulated in a f32 VMEM scratch across K-chunks; on the
    last chunk we apply bias+relu and run the small conv2 / conv3 / fc1 layers.
    max_pool2d with kernel_size=1 is the identity, so it is omitted.
    """
    k = pl.program_id(1)

    @pl.when(k == 0)
    def _init():
        acc_ref[...] = jnp.zeros_like(acc_ref)

    # Partial product for conv1: bf16 (bn, tk) @ bf16 (tk, C1) -> f32 accumulate.
    acc_ref[...] += jnp.dot(x_ref[...], w1_ref[...],
                            preferred_element_type=jnp.float32)

    @pl.when(k == pl.num_programs(1) - 1)
    def _finish():
        h1 = jnp.maximum(acc_ref[...] + b1_ref[...], 0.0)            # relu(conv1)
        h2 = jnp.maximum(
            jnp.dot(h1.astype(jnp.bfloat16), w2_ref[...],
                    preferred_element_type=jnp.float32) + b2_ref[...], 0.0)  # relu(conv2)
        h3 = jnp.maximum(
            jnp.dot(h2.astype(jnp.bfloat16), w3_ref[...],
                    preferred_element_type=jnp.float32) + b3_ref[...], 0.0)  # relu(conv3)
        out = jnp.dot(h3, w4_ref[...],
                      preferred_element_type=jnp.float32) + b4_ref[...]      # fc1
        o_ref[...] = out.astype(o_ref.dtype)


def prepare_params(w1, b1, w2, b2, w3, b3, w4, b4):
    """One-time parameter prep (outside the hot path).

    Pads W1's contraction dim to K_PAD and casts the streamed weights to bf16.
    Biases and the tiny fc1 weight stay f32 (epilogue math is f32).
    """
    w1p = jnp.pad(w1.astype(jnp.bfloat16), ((0, K_PAD - C_IN), (0, 0)))
    return (w1p, b1.astype(jnp.float32),
            w2.astype(jnp.bfloat16), b2.astype(jnp.float32),
            w3.astype(jnp.bfloat16), b3.astype(jnp.float32),
            w4.astype(jnp.float32), b4.astype(jnp.float32))


@functools.partial(jax.jit, static_argnames=("block_n",))
def net_forward(x_nchw, params, *, block_n=128):
    """x_nchw: (N, 3756, 1, 1) float32 -> (N, 1) float32."""
    w1, b1, w2, b2, w3, b3, w4, b4 = params
    N = x_nchw.shape[0]

    # Glue: collapse 1x1 spatial dims, cast to bf16, pad rows/cols (cheap; x is small).
    x = x_nchw.reshape(N, C_IN).astype(jnp.bfloat16)
    n_pad = pl.cdiv(N, 8) * 8
    bn = min(block_n, n_pad)
    n_pad = pl.cdiv(n_pad, bn) * bn
    x = jnp.pad(x, ((0, n_pad - N), (0, K_PAD - C_IN)))   # zero pads are inert

    grid = (n_pad // bn, K_PAD // TK)

    out = pl.pallas_call(
        net_kernel,
        out_shape=jax.ShapeDtypeStruct((n_pad, C_OUT), jnp.float32),
        grid_spec=pltpu.PrefetchScalarGridSpec(
            num_scalar_prefetch=0,
            grid=grid,
            in_specs=[
                pl.BlockSpec((bn, TK), lambda i, k: (i, k)),       # x tile
                pl.BlockSpec((TK, C1), lambda i, k: (k, 0)),       # W1 chunk
                pl.BlockSpec((1, C1), lambda i, k: (0, 0)),        # b1
                pl.BlockSpec((C1, C2), lambda i, k: (0, 0)),       # W2
                pl.BlockSpec((1, C2), lambda i, k: (0, 0)),        # b2
                pl.BlockSpec((C2, C3), lambda i, k: (0, 0)),       # W3
                pl.BlockSpec((1, C3), lambda i, k: (0, 0)),        # b3
                pl.BlockSpec((C3, C_OUT), lambda i, k: (0, 0)),    # W4 (fc1)
                pl.BlockSpec((1, C_OUT), lambda i, k: (0, 0)),     # b4
            ],
            out_specs=pl.BlockSpec((bn, C_OUT), lambda i, k: (i, 0)),
            scratch_shapes=[pltpu.VMEM((bn, C1), jnp.float32)],
        ),
        compiler_params=pltpu.CompilerParams(
            dimension_semantics=("parallel", "arbitrary"),
            vmem_limit_bytes=32 << 20,
        ),
    )(x, w1, b1, w2, b2, w3, b3, w4, b4)

    return out[:N]


def _init_linear(key, fan_in, fan_out):
    """PyTorch-default-style uniform(-1/sqrt(fan_in), 1/sqrt(fan_in)) init."""
    kw, kb = jax.random.split(key)
    bound = 1.0 / np.sqrt(fan_in)
    w = jax.random.uniform(kw, (fan_in, fan_out), jnp.float32, -bound, bound)
    b = jax.random.uniform(kb, (1, fan_out), jnp.float32, -bound, bound)
    return w, b


def reference_forward(x_nchw, params):
    """Pure-JAX reference using the same (bf16-cast) operands as the kernel."""
    w1, b1, w2, b2, w3, b3, w4, b4 = params
    N = x_nchw.shape[0]
    x = x_nchw.reshape(N, C_IN).astype(jnp.bfloat16)
    x = jnp.pad(x, ((0, 0), (0, K_PAD - C_IN)))
    h1 = jnp.maximum(jnp.dot(x, w1, preferred_element_type=jnp.float32) + b1, 0.0)
    h2 = jnp.maximum(jnp.dot(h1.astype(jnp.bfloat16), w2,
                             preferred_element_type=jnp.float32) + b2, 0.0)
    h3 = jnp.maximum(jnp.dot(h2.astype(jnp.bfloat16), w3,
                             preferred_element_type=jnp.float32) + b3, 0.0)
    return jnp.dot(h3, w4, preferred_element_type=jnp.float32) + b4


if __name__ == "__main__":
    key = jax.random.PRNGKey(0)
    k_x, k1, k2, k3, k4 = jax.random.split(key, 5)

    N = 8
    # Input consistent with the module: NCHW with 3756 channels, 1x1 spatial.
    x = jax.random.normal(k_x, (N, C_IN, 1, 1), jnp.float32)

    # Deterministic parameter init (1x1 conv weight (out,in,1,1) == matmul (in,out)).
    w1, b1 = _init_linear(k1, C_IN, C1)
    w2, b2 = _init_linear(k2, C1, C2)
    w3, b3 = _init_linear(k3, C2, C3)
    w4, b4 = _init_linear(k4, C3, C_OUT)

    # One-time prep (pad + bf16 cast) — NOT in the per-call hot path.
    params = prepare_params(w1, b1, w2, b2, w3, b3, w4, b4)

    out = net_forward(x, params)
    out = jax.block_until_ready(out)

    ref = reference_forward(x, params)
    np.testing.assert_allclose(np.asarray(out), np.asarray(ref),
                               rtol=2e-3, atol=2e-3)
    assert out.shape == (N, 1)
    print("KERNEL_OK")
</pallas_src>

<mosaic_0001>
module attributes {stable_mosaic.version = 11 : i64} {
  func.func @net_kernel(%arg0: i32, %arg1: i32, %arg2: memref<8x1280xbf16, #tpu.memory_space<vmem>>, %arg3: memref<1280x1252xbf16, #tpu.memory_space<vmem>>, %arg4: memref<1x1252xf32, #tpu.memory_space<vmem>>, %arg5: memref<1252x417xbf16, #tpu.memory_space<vmem>>, %arg6: memref<1x417xf32, #tpu.memory_space<vmem>>, %arg7: memref<417x139xbf16, #tpu.memory_space<vmem>>, %arg8: memref<1x139xf32, #tpu.memory_space<vmem>>, %arg9: memref<139x1xf32, #tpu.memory_space<vmem>>, %arg10: memref<1x1xf32, #tpu.memory_space<vmem>>, %arg11: memref<8x1xf32, #tpu.memory_space<vmem>>, %arg12: memref<8x1252xf32, #tpu.memory_space<vmem>>) attributes {dimension_semantics = [#tpu.dimension_semantics<parallel>, #tpu.dimension_semantics<arbitrary>], iteration_bounds = array<i64: 1, 3>, scalar_prefetch = 0 : i64, scratch_operands = 1 : i64, tpu.core_type = #tpu.core_type<tc>, window_params = [{transform_indices = @transform_0, window_bounds = array<i64: 8, 1280>}, {transform_indices = @transform_1, window_bounds = array<i64: 1280, 1252>}, {pipeline_mode = #tpu.pipeline_mode<synchronous>, transform_indices = @transform_2, window_bounds = array<i64: 1, 1252>}, {pipeline_mode = #tpu.pipeline_mode<synchronous>, transform_indices = @transform_3, window_bounds = array<i64: 1252, 417>}, {pipeline_mode = #tpu.pipeline_mode<synchronous>, transform_indices = @transform_4, window_bounds = array<i64: 1, 417>}, {pipeline_mode = #tpu.pipeline_mode<synchronous>, transform_indices = @transform_5, window_bounds = array<i64: 417, 139>}, {pipeline_mode = #tpu.pipeline_mode<synchronous>, transform_indices = @transform_6, window_bounds = array<i64: 1, 139>}, {pipeline_mode = #tpu.pipeline_mode<synchronous>, transform_indices = @transform_7, window_bounds = array<i64: 139, 1>}, {pipeline_mode = #tpu.pipeline_mode<synchronous>, transform_indices = @transform_8, window_bounds = array<i64: 1, 1>}, {transform_indices = @transform_9, window_bounds = array<i64: 8, 1>}]} {
    %c0_i32 = arith.constant 0 : i32
    %0 = arith.cmpi eq, %arg1, %c0_i32 : i32
    %1 = arith.extui %0 : i1 to i32
    %c0_i32_0 = arith.constant 0 : i32
    %2 = arith.cmpi ne, %1, %c0_i32_0 : i32
    scf.if %2 {
      %cst_9 = arith.constant 0.000000e+00 : f32
      %12 = vector.broadcast %cst_9 : f32 to vector<8x1252xf32>
      %c0_10 = arith.constant 0 : index
      %c0_11 = arith.constant 0 : index
      %13 = vector.load %arg12[%c0_10, %c0_11] : memref<8x1252xf32, #tpu.memory_space<vmem>>, vector<8x1252xf32>
      tpu.vector_store %arg12[%c0_10, %c0_11], %12 {strides = array<i32>} : memref<8x1252xf32, #tpu.memory_space<vmem>>, vector<8x1252xf32>,
    } else {
    }
    %c0 = arith.constant 0 : index
    %c0_1 = arith.constant 0 : index
    %3 = vector.load %arg12[%c0, %c0_1] : memref<8x1252xf32, #tpu.memory_space<vmem>>, vector<8x1252xf32>
    %c0_2 = arith.constant 0 : index
    %c0_3 = arith.constant 0 : index
    %4 = vector.load %arg2[%c0_2, %c0_3] : memref<8x1280xbf16, #tpu.memory_space<vmem>>, vector<8x1280xbf16>
    %c0_4 = arith.constant 0 : index
    %c0_5 = arith.constant 0 : index
    %5 = vector.load %arg3[%c0_4, %c0_5] : memref<1280x1252xbf16, #tpu.memory_space<vmem>>, vector<1280x1252xbf16>
    %cst = arith.constant dense<0.000000e+00> : vector<8x1252xf32>
    %6 = tpu.matmul %4, %5, %cst {dimension_numbers = #tpu.dot_dimension_numbers<[1], [0], [0], [1], [0, 0, 1, 1], [], []>} : vector<8x1280xbf16>, vector<1280x1252xbf16>, vector<8x1252xf32> -> vector<8x1252xf32>
    %7 = arith.addf %3, %6 : vector<8x1252xf32>
    %c0_6 = arith.constant 0 : index
    %c0_7 = arith.constant 0 : index
    %8 = vector.load %arg12[%c0_6, %c0_7] : memref<8x1252xf32, #tpu.memory_space<vmem>>, vector<8x1252xf32>
    tpu.vector_store %arg12[%c0_6, %c0_7], %7 {strides = array<i32>} : memref<8x1252xf32, #tpu.memory_space<vmem>>, vector<8x1252xf32>,
    %c2_i32 = arith.constant 2 : i32
    %9 = arith.cmpi eq, %arg1, %c2_i32 : i32
    %10 = arith.extui %9 : i1 to i32
    %c0_i32_8 = arith.constant 0 : i32
    %11 = arith.cmpi ne, %10, %c0_i32_8 : i32
    scf.if %11 {
      %c0_9 = arith.constant 0 : index
      %c0_10 = arith.constant 0 : index
      %12 = vector.load %arg12[%c0_9, %c0_10] : memref<8x1252xf32, #tpu.memory_space<vmem>>, vector<8x1252xf32>
      %c0_11 = arith.constant 0 : index
      %c0_12 = arith.constant 0 : index
      %13 = vector.load %arg4[%c0_11, %c0_12] : memref<1x1252xf32, #tpu.memory_space<vmem>>, vector<1x1252xf32>
      %14 = vector.broadcast %13 : vector<1x1252xf32> to vector<8x1252xf32>
      %15 = arith.addf %12, %14 : vector<8x1252xf32>
      %cst_13 = arith.constant 0.000000e+00 : f32
      %16 = vector.broadcast %cst_13 : f32 to vector<8x1252xf32>
      %17 = arith.maximumf %15, %16 : vector<8x1252xf32>
      %18 = arith.truncf %17 : vector<8x1252xf32> to vector<8x1252xbf16>
      %c0_14 = arith.constant 0 : index
      %c0_15 = arith.constant 0 : index
      %19 = vector.load %arg5[%c0_14, %c0_15] : memref<1252x417xbf16, #tpu.memory_space<vmem>>, vector<1252x417xbf16>
      %cst_16 = arith.constant dense<0.000000e+00> : vector<8x417xf32>
      %20 = tpu.matmul %18, %19, %cst_16 {dimension_numbers = #tpu.dot_dimension_numbers<[1], [0], [0], [1], [0, 0, 1, 1], [], []>} : vector<8x1252xbf16>, vector<1252x417xbf16>, vector<8x417xf32> -> vector<8x417xf32>
      %c0_17 = arith.constant 0 : index
      %c0_18 = arith.constant 0 : index
      %21 = vector.load %arg6[%c0_17, %c0_18] : memref<1x417xf32, #tpu.memory_space<vmem>>, vector<1x417xf32>
      %22 = vector.broadcast %21 : vector<1x417xf32> to vector<8x417xf32>
      %23 = arith.addf %20, %22 : vector<8x417xf32>
      %cst_19 = arith.constant 0.000000e+00 : f32
      %24 = vector.broadcast %cst_19 : f32 to vector<8x417xf32>
      %25 = arith.maximumf %23, %24 : vector<8x417xf32>
      %26 = arith.truncf %25 : vector<8x417xf32> to vector<8x417xbf16>
      %c0_20 = arith.constant 0 : index
      %c0_21 = arith.constant 0 : index
      %27 = vector.load %arg7[%c0_20, %c0_21] : memref<417x139xbf16, #tpu.memory_space<vmem>>, vector<417x139xbf16>
      %cst_22 = arith.constant dense<0.000000e+00> : vector<8x139xf32>
      %28 = tpu.matmul %26, %27, %cst_22 {dimension_numbers = #tpu.dot_dimension_numbers<[1], [0], [0], [1], [0, 0, 1, 1], [], []>} : vector<8x417xbf16>, vector<417x139xbf16>, vector<8x139xf32> -> vector<8x139xf32>
      %c0_23 = arith.constant 0 : index
      %c0_24 = arith.constant 0 : index
      %29 = vector.load %arg8[%c0_23, %c0_24] : memref<1x139xf32, #tpu.memory_space<vmem>>, vector<1x139xf32>
      %30 = vector.broadcast %29 : vector<1x139xf32> to vector<8x139xf32>
      %31 = arith.addf %28, %30 : vector<8x139xf32>
      %cst_25 = arith.constant 0.000000e+00 : f32
      %32 = vector.broadcast %cst_25 : f32 to vector<8x139xf32>
      %33 = arith.maximumf %31, %32 : vector<8x139xf32>
      %c0_26 = arith.constant 0 : index
      %c0_27 = arith.constant 0 : index
      %34 = vector.load %arg9[%c0_26, %c0_27] : memref<139x1xf32, #tpu.memory_space<vmem>>, vector<139x1xf32>
      %cst_28 = arith.constant dense<0.000000e+00> : vector<8x1xf32>
      %35 = tpu.matmul %33, %34, %cst_28 {dimension_numbers = #tpu.dot_dimension_numbers<[1], [0], [0], [1], [0, 0, 1, 1], [], []>} : vector<8x139xf32>, vector<139x1xf32>, vector<8x1xf32> -> vector<8x1xf32>
      %c0_29 = arith.constant 0 : index
      %c0_30 = arith.constant 0 : index
      %36 = vector.load %arg10[%c0_29, %c0_30] : memref<1x1xf32, #tpu.memory_space<vmem>>, vector<1x1xf32>
      %37 = vector.broadcast %36 : vector<1x1xf32> to vector<8x1xf32>
      %38 = arith.addf %35, %37 : vector<8x1xf32>
      %c0_31 = arith.constant 0 : index
      %c0_32 = arith.constant 0 : index
      %39 = vector.load %arg11[%c0_31, %c0_32] : memref<8x1xf32, #tpu.memory_space<vmem>>, vector<8x1xf32>
      tpu.vector_store %arg11[%c0_31, %c0_32], %38 {strides = array<i32>} : memref<8x1xf32, #tpu.memory_space<vmem>>, vector<8x1xf32>,
    } else {
    }
    return
  }
  func.func @transform_0(%arg0: i32, %arg1: i32) -> (i32, i32) {
    %c0_i32 = arith.constant 0 : i32
    return %arg0, %arg1 : i32, i32
  }
  func.func @transform_1(%arg0: i32, %arg1: i32) -> (i32, i32) {
    %c0_i32 = arith.constant 0 : i32
    %c0_i32_0 = arith.constant 0 : i32
    return %arg1, %c0_i32 : i32, i32
  }
  func.func @transform_2(%arg0: i32, %arg1: i32) -> (i32, i32) {
    %c0_i32 = arith.constant 0 : i32
    %c0_i32_0 = arith.constant 0 : i32
    %c0_i32_1 = arith.constant 0 : i32
    return %c0_i32, %c0_i32_0 : i32, i32
  }
  func.func @transform_3(%arg0: i32, %arg1: i32) -> (i32, i32) {
    %c0_i32 = arith.constant 0 : i32
    %c0_i32_0 = arith.constant 0 : i32
    %c0_i32_1 = arith.constant 0 : i32
    return %c0_i32, %c0_i32_0 : i32, i32
  }
  func.func @transform_4(%arg0: i32, %arg1: i32) -> (i32, i32) {
    %c0_i32 = arith.constant 0 : i32
    %c0_i32_0 = arith.constant 0 : i32
    %c0_i32_1 = arith.constant 0 : i32
    return %c0_i32, %c0_i32_0 : i32, i32
  }
  func.func @transform_5(%arg0: i32, %arg1: i32) -> (i32, i32) {
    %c0_i32 = arith.constant 0 : i32
    %c0_i32_0 = arith.constant 0 : i32
    %c0_i32_1 = arith.constant 0 : i32
    return %c0_i32, %c0_i32_0 : i32, i32
  }
  func.func @transform_6(%arg0: i32, %arg1: i32) -> (i32, i32) {
    %c0_i32 = arith.constant 0 : i32
    %c0_i32_0 = arith.constant 0 : i32
    %c0_i32_1 = arith.constant 0 : i32
    return %c0_i32, %c0_i32_0 : i32, i32
  }
  func.func @transform_7(%arg0: i32, %arg1: i32) -> (i32, i32) {
    %c0_i32 = arith.constant 0 : i32
    %c0_i32_0 = arith.constant 0 : i32
    %c0_i32_1 = arith.constant 0 : i32
    return %c0_i32, %c0_i32_0 : i32, i32
  }
  func.func @transform_8(%arg0: i32, %arg1: i32) -> (i32, i32) {
    %c0_i32 = arith.constant 0 : i32
    %c0_i32_0 = arith.constant 0 : i32
    %c0_i32_1 = arith.constant 0 : i32
    return %c0_i32, %c0_i32_0 : i32, i32
  }
  func.func @transform_9(%arg0: i32, %arg1: i32) -> (i32, i32) {
    %c0_i32 = arith.constant 0 : i32
    %c0_i32_0 = arith.constant 0 : i32
    return %arg0, %c0_i32 : i32, i32
  }
}

</mosaic_0001>

<bundles_post_ra>
// kernel: net_forward.1
= control target key start
LH: loop header
LB: loop body
LE: loop exit
PB: predicated region body
PF: predicated region fallthrough
CT: control target
= control target key end

     0   :  { %s12485_s11 = smov 0   ;;  %s12487_s12 = smov 0   ;;  %s14694_s0 = inlined_call_operand.vmem [shape: bf16[8,3840], index: 0, kind: input, shape index: {}]   ;;  %s14695_s1 = inlined_call_operand.vmem [shape: bf16[3840,1252], index: 1, kind: input, shape index: {}]   ;;  %s14696_s2 = inlined_call_operand.vmem [shape: f32[1,1252], index: 2, kind: input, shape index: {}]   ;;  %s14697_s3 = inlined_call_operand.vmem [shape: bf16[1252,417], index: 3, kind: input, shape index: {}]   ;;  %s14698_s4 = inlined_call_operand.vmem [shape: f32[1,417], index: 4, kind: input, shape index: {}]   ;;  %s14699_s5 = inlined_call_operand.vmem [shape: bf16[417,139], index: 5, kind: input, shape index: {}]   ;;  %s14700_s6 = inlined_call_operand.vmem [shape: f32[1,139], index: 6, kind: input, shape index: {}]   ;;  %s14701_s7 = inlined_call_operand.vmem [shape: f32[139,1], index: 7, kind: input, shape index: {}]   ;;  %s14702_s8 = inlined_call_operand.<no memory space> [shape: f32[1,1], index: 8, kind: input, shape index: {}]   ;;  %s14703_s9 = inlined_call_operand.vmem [shape: f32[8,1], index: 9, kind: output, shape index: {}]  }
   0x1   :  { %v14_v0 = vstv %s14702_s8  ;;  %s12489_s13 = smov 0  }
   0x2   :  { %15 = vst [vmem:[#allocation3] sm:$0x1] %v14_v0 }
   0x3 LB: > { %s30_s8 = sadd.s32 1, %s12422_s12  ;;  %p9348_p0 = scmp.ge.s32.totalorder %s12426_s13, 1  ;;  %s12426_s13 = sphi %s12489_s13, %s21_s13   ;;  %s12422_s12 = sphi %s12487_s12, %s14705_s12   ;;  %s12418_s11 = sphi %s12485_s11, %s14704_s11  }
   0x4   : > { %p31_p1 = scmp.ge.s32.totalorder %s30_s8, 3  ;;  %p320_p2 = scmp.lt.s32.totalorder %s12426_s13, 4 }
   0x6   : > { %s14707_s8 = smov (%p31_p1, %s30_s8), 0  ;;  %p321_p3 = pnand %p9348_p0, %p320_p2 }
   0x7   : > { %s365_s14 = smul.u32 (!%p321_p3), 10, %s12418_s11  ;;  %p9351_p6 = scmp.ne.s32.totalorder (!%p321_p3), %s12418_s11, 0 }
   0x8   : > { %324 = sbr.rel (%p321_p3) target bundleno = 1995 (0x7cb), region = 56 }
   0x9   : > { %s375_s15 = smul.u32 (!%p321_p3), 160, %s12418_s11  ;;  %p368_p4 = scmp.lt.s32.totalorder (!%p321_p3), %s365_s14, 29 }
   0xb   : > { %p376_p5 = scmp.lt.s32.totalorder (!%p321_p3), %s375_s15, 479 }
   0xf   : > { %s14709_s14 = smov (!%p368_p4, %s365_s14), 29  ;;  %s14711_s15 = smov (!%p376_p5, %s375_s15), 479 }
  0x10   : > { %s9349_s16 = sshll.u32 %s14709_s14, 2  ;;  %s10612_s20 = smul.u32 40, %s14711_s15  ;;  %vm400_vm0 = vcmask (!%p9351_p6), 818176   ;;  %v12428_v1 = vmov (!%p9351_p6), 0.0  }
  0x11   : > { %s12510_s19 = scalar_lea.vmem %s14694_s0, %s9349_s16  ;;  %390 = sbr.rel (%p9351_p6) target bundleno = 24 (0x18), region = 60  ;;  %391 = vst [vmem:[#allocation2] sm:$0xff] (!%p9351_p6), %v12428_v1  ;;  %392 = vst [vmem:[#allocation2 + $0x8] sm:$0xff] (!%p9351_p6), %v12428_v1 }
  0x12   : > { %s12515_s23 = scalar_lea.vmem %s14695_s1, %s10612_s20  ;;  %393 = vst [vmem:[#allocation2 + $0x10] sm:$0xff] (!%p9351_p6), %v12428_v1  ;;  %394 = vst [vmem:[#allocation2 + $0x18] sm:$0xff] (!%p9351_p6), %v12428_v1 }
  0x13   : > { %395 = vst [vmem:[#allocation2 + $0x20] sm:$0xff] (!%p9351_p6), %v12428_v1  ;;  %396 = vst [vmem:[#allocation2 + $0x28] sm:$0xff] (!%p9351_p6), %v12428_v1 }
  0x14   : > { %397 = vst [vmem:[#allocation2 + $0x30] sm:$0xff] (!%p9351_p6), %v12428_v1  ;;  %398 = vst [vmem:[#allocation2 + $0x38] sm:$0xff] (!%p9351_p6), %v12428_v1 }
  0x15   : > { %399 = vst [vmem:[#allocation2 + $0x40] sm:$0xff] (!%p9351_p6), %v12428_v1  ;;  %401 = vst.msk [vmem:[#allocation2 + $0x48] sm:$0xff] (!%p9351_p6), %vm400_vm0, %v12428_v1 }
  0x18 PF: > { %v10641_v2 = vld [vmem:[%s12515_s23 + $0x4] ss:$40 sps:$4 sm:$0xff]   ;;  %v10645_v4 = vld [vmem:[%s12515_s23] ss:$40 sps:$4 sm:$0xff]   ;;  %v10647_v6 = vld [vmem:[%s12515_s23 + $0x54] ss:$40 sps:$4 sm:$0xff]  }
  0x19   : > { %v10643_v3 = vld [vmem:[%s12515_s23 + $0x504] ss:$40 sps:$4 sm:$0xff]   ;;  %5252 = vmatprep.subr.bf16.mxu0 %v10641_v2  ;;  %v10646_v5 = vld [vmem:[%s12515_s23 + $0x500] ss:$40 sps:$4 sm:$0xff]   ;;  %v10649_v7 = vld [vmem:[%s12515_s23 + $0x554] ss:$40 sps:$4 sm:$0xff]  }
  0x1a   : > { %5293 = vmatprep.subr.bf16.mxu1 %v10643_v3  ;;  %5253 = vmatpush1.bf16.msra.mxu0 %v10645_v4  ;;  %v10651_v8 = vld [vmem:[%s12515_s23 + $0x50] ss:$40 sps:$4 sm:$0xff]   ;;  %v10653_v10 = vld [vmem:[%s12515_s23 + $0xa4] ss:$40 sps:$4 sm:$0xff]   ;;  %v10657_v12 = vld [vmem:[%s12515_s23 + $0xa0] ss:$40 sps:$4 sm:$0xff]  }
  0x1b   : > { %5294 = vmatpush1.bf16.msra.mxu1 %v10646_v5  ;;  %5254 = vmatprep.subr.bf16.mxu0 %v10647_v6  ;;  %v10652_v9 = vld [vmem:[%s12515_s23 + $0x550] ss:$40 sps:$4 sm:$0xff]   ;;  %v10655_v11 = vld [vmem:[%s12515_s23 + $0x5a4] ss:$40 sps:$4 sm:$0xff]   ;;  %v10658_v13 = vld [vmem:[%s12515_s23 + $0x5a0] ss:$40 sps:$4 sm:$0xff]  }
  0x1c   : > { %5295 = vmatprep.subr.bf16.mxu1 %v10649_v7  ;;  %v10659_v14 = vld [vmem:[%s12515_s23 + $0xf4] ss:$40 sps:$4 sm:$0xff]   ;;  %v10663_v16 = vld [vmem:[%s12515_s23 + $0xf0] ss:$40 sps:$4 sm:$0xff]   ;;  %v10665_v18 = vld [vmem:[%s12515_s23 + $0x144] ss:$40 sps:$4 sm:$0xff]  }
  0x1d   : > { %v10661_v15 = vld [vmem:[%s12515_s23 + $0x5f4] ss:$40 sps:$4 sm:$0xff]   ;;  %v10664_v17 = vld [vmem:[%s12515_s23 + $0x5f0] ss:$40 sps:$4 sm:$0xff]   ;;  %v10667_v19 = vld [vmem:[%s12515_s23 + $0x644] ss:$40 sps:$4 sm:$0xff]  }
  0x1e   : > { %5255 = vmatpush1.bf16.msra.mxu0 %v10651_v8  ;;  %v10669_v20 = vld [vmem:[%s12515_s23 + $0x140] ss:$40 sps:$4 sm:$0xff]   ;;  %v10671_v22 = vld [vmem:[%s12515_s23 + $0x194] ss:$40 sps:$4 sm:$0xff]   ;;  %v10675_v24 = vld [vmem:[%s12515_s23 + $0x190] ss:$40 sps:$4 sm:$0xff]  }
  0x1f   : > { %5296 = vmatpush1.bf16.msra.mxu1 %v10652_v9  ;;  %5256 = vmatprep.subr.bf16.mxu0 %v10653_v10  ;;  %v10670_v21 = vld [vmem:[%s12515_s23 + $0x640] ss:$40 sps:$4 sm:$0xff]   ;;  %v10673_v23 = vld [vmem:[%s12515_s23 + $0x694] ss:$40 sps:$4 sm:$0xff]   ;;  %v10676_v25 = vld [vmem:[%s12515_s23 + $0x690] ss:$40 sps:$4 sm:$0xff]  }
  0x20   : > { %5297 = vmatprep.subr.bf16.mxu1 %v10655_v11  ;;  %v10677_v26 = vld [vmem:[%s12515_s23 + $0x1e4] ss:$40 sps:$4 sm:$0xff]   ;;  %v10681_v28 = vld [vmem:[%s12515_s23 + $0x1e0] ss:$40 sps:$4 sm:$0xff]   ;;  %v10683_v30 = vld [vmem:[%s12515_s23 + $0x234] ss:$40 sps:$4 sm:$0xff]  }
  0x21   : > { %v10679_v27 = vld [vmem:[%s12515_s23 + $0x6e4] ss:$40 sps:$4 sm:$0xff]   ;;  %v10682_v29 = vld [vmem:[%s12515_s23 + $0x6e0] ss:$40 sps:$4 sm:$0xff]   ;;  %v10685_v31 = vld [vmem:[%s12515_s23 + $0x734] ss:$40 sps:$4 sm:$0xff]  }
  0x22   : > { %5257 = vmatpush1.bf16.msra.mxu0 %v10657_v12  ;;  %v10687_v32 = vld [vmem:[%s12515_s23 + $0x230] ss:$40 sps:$4 sm:$0xff]   ;;  %v10689_v34 = vld [vmem:[%s12515_s23 + $0x284] ss:$40 sps:$4 sm:$0xff]   ;;  %v10693_v36 = vld [vmem:[%s12515_s23 + $0x280] ss:$40 sps:$4 sm:$0xff]  }
  0x23   : > { %5298 = vmatpush1.bf16.msra.mxu1 %v10658_v13  ;;  %5258 = vmatprep.subr.bf16.mxu0 %v10659_v14  ;;  %v10688_v33 = vld [vmem:[%s12515_s23 + $0x730] ss:$40 sps:$4 sm:$0xff]   ;;  %v10691_v35 = vld [vmem:[%s12515_s23 + $0x784] ss:$40 sps:$4 sm:$0xff]   ;;  %v10694_v37 = vld [vmem:[%s12515_s23 + $0x780] ss:$40 sps:$4 sm:$0xff]  }
  0x24   : > { %5299 = vmatprep.subr.bf16.mxu1 %v10661_v15  ;;  %v10695_v38 = vld [vmem:[%s12515_s23 + $0x2d4] ss:$40 sps:$4 sm:$0xff]   ;;  %v10699_v40 = vld [vmem:[%s12515_s23 + $0x2d0] ss:$40 sps:$4 sm:$0xff]   ;;  %v10701_v42 = vld [vmem:[%s12515_s23 + $0x324] ss:$40 sps:$4 sm:$0xff]  }
  0x25   : > { %v10697_v39 = vld [vmem:[%s12515_s23 + $0x7d4] ss:$40 sps:$4 sm:$0xff]   ;;  %v10700_v41 = vld [vmem:[%s12515_s23 + $0x7d0] ss:$40 sps:$4 sm:$0xff]   ;;  %v10703_v43 = vld [vmem:[%s12515_s23 + $0x824] ss:$40 sps:$4 sm:$0xff]  }
  0x26   : > { %5259 = vmatpush1.bf16.msra.mxu0 %v10663_v16  ;;  %v10705_v44 = vld [vmem:[%s12515_s23 + $0x320] ss:$40 sps:$4 sm:$0xff]   ;;  %v10707_v46 = vld [vmem:[%s12515_s23 + $0x374] ss:$40 sps:$4 sm:$0xff]   ;;  %v10711_v51 = vld [vmem:[%s12515_s23 + $0x370] ss:$40 sps:$4 sm:$0xff]  }
  0x27   : > { %5300 = vmatpush1.bf16.msra.mxu1 %v10664_v17  ;;  %5260 = vmatprep.subr.bf16.mxu0 %v10665_v18  ;;  %v10706_v45 = vld [vmem:[%s12515_s23 + $0x820] ss:$40 sps:$4 sm:$0xff]   ;;  %v10709_v47 = vld [vmem:[%s12515_s23 + $0x874] ss:$40 sps:$4 sm:$0xff]   ;;  %v10712_v52 = vld [vmem:[%s12515_s23 + $0x870] ss:$40 sps:$4 sm:$0xff]  }
  0x28   : > { %5301 = vmatprep.subr.bf16.mxu1 %v10667_v19  ;;  %v412_v48 = vld [vmem:[%s12510_s19] sm:$0xff]  ;;  %v413_v50 = vld [vmem:[%s12510_s19 + $0x8] sm:$0xff]  ;;  %v10719_v58 = vld [vmem:[%s12515_s23 + $0x414] ss:$40 sps:$4 sm:$0xff]   ;;  %vm6296_vm1 = vcmask 818176   ;;  %p10162_p7 = scmp.ne.s32.totalorder %s12418_s11, 2 }
  0x29   : > { %v12565_v49 = vcombine.high %v412_v48, %v412_v48  ;;  %v12570_v53 = vcombine.high %v413_v50, %v413_v50  ;;  %v10713_v54 = vld [vmem:[%s12515_s23 + $0x3c4] ss:$40 sps:$4 sm:$0xff]   ;;  %v10717_v56 = vld [vmem:[%s12515_s23 + $0x3c0] ss:$40 sps:$4 sm:$0xff]   ;;  %v10721_v59 = vld [vmem:[%s12515_s23 + $0x914] ss:$40 sps:$4 sm:$0xff]   ;;  %v12592_v8 = vcombine.low %v412_v48, %v412_v48  ;;  %v12594_v9 = vcombine.low %v413_v50, %v413_v50 }
  0x2a   : > { %5261 = vmatpush1.bf16.msra.mxu0 %v10669_v20  ;;  %v10715_v55 = vld [vmem:[%s12515_s23 + $0x8c4] ss:$40 sps:$4 sm:$0xff]   ;;  %v10718_v57 = vld [vmem:[%s12515_s23 + $0x8c0] ss:$40 sps:$4 sm:$0xff]   ;;  %v10723_v60 = vld [vmem:[%s12515_s23 + $0x410] ss:$40 sps:$4 sm:$0xff]  }
  0x2b   : > { %5302 = vmatpush1.bf16.msra.mxu1 %v10670_v21  ;;  %5262 = vmatprep.subr.bf16.mxu0 %v10671_v22  ;;  %v10724_v61 = vld [vmem:[%s12515_s23 + $0x910] ss:$40 sps:$4 sm:$0xff]   ;;  %v10725_v62 = vld [vmem:[%s12515_s23 + $0x464] ss:$40 sps:$4 sm:$0xff]   ;;  %v10729_v0 = vld [vmem:[%s12515_s23 + $0x460] ss:$40 sps:$4 sm:$0xff]  }
  0x2c   : > { %5303 = vmatprep.subr.bf16.mxu1 %v10673_v23  ;;  %5284 = vmatprep.mubr.bf16.mxu0 %v12565_v49  ;;  %v10727_v63 = vld [vmem:[%s12515_s23 + $0x964] ss:$40 sps:$4 sm:$0xff]   ;;  %v10730_v1 = vld [vmem:[%s12515_s23 + $0x960] ss:$40 sps:$4 sm:$0xff]   ;;  %v10731_v2 = vld [vmem:[%s12515_s23 + $0x4b4] ss:$40 sps:$4 sm:$0xff]  }
  0x2d   : > { %5325 = vmatprep.mubr.bf16.mxu1 %v12570_v53  ;;  %v10733_v3 = vld [vmem:[%s12515_s23 + $0x9b4] ss:$40 sps:$4 sm:$0xff]   ;;  %v10735_v4 = vld [vmem:[%s12515_s23 + $0x4b0] ss:$40 sps:$4 sm:$0xff]   ;;  %v10743_v6 = vld [vmem:[%s12515_s23 + $0xa04] ss:$40 sps:$4 sm:$0xff]  }
  0x2e   : > { %5263 = vmatpush1.bf16.msra.mxu0 %v10675_v24  ;;  %v10736_v5 = vld [vmem:[%s12515_s23 + $0x9b0] ss:$40 sps:$4 sm:$0xff]   ;;  %v10746_v7 = vld [vmem:[%s12515_s23 + $0xf04] ss:$40 sps:$4 sm:$0xff]   ;;  %v10741_v10 = vld [vmem:[%s12515_s23 + $0xa00] ss:$40 sps:$4 sm:$0xff]  }
  0x2f   : > { %5304 = vmatpush1.bf16.msra.mxu1 %v10676_v25  ;;  %5264 = vmatprep.subr.bf16.mxu0 %v10677_v26  ;;  %v10744_v11 = vld [vmem:[%s12515_s23 + $0xf00] ss:$40 sps:$4 sm:$0xff]   ;;  %v10749_v12 = vld [vmem:[%s12515_s23 + $0xa54] ss:$40 sps:$4 sm:$0xff]   ;;  %v10747_v14 = vld [vmem:[%s12515_s23 + $0xa50] ss:$40 sps:$4 sm:$0xff]  }
  0x30   : > { %5305 = vmatprep.subr.bf16.mxu1 %v10679_v27  ;;  %v10752_v13 = vld [vmem:[%s12515_s23 + $0xf54] ss:$40 sps:$4 sm:$0xff]   ;;  %v10750_v15 = vld [vmem:[%s12515_s23 + $0xf50] ss:$40 sps:$4 sm:$0xff]   ;;  %v10755_v16 = vld [vmem:[%s12515_s23 + $0xaa4] ss:$40 sps:$4 sm:$0xff]  }
  0x31   : > { %v10758_v17 = vld [vmem:[%s12515_s23 + $0xfa4] ss:$40 sps:$4 sm:$0xff]   ;;  %v10753_v18 = vld [vmem:[%s12515_s23 + $0xaa0] ss:$40 sps:$4 sm:$0xff]   ;;  %v10761_v20 = vld [vmem:[%s12515_s23 + $0xaf4] ss:$40 sps:$4 sm:$0xff]  }
  0x32   : > { %5265 = vmatpush1.bf16.msra.mxu0 %v10681_v28  ;;  %v10756_v19 = vld [vmem:[%s12515_s23 + $0xfa0] ss:$40 sps:$4 sm:$0xff]   ;;  %v10764_v21 = vld [vmem:[%s12515_s23 + $0xff4] ss:$40 sps:$4 sm:$0xff]   ;;  %v10759_v22 = vld [vmem:[%s12515_s23 + $0xaf0] ss:$40 sps:$4 sm:$0xff]  }
  0x33   : > { %5306 = vmatpush1.bf16.msra.mxu1 %v10682_v29  ;;  %5266 = vmatprep.subr.bf16.mxu0 %v10683_v30  ;;  %v10762_v23 = vld [vmem:[%s12515_s23 + $0xff0] ss:$40 sps:$4 sm:$0xff]   ;;  %v10767_v24 = vld [vmem:[%s12515_s23 + $0xb44] ss:$40 sps:$4 sm:$0xff]   ;;  %v10765_v26 = vld [vmem:[%s12515_s23 + $0xb40] ss:$40 sps:$4 sm:$0xff]  }
  0x34   : > { %5307 = vmatprep.subr.bf16.mxu1 %v10685_v31  ;;  %v10770_v25 = vld [vmem:[%s12515_s23 + $0x1044] ss:$40 sps:$4 sm:$0xff]   ;;  %v10768_v27 = vld [vmem:[%s12515_s23 + $0x1040] ss:$40 sps:$4 sm:$0xff]   ;;  %v10773_v28 = vld [vmem:[%s12515_s23 + $0xb94] ss:$40 sps:$4 sm:$0xff]  }
  0x35   : > { %v10776_v29 = vld [vmem:[%s12515_s23 + $0x1094] ss:$40 sps:$4 sm:$0xff]   ;;  %v10771_v30 = vld [vmem:[%s12515_s23 + $0xb90] ss:$40 sps:$4 sm:$0xff]   ;;  %vm8305_vm2 = vcmask (!%p10162_p7), 1041408   ;;  %vm9070_vm3 = vcmask (!%p10162_p7), 1040384  }
  0x36   : > { %5267 = vmatpush1.bf16.msra.mxu0 %v10687_v32  ;;  %v10774_v31 = vld [vmem:[%s12515_s23 + $0x1090] ss:$40 sps:$4 sm:$0xff]   ;;  %v10779_v32 = vld [vmem:[%s12515_s23 + $0xbe4] ss:$40 sps:$4 sm:$0xff]   ;;  %v10797_v48 = vld [vmem:[%s12515_s23 + $0xcd4] ss:$40 sps:$4 sm:$0xff]  }
  0x37   : > { %5308 = vmatpush1.bf16.msra.mxu1 %v10688_v33  ;;  %5268 = vmatprep.subr.bf16.mxu0 %v10689_v34  ;;  %v10782_v33 = vld [vmem:[%s12515_s23 + $0x10e4] ss:$40 sps:$4 sm:$0xff]   ;;  %v12623_v34 = vld [vmem:[%s12510_s19 + $0x10] sm:$0xff]  ;;  %vm9066_vm4 = vcmask (!%p10162_p7), 269312   ;;  %vm9192_vm5 = vcmask (!%p10162_p7), 1042432   ;;  %vm12431_vm6 = vmmov (!%p10162_p7), 1  }
  0x38   : > { %5309 = vmatprep.subr.bf16.mxu1 %v10691_v35  ;;  %v12626_v35 = vld [vmem:[%s12510_s19 + $0x18] sm:$0xff]  ;;  %vm10570_vm7 = vmpackc.low (!%p10162_p7), %vm9192_vm5, %vm12431_vm6  ;;  %vm9188_vm8 = vcmask (!%p10162_p7), 89088   ;;  %vm9266_vm9 = vcmask (!%p10162_p7), 7168  }
  0x39   : > { %v10800_v50 = vld [vmem:[%s12515_s23 + $0x11d4] ss:$40 sps:$4 sm:$0xff]  }
  0x3a   : > { %5269 = vmatpush1.bf16.msra.mxu0 %v10693_v36  ;;  %v10777_v36 = vld [vmem:[%s12515_s23 + $0xbe0] ss:$40 sps:$4 sm:$0xff]  }
  0x3b   : > { %5310 = vmatpush1.bf16.msra.mxu1 %v10694_v37  ;;  %5270 = vmatprep.subr.bf16.mxu0 %v10695_v38  ;;  %v10780_v37 = vld [vmem:[%s12515_s23 + $0x10e0] ss:$40 sps:$4 sm:$0xff]   ;;  %v12632_v38 = vcombine.high %v12623_v34, %v12623_v34 }
  0x3c   : > { %5311 = vmatprep.subr.bf16.mxu1 %v10697_v39  ;;  %v12636_v39 = vcombine.high %v12626_v35, %v12626_v35 }
  0x3e   : > { %5271 = vmatpush1.bf16.msra.mxu0 %v10699_v40  ;;  %v10785_v40 = vld [vmem:[%s12515_s23 + $0xc34] ss:$40 sps:$4 sm:$0xff]  }
  0x3f   : > { %5312 = vmatpush1.bf16.msra.mxu1 %v10700_v41  ;;  %5272 = vmatprep.subr.bf16.mxu0 %v10701_v42  ;;  %v10788_v41 = vld [vmem:[%s12515_s23 + $0x1134] ss:$40 sps:$4 sm:$0xff]   ;;  %v10783_v42 = vld [vmem:[%s12515_s23 + $0xc30] ss:$40 sps:$4 sm:$0xff]  }
  0x40   : > { %5313 = vmatprep.subr.bf16.mxu1 %v10703_v43  ;;  %v10786_v43 = vld [vmem:[%s12515_s23 + $0x1130] ss:$40 sps:$4 sm:$0xff]  }
  0x42   : > { %5273 = vmatpush1.bf16.msra.mxu0 %v10705_v44  ;;  %v10791_v44 = vld [vmem:[%s12515_s23 + $0xc84] ss:$40 sps:$4 sm:$0xff]  }
  0x43   : > { %5314 = vmatpush1.bf16.msra.mxu1 %v10706_v45  ;;  %5274 = vmatprep.subr.bf16.mxu0 %v10707_v46  ;;  %v10794_v45 = vld [vmem:[%s12515_s23 + $0x1184] ss:$40 sps:$4 sm:$0xff]   ;;  %v10789_v46 = vld [vmem:[%s12515_s23 + $0xc80] ss:$40 sps:$4 sm:$0xff]  }
  0x44   : > { %5315 = vmatprep.subr.bf16.mxu1 %v10709_v47  ;;  %v10792_v47 = vld [vmem:[%s12515_s23 + $0x1180] ss:$40 sps:$4 sm:$0xff]  }
  0x46   : > { %5275 = vmatpush1.bf16.msra.mxu0 %v10711_v51  ;;  %v10795_v51 = vld [vmem:[%s12515_s23 + $0xcd0] ss:$40 sps:$4 sm:$0xff]  }
  0x47   : > { %5316 = vmatpush1.bf16.msra.mxu1 %v10712_v52  ;;  %5276 = vmatprep.subr.bf16.mxu0 %v10713_v54  ;;  %v10798_v52 = vld [vmem:[%s12515_s23 + $0x11d0] ss:$40 sps:$4 sm:$0xff]   ;;  %v10803_v54 = vld [vmem:[%s12515_s23 + $0xd24] ss:$40 sps:$4 sm:$0xff]  }
  0x48   : > { %5317 = vmatprep.subr.bf16.mxu1 %v10715_v55  ;;  %v10806_v55 = vld [vmem:[%s12515_s23 + $0x1224] ss:$40 sps:$4 sm:$0xff]  }
  0x4a   : > { %5277 = vmatpush1.bf16.msra.mxu0 %v10717_v56  ;;  %v10801_v56 = vld [vmem:[%s12515_s23 + $0xd20] ss:$40 sps:$4 sm:$0xff]  }
  0x4b   : > { %5318 = vmatpush1.bf16.msra.mxu1 %v10718_v57  ;;  %5278 = vmatprep.subr.bf16.mxu0 %v10719_v58  ;;  %v10804_v57 = vld [vmem:[%s12515_s23 + $0x1220] ss:$40 sps:$4 sm:$0xff]   ;;  %v10809_v58 = vld [vmem:[%s12515_s23 + $0xd74] ss:$40 sps:$4 sm:$0xff]  }
  0x4c   : > { %5319 = vmatprep.subr.bf16.mxu1 %v10721_v59  ;;  %v10812_v59 = vld [vmem:[%s12515_s23 + $0x1274] ss:$40 sps:$4 sm:$0xff]  }
  0x4e   : > { %5279 = vmatpush1.bf16.msra.mxu0 %v10723_v60  ;;  %v10807_v60 = vld [vmem:[%s12515_s23 + $0xd70] ss:$40 sps:$4 sm:$0xff]  }
  0x4f   : > { %5320 = vmatpush1.bf16.msra.mxu1 %v10724_v61  ;;  %5280 = vmatprep.subr.bf16.mxu0 %v10725_v62  ;;  %v10810_v61 = vld [vmem:[%s12515_s23 + $0x1270] ss:$40 sps:$4 sm:$0xff]   ;;  %v10815_v62 = vld [vmem:[%s12515_s23 + $0xdc4] ss:$40 sps:$4 sm:$0xff]  }
  0x50   : > { %5321 = vmatprep.subr.bf16.mxu1 %v10727_v63  ;;  %v10818_v63 = vld [vmem:[%s12515_s23 + $0x12c4] ss:$40 sps:$4 sm:$0xff]  }
  0x52   : > { %5281 = vmatpush1.bf16.msra.mxu0 %v10729_v0  ;;  %v10813_v0 = vld [vmem:[%s12515_s23 + $0xdc0] ss:$40 sps:$4 sm:$0xff]  }
  0x53   : > { %5322 = vmatpush1.bf16.msra.mxu1 %v10730_v1  ;;  %5282 = vmatprep.subr.bf16.mxu0 %v10731_v2  ;;  %v10816_v1 = vld [vmem:[%s12515_s23 + $0x12c0] ss:$40 sps:$4 sm:$0xff]   ;;  %v10821_v2 = vld [vmem:[%s12515_s23 + $0xe14] ss:$40 sps:$4 sm:$0xff]  }
  0x54   : > { %5323 = vmatprep.subr.bf16.mxu1 %v10733_v3  ;;  %v10824_v3 = vld [vmem:[%s12515_s23 + $0x1314] ss:$40 sps:$4 sm:$0xff]  }
  0x56   : > { %5283 = vmatpush1.bf16.msra.mxu0 %v10735_v4  ;;  %v10819_v4 = vld [vmem:[%s12515_s23 + $0xe10] ss:$40 sps:$4 sm:$0xff]  }
  0x57   : > { %5324 = vmatpush1.bf16.msra.mxu1 %v10736_v5  ;;  %5334 = vmatprep.subr.bf16.mxu0 %v10743_v6  ;;  %v10822_v5 = vld [vmem:[%s12515_s23 + $0x1310] ss:$40 sps:$4 sm:$0xff]   ;;  %v10827_v6 = vld [vmem:[%s12515_s23 + $0xe64] ss:$40 sps:$4 sm:$0xff]  }
  0x58   : > { %5375 = vmatprep.subr.bf16.mxu1 %v10746_v7  ;;  %v10830_v7 = vld [vmem:[%s12515_s23 + $0x1364] ss:$40 sps:$4 sm:$0xff]  }
  0x59   : > { %5285 = vmatmul.mubr.bf16.vlgmr.msra.gmra.mrb[0].mxu0 %v12592_v8 }
  0x5a   : > { %5326 = vmatmul.mubr.bf16.vlgmr.msra.gmra.mrb[0].mxu1 %v12594_v9  ;;  %5335 = vmatpush1.bf16.msra.mxu0 %v10741_v10  ;;  %v10825_v10 = vld [vmem:[%s12515_s23 + $0xe60] ss:$40 sps:$4 sm:$0xff]  }
  0x5b   : > { %5376 = vmatpush1.bf16.msra.mxu1 %v10744_v11  ;;  %5336 = vmatprep.subr.bf16.mxu0 %v10749_v12  ;;  %v10828_v11 = vld [vmem:[%s12515_s23 + $0x1360] ss:$40 sps:$4 sm:$0xff]   ;;  %v10833_v12 = vld [vmem:[%s12515_s23 + $0xeb4] ss:$40 sps:$4 sm:$0xff]  }
  0x5c   : > { %5377 = vmatprep.subr.bf16.mxu1 %v10752_v13  ;;  %5366 = vmatprep.mubr.bf16.mxu0 %v12632_v38  ;;  %v10836_v13 = vld [vmem:[%s12515_s23 + $0x13b4] ss:$40 sps:$4 sm:$0xff]  }
  0x5d   : > { %5407 = vmatprep.mubr.bf16.mxu1 %v12636_v39 }
  0x5e   : > { %5337 = vmatpush1.bf16.msra.mxu0 %v10747_v14  ;;  %v10831_v14 = vld [vmem:[%s12515_s23 + $0xeb0] ss:$40 sps:$4 sm:$0xff]  }
  0x5f   : > { %5378 = vmatpush1.bf16.msra.mxu1 %v10750_v15  ;;  %5338 = vmatprep.subr.bf16.mxu0 %v10755_v16  ;;  %v10834_v15 = vld [vmem:[%s12515_s23 + $0x13b0] ss:$40 sps:$4 sm:$0xff]   ;;  %v10842_v16 = vld [vmem:[%s12515_s23 + $0x1404] ss:$40 sps:$4 sm:$0xff]  }
  0x60   : > { %5379 = vmatprep.subr.bf16.mxu1 %v10758_v17  ;;  %v10845_v17 = vld [vmem:[%s12515_s23 + $0xc] ss:$40 sps:$4 sm:$0xff]  }
  0x62   : > { %5339 = vmatpush1.bf16.msra.mxu0 %v10753_v18  ;;  %v12680_v18 = vcombine.low %v12623_v34, %v12623_v34  ;;  %v10859_v34 = vld [vmem:[%s12515_s23 + $0x14f0] ss:$40 sps:$4 sm:$0xff]  }
  0x63   : > { %5380 = vmatpush1.bf16.msra.mxu1 %v10756_v19  ;;  %5340 = vmatprep.subr.bf16.mxu0 %v10761_v20  ;;  %v10840_v19 = vld [vmem:[%s12515_s23 + $0x1400] ss:$40 sps:$4 sm:$0xff]  }
  0x64   : > { %5381 = vmatprep.subr.bf16.mxu1 %v10764_v21  ;;  %v10843_v20 = vld [vmem:[%s12515_s23 + $0x8] ss:$40 sps:$4 sm:$0xff]   ;;  %v12686_v21 = vcombine.low %v12626_v35, %v12626_v35  ;;  %v10862_v35 = vld [vmem:[%s12515_s23 + $0xf8] ss:$40 sps:$4 sm:$0xff]  }
  0x66   : > { %5341 = vmatpush1.bf16.msra.mxu0 %v10759_v22  ;;  %v10849_v22 = vld [vmem:[%s12515_s23 + $0x1454] ss:$40 sps:$4 sm:$0xff]  }
  0x67   : > { %5382 = vmatpush1.bf16.msra.mxu1 %v10762_v23  ;;  %5342 = vmatprep.subr.bf16.mxu0 %v10767_v24  ;;  %v10852_v23 = vld [vmem:[%s12515_s23 + $0x5c] ss:$40 sps:$4 sm:$0xff]  }
  0x68   : > { %5383 = vmatprep.subr.bf16.mxu1 %v10770_v25  ;;  %v12691_v24 = vld [vmem:[%s12510_s19 + $0x20] sm:$0xff] }
  0x69   : > { %v12695_v25 = vcombine.high %v12691_v24, %v12691_v24 }
  0x6a   : > { %5343 = vmatpush1.bf16.msra.mxu0 %v10765_v26  ;;  %v10847_v26 = vld [vmem:[%s12515_s23 + $0x1450] ss:$40 sps:$4 sm:$0xff]  }
  0x6b   : > { %5384 = vmatpush1.bf16.msra.mxu1 %v10768_v27  ;;  %5344 = vmatprep.subr.bf16.mxu0 %v10773_v28  ;;  %v10850_v27 = vld [vmem:[%s12515_s23 + $0x58] ss:$40 sps:$4 sm:$0xff]   ;;  %v10855_v28 = vld [vmem:[%s12515_s23 + $0x14a4] ss:$40 sps:$4 sm:$0xff]  }
  0x6c   : > { %5385 = vmatprep.subr.bf16.mxu1 %v10776_v29  ;;  %v10858_v29 = vld [vmem:[%s12515_s23 + $0xac] ss:$40 sps:$4 sm:$0xff]  }
  0x6e   : > { %5345 = vmatpush1.bf16.msra.mxu0 %v10771_v30  ;;  %v10853_v30 = vld [vmem:[%s12515_s23 + $0x14a0] ss:$40 sps:$4 sm:$0xff]  }
  0x6f   : > { %5386 = vmatpush1.bf16.msra.mxu1 %v10774_v31  ;;  %5346 = vmatprep.subr.bf16.mxu0 %v10779_v32  ;;  %v10856_v31 = vld [vmem:[%s12515_s23 + $0xa8] ss:$40 sps:$4 sm:$0xff]   ;;  %v10861_v32 = vld [vmem:[%s12515_s23 + $0x14f4] ss:$40 sps:$4 sm:$0xff]  }
  0x70   : > { %5387 = vmatprep.subr.bf16.mxu1 %v10782_v33  ;;  %v10864_v33 = vld [vmem:[%s12515_s23 + $0xfc] ss:$40 sps:$4 sm:$0xff]  }
  0x72   : > { %5347 = vmatpush1.bf16.msra.mxu0 %v10777_v36  ;;  %v10867_v36 = vld [vmem:[%s12515_s23 + $0x1544] ss:$40 sps:$4 sm:$0xff]  }
  0x73   : > { %5388 = vmatpush1.bf16.msra.mxu1 %v10780_v37  ;;  %5348 = vmatprep.subr.bf16.mxu0 %v10785_v40  ;;  %v10870_v37 = vld [vmem:[%s12515_s23 + $0x14c] ss:$40 sps:$4 sm:$0xff]   ;;  %v10865_v40 = vld [vmem:[%s12515_s23 + $0x1540] ss:$40 sps:$4 sm:$0xff]  }
  0x74   : > { %5389 = vmatprep.subr.bf16.mxu1 %v10788_v41  ;;  %v10868_v41 = vld [vmem:[%s12515_s23 + $0x148] ss:$40 sps:$4 sm:$0xff]  }
  0x76   : > { %5349 = vmatpush1.bf16.msra.mxu0 %v10783_v42  ;;  %v10873_v42 = vld [vmem:[%s12515_s23 + $0x1594] ss:$40 sps:$4 sm:$0xff]  }
  0x77   : > { %5390 = vmatpush1.bf16.msra.mxu1 %v10786_v43  ;;  %5350 = vmatprep.subr.bf16.mxu0 %v10791_v44  ;;  %v10876_v43 = vld [vmem:[%s12515_s23 + $0x19c] ss:$40 sps:$4 sm:$0xff]   ;;  %v10871_v44 = vld [vmem:[%s12515_s23 + $0x1590] ss:$40 sps:$4 sm:$0xff]  }
  0x78   : > { %5391 = vmatprep.subr.bf16.mxu1 %v10794_v45  ;;  %v10874_v45 = vld [vmem:[%s12515_s23 + $0x198] ss:$40 sps:$4 sm:$0xff]  }
  0x7a   : > { %5351 = vmatpush1.bf16.msra.mxu0 %v10789_v46  ;;  %v10879_v46 = vld [vmem:[%s12515_s23 + $0x15e4] ss:$40 sps:$4 sm:$0xff]  }
  0x7b   : > { %5392 = vmatpush1.bf16.msra.mxu1 %v10792_v47  ;;  %5352 = vmatprep.subr.bf16.mxu0 %v10797_v48  ;;  %v10882_v47 = vld [vmem:[%s12515_s23 + $0x1ec] ss:$40 sps:$4 sm:$0xff]   ;;  %v10877_v48 = vld [vmem:[%s12515_s23 + $0x15e0] ss:$40 sps:$4 sm:$0xff]  }
  0x7c   : > { %5393 = vmatprep.subr.bf16.mxu1 %v10800_v50  ;;  %v10880_v50 = vld [vmem:[%s12515_s23 + $0x1e8] ss:$40 sps:$4 sm:$0xff]  }
  0x7e   : > { %5353 = vmatpush1.bf16.msra.mxu0 %v10795_v51  ;;  %v10885_v51 = vld [vmem:[%s12515_s23 + $0x1634] ss:$40 sps:$4 sm:$0xff]  }
  0x7f   : > { %5394 = vmatpush1.bf16.msra.mxu1 %v10798_v52  ;;  %5354 = vmatprep.subr.bf16.mxu0 %v10803_v54  ;;  %v10888_v52 = vld [vmem:[%s12515_s23 + $0x23c] ss:$40 sps:$4 sm:$0xff]   ;;  %v10883_v54 = vld [vmem:[%s12515_s23 + $0x1630] ss:$40 sps:$4 sm:$0xff]  }
  0x80   : > { %5395 = vmatprep.subr.bf16.mxu1 %v10806_v55  ;;  %v10886_v55 = vld [vmem:[%s12515_s23 + $0x238] ss:$40 sps:$4 sm:$0xff]  }
  0x82   : > { %5355 = vmatpush1.bf16.msra.mxu0 %v10801_v56  ;;  %v10891_v56 = vld [vmem:[%s12515_s23 + $0x1684] ss:$40 sps:$4 sm:$0xff]  }
  0x83   : > { %5396 = vmatpush1.bf16.msra.mxu1 %v10804_v57  ;;  %5356 = vmatprep.subr.bf16.mxu0 %v10809_v58  ;;  %v10894_v57 = vld [vmem:[%s12515_s23 + $0x28c] ss:$40 sps:$4 sm:$0xff]   ;;  %v10889_v58 = vld [vmem:[%s12515_s23 + $0x1680] ss:$40 sps:$4 sm:$0xff]  }
  0x84   : > { %5397 = vmatprep.subr.bf16.mxu1 %v10812_v59  ;;  %v10892_v59 = vld [vmem:[%s12515_s23 + $0x288] ss:$40 sps:$4 sm:$0xff]  }
  0x86   : > { %5357 = vmatpush1.bf16.msra.mxu0 %v10807_v60  ;;  %v10897_v60 = vld [vmem:[%s12515_s23 + $0x16d4] ss:$40 sps:$4 sm:$0xff]  }
  0x87   : > { %5398 = vmatpush1.bf16.msra.mxu1 %v10810_v61  ;;  %5358 = vmatprep.subr.bf16.mxu0 %v10815_v62  ;;  %v10900_v61 = vld [vmem:[%s12515_s23 + $0x2dc] ss:$40 sps:$4 sm:$0xff]   ;;  %v10895_v62 = vld [vmem:[%s12515_s23 + $0x16d0] ss:$40 sps:$4 sm:$0xff]  }
  0x88   : > { %5399 = vmatprep.subr.bf16.mxu1 %v10818_v63  ;;  %v10898_v63 = vld [vmem:[%s12515_s23 + $0x2d8] ss:$40 sps:$4 sm:$0xff]  }
  0x8a   : > { %5359 = vmatpush1.bf16.msra.mxu0 %v10813_v0  ;;  %v10903_v0 = vld [vmem:[%s12515_s23 + $0x1724] ss:$40 sps:$4 sm:$0xff]  }
  0x8b   : > { %5400 = vmatpush1.bf16.msra.mxu1 %v10816_v1  ;;  %5360 = vmatprep.subr.bf16.mxu0 %v10821_v2  ;;  %v10906_v1 = vld [vmem:[%s12515_s23 + $0x32c] ss:$40 sps:$4 sm:$0xff]   ;;  %v10901_v2 = vld [vmem:[%s12515_s23 + $0x1720] ss:$40 sps:$4 sm:$0xff]  }
  0x8c   : > { %5401 = vmatprep.subr.bf16.mxu1 %v10824_v3  ;;  %v10904_v3 = vld [vmem:[%s12515_s23 + $0x328] ss:$40 sps:$4 sm:$0xff]  }
  0x8e   : > { %5361 = vmatpush1.bf16.msra.mxu0 %v10819_v4  ;;  %v10909_v4 = vld [vmem:[%s12515_s23 + $0x1774] ss:$40 sps:$4 sm:$0xff]  }
  0x8f   : > { %5402 = vmatpush1.bf16.msra.mxu1 %v10822_v5  ;;  %5362 = vmatprep.subr.bf16.mxu0 %v10827_v6  ;;  %v10912_v5 = vld [vmem:[%s12515_s23 + $0x37c] ss:$40 sps:$4 sm:$0xff]   ;;  %v10907_v6 = vld [vmem:[%s12515_s23 + $0x1770] ss:$40 sps:$4 sm:$0xff]  }
  0x90   : > { %5403 = vmatprep.subr.bf16.mxu1 %v10830_v7  ;;  %v10910_v7 = vld [vmem:[%s12515_s23 + $0x378] ss:$40 sps:$4 sm:$0xff]  }
  0x92   : > { %5363 = vmatpush1.bf16.msra.mxu0 %v10825_v10  ;;  %v10915_v10 = vld [vmem:[%s12515_s23 + $0x17c4] ss:$40 sps:$4 sm:$0xff]  }
  0x93   : > { %5404 = vmatpush1.bf16.msra.mxu1 %v10828_v11  ;;  %5364 = vmatprep.subr.bf16.mxu0 %v10833_v12  ;;  %v10918_v11 = vld [vmem:[%s12515_s23 + $0x3cc] ss:$40 sps:$4 sm:$0xff]   ;;  %v10913_v12 = vld [vmem:[%s12515_s23 + $0x17c0] ss:$40 sps:$4 sm:$0xff]  }
  0x94   : > { %5405 = vmatprep.subr.bf16.mxu1 %v10836_v13  ;;  %v10916_v13 = vld [vmem:[%s12515_s23 + $0x3c8] ss:$40 sps:$4 sm:$0xff]  }
  0x96   : > { %5365 = vmatpush1.bf16.msra.mxu0 %v10831_v14  ;;  %v10921_v14 = vld [vmem:[%s12515_s23 + $0x1814] ss:$40 sps:$4 sm:$0xff]  }
  0x97   : > { %5406 = vmatpush1.bf16.msra.mxu1 %v10834_v15  ;;  %5416 = vmatprep.subr.bf16.mxu0 %v10842_v16  ;;  %v10924_v15 = vld [vmem:[%s12515_s23 + $0x41c] ss:$40 sps:$4 sm:$0xff]   ;;  %v10919_v16 = vld [vmem:[%s12515_s23 + $0x1810] ss:$40 sps:$4 sm:$0xff]  }
  0x98   : > { %5457 = vmatprep.subr.bf16.mxu1 %v10845_v17  ;;  %v10922_v17 = vld [vmem:[%s12515_s23 + $0x418] ss:$40 sps:$4 sm:$0xff]  }
  0x99   : > { %5367 = vmatmul.mubr.bf16.vlgmr.msra.gmra.mrb[4].mxu0 %v12680_v18 }
  0x9a   : > { %5408 = vmatmul.mubr.bf16.vlgmr.msra.gmra.mrb[4].mxu1 %v12686_v21  ;;  %5417 = vmatpush1.bf16.msra.mxu0 %v10840_v19  ;;  %v10927_v19 = vld [vmem:[%s12515_s23 + $0x1864] ss:$40 sps:$4 sm:$0xff]  }
  0x9b   : > { %5458 = vmatpush1.bf16.msra.mxu1 %v10843_v20  ;;  %5418 = vmatprep.subr.bf16.mxu0 %v10849_v22  ;;  %v10930_v20 = vld [vmem:[%s12515_s23 + $0x46c] ss:$40 sps:$4 sm:$0xff]   ;;  %v10925_v22 = vld [vmem:[%s12515_s23 + $0x1860] ss:$40 sps:$4 sm:$0xff]  }
  0x9c   : > { %5459 = vmatprep.subr.bf16.mxu1 %v10852_v23  ;;  %5448 = vmatprep.mubr.bf16.mxu0 %v12695_v25  ;;  %v10928_v23 = vld [vmem:[%s12515_s23 + $0x468] ss:$40 sps:$4 sm:$0xff]  }
  0x9d   : > { %5489 = vmatprep.mubr.bf16.mxu1 %v12565_v49 }
  0x9e   : > { %5419 = vmatpush1.bf16.msra.mxu0 %v10847_v26  ;;  %v10933_v26 = vld [vmem:[%s12515_s23 + $0x18b4] ss:$40 sps:$4 sm:$0xff]  }
  0x9f   : > { %5460 = vmatpush1.bf16.msra.mxu1 %v10850_v27  ;;  %5420 = vmatprep.subr.bf16.mxu0 %v10855_v28  ;;  %v10936_v27 = vld [vmem:[%s12515_s23 + $0x4bc] ss:$40 sps:$4 sm:$0xff]   ;;  %v10931_v28 = vld [vmem:[%s12515_s23 + $0x18b0] ss:$40 sps:$4 sm:$0xff]  }
  0xa0   : > { %5461 = vmatprep.subr.bf16.mxu1 %v10858_v29  ;;  %v10934_v29 = vld [vmem:[%s12515_s23 + $0x4b8] ss:$40 sps:$4 sm:$0xff]  }
  0xa2   : > { %5421 = vmatpush1.bf16.msra.mxu0 %v10853_v30  ;;  %v10941_v30 = vld [vmem:[%s12515_s23 + $0x50c] ss:$40 sps:$4 sm:$0xff]  }
  0xa3   : > { %5462 = vmatpush1.bf16.msra.mxu1 %v10856_v31  ;;  %5422 = vmatprep.subr.bf16.mxu0 %v10861_v32  ;;  %v10944_v31 = vld [vmem:[%s12515_s23 + $0xa0c] ss:$40 sps:$4 sm:$0xff]   ;;  %v12763_v32 = vcombine.low %v12691_v24, %v12691_v24  ;;  %v10948_v24 = vld [vmem:[%s12515_s23 + $0xa58] ss:$40 sps:$4 sm:$0xff]  }
  0xa4   : > { %5463 = vmatprep.subr.bf16.mxu1 %v10864_v33  ;;  %v10939_v33 = vld [vmem:[%s12515_s23 + $0x508] ss:$40 sps:$4 sm:$0xff]  }
  0xa6   : > { %5423 = vmatpush1.bf16.msra.mxu0 %v10859_v34  ;;  %v10942_v34 = vld [vmem:[%s12515_s23 + $0xa08] ss:$40 sps:$4 sm:$0xff]  }
  0xa7   : > { %5464 = vmatpush1.bf16.msra.mxu1 %v10862_v35  ;;  %5424 = vmatprep.subr.bf16.mxu0 %v10867_v36  ;;  %v10947_v35 = vld [vmem:[%s12515_s23 + $0x55c] ss:$40 sps:$4 sm:$0xff]  }
  0xa8   : > { %5465 = vmatprep.subr.bf16.mxu1 %v10870_v37  ;;  %v10950_v36 = vld [vmem:[%s12515_s23 + $0xa5c] ss:$40 sps:$4 sm:$0xff]   ;;  %v10945_v37 = vld [vmem:[%s12515_s23 + $0x558] ss:$40 sps:$4 sm:$0xff]  }
  0xaa   : > { %5425 = vmatpush1.bf16.msra.mxu0 %v10865_v40  ;;  %v10953_v40 = vld [vmem:[%s12515_s23 + $0x5ac] ss:$40 sps:$4 sm:$0xff]  }
  0xab   : > { %5466 = vmatpush1.bf16.msra.mxu1 %v10868_v41  ;;  %5426 = vmatprep.subr.bf16.mxu0 %v10873_v42  ;;  %v10956_v41 = vld [vmem:[%s12515_s23 + $0xaac] ss:$40 sps:$4 sm:$0xff]   ;;  %v10951_v42 = vld [vmem:[%s12515_s23 + $0x5a8] ss:$40 sps:$4 sm:$0xff]  }
  0xac   : > { %5467 = vmatprep.subr.bf16.mxu1 %v10876_v43  ;;  %v10954_v43 = vld [vmem:[%s12515_s23 + $0xaa8] ss:$40 sps:$4 sm:$0xff]  }
  0xae   : > { %5427 = vmatpush1.bf16.msra.mxu0 %v10871_v44  ;;  %v10959_v44 = vld [vmem:[%s12515_s23 + $0x5fc] ss:$40 sps:$4 sm:$0xff]  }
  0xaf   : > { %5468 = vmatpush1.bf16.msra.mxu1 %v10874_v45  ;;  %5428 = vmatprep.subr.bf16.mxu0 %v10879_v46  ;;  %v10962_v45 = vld [vmem:[%s12515_s23 + $0xafc] ss:$40 sps:$4 sm:$0xff]   ;;  %v10957_v46 = vld [vmem:[%s12515_s23 + $0x5f8] ss:$40 sps:$4 sm:$0xff]  }
  0xb0   : > { %5469 = vmatprep.subr.bf16.mxu1 %v10882_v47  ;;  %v10960_v47 = vld [vmem:[%s12515_s23 + $0xaf8] ss:$40 sps:$4 sm:$0xff]  }
  0xb2   : > { %5429 = vmatpush1.bf16.msra.mxu0 %v10877_v48  ;;  %v10965_v48 = vld [vmem:[%s12515_s23 + $0x64c] ss:$40 sps:$4 sm:$0xff]  }
  0xb3   : > { %5470 = vmatpush1.bf16.msra.mxu1 %v10880_v50  ;;  %5430 = vmatprep.subr.bf16.mxu0 %v10885_v51  ;;  %v10968_v50 = vld [vmem:[%s12515_s23 + $0xb4c] ss:$40 sps:$4 sm:$0xff]   ;;  %v10963_v51 = vld [vmem:[%s12515_s23 + $0x648] ss:$40 sps:$4 sm:$0xff]  }
  0xb4   : > { %5471 = vmatprep.subr.bf16.mxu1 %v10888_v52  ;;  %v10966_v52 = vld [vmem:[%s12515_s23 + $0xb48] ss:$40 sps:$4 sm:$0xff]  }
  0xb6   : > { %5431 = vmatpush1.bf16.msra.mxu0 %v10883_v54  ;;  %v10971_v54 = vld [vmem:[%s12515_s23 + $0x69c] ss:$40 sps:$4 sm:$0xff]  }
  0xb7   : > { %5472 = vmatpush1.bf16.msra.mxu1 %v10886_v55  ;;  %5432 = vmatprep.subr.bf16.mxu0 %v10891_v56  ;;  %v10974_v55 = vld [vmem:[%s12515_s23 + $0xb9c] ss:$40 sps:$4 sm:$0xff]   ;;  %v10969_v56 = vld [vmem:[%s12515_s23 + $0x698] ss:$40 sps:$4 sm:$0xff]  }
  0xb8   : > { %5473 = vmatprep.subr.bf16.mxu1 %v10894_v57  ;;  %v10972_v57 = vld [vmem:[%s12515_s23 + $0xb98] ss:$40 sps:$4 sm:$0xff]  }
  0xba   : > { %5433 = vmatpush1.bf16.msra.mxu0 %v10889_v58  ;;  %v10977_v58 = vld [vmem:[%s12515_s23 + $0x6ec] ss:$40 sps:$4 sm:$0xff]  }
  0xbb   : > { %5474 = vmatpush1.bf16.msra.mxu1 %v10892_v59  ;;  %5434 = vmatprep.subr.bf16.mxu0 %v10897_v60  ;;  %v10980_v59 = vld [vmem:[%s12515_s23 + $0xbec] ss:$40 sps:$4 sm:$0xff]   ;;  %v10975_v60 = vld [vmem:[%s12515_s23 + $0x6e8] ss:$40 sps:$4 sm:$0xff]  }
  0xbc   : > { %5475 = vmatprep.subr.bf16.mxu1 %v10900_v61  ;;  %v10978_v61 = vld [vmem:[%s12515_s23 + $0xbe8] ss:$40 sps:$4 sm:$0xff]  }
  0xbe   : > { %5435 = vmatpush1.bf16.msra.mxu0 %v10895_v62  ;;  %v10983_v62 = vld [vmem:[%s12515_s23 + $0x73c] ss:$40 sps:$4 sm:$0xff]  }
  0xbf   : > { %5476 = vmatpush1.bf16.msra.mxu1 %v10898_v63  ;;  %5436 = vmatprep.subr.bf16.mxu0 %v10903_v0  ;;  %v10986_v63 = vld [vmem:[%s12515_s23 + $0xc3c] ss:$40 sps:$4 sm:$0xff]   ;;  %v10981_v0 = vld [vmem:[%s12515_s23 + $0x738] ss:$40 sps:$4 sm:$0xff]  }
  0xc0   : > { %5477 = vmatprep.subr.bf16.mxu1 %v10906_v1  ;;  %v10984_v1 = vld [vmem:[%s12515_s23 + $0xc38] ss:$40 sps:$4 sm:$0xff]  }
  0xc2   : > { %5437 = vmatpush1.bf16.msra.mxu0 %v10901_v2  ;;  %v10989_v2 = vld [vmem:[%s12515_s23 + $0x78c] ss:$40 sps:$4 sm:$0xff]  }
  0xc3   : > { %5478 = vmatpush1.bf16.msra.mxu1 %v10904_v3  ;;  %5438 = vmatprep.subr.bf16.mxu0 %v10909_v4  ;;  %v10992_v3 = vld [vmem:[%s12515_s23 + $0xc8c] ss:$40 sps:$4 sm:$0xff]   ;;  %v10987_v4 = vld [vmem:[%s12515_s23 + $0x788] ss:$40 sps:$4 sm:$0xff]  }
  0xc4   : > { %5479 = vmatprep.subr.bf16.mxu1 %v10912_v5  ;;  %v10990_v5 = vld [vmem:[%s12515_s23 + $0xc88] ss:$40 sps:$4 sm:$0xff]  }
  0xc6   : > { %5439 = vmatpush1.bf16.msra.mxu0 %v10907_v6  ;;  %v10995_v6 = vld [vmem:[%s12515_s23 + $0x7dc] ss:$40 sps:$4 sm:$0xff]  }
  0xc7   : > { %5480 = vmatpush1.bf16.msra.mxu1 %v10910_v7  ;;  %5440 = vmatprep.subr.bf16.mxu0 %v10915_v10  ;;  %v10998_v7 = vld [vmem:[%s12515_s23 + $0xcdc] ss:$40 sps:$4 sm:$0xff]   ;;  %v10993_v10 = vld [vmem:[%s12515_s23 + $0x7d8] ss:$40 sps:$4 sm:$0xff]  }
  0xc8   : > { %5481 = vmatprep.subr.bf16.mxu1 %v10918_v11  ;;  %v10996_v11 = vld [vmem:[%s12515_s23 + $0xcd8] ss:$40 sps:$4 sm:$0xff]  }
  0xca   : > { %5441 = vmatpush1.bf16.msra.mxu0 %v10913_v12  ;;  %v11001_v12 = vld [vmem:[%s12515_s23 + $0x82c] ss:$40 sps:$4 sm:$0xff]  }
  0xcb   : > { %5482 = vmatpush1.bf16.msra.mxu1 %v10916_v13  ;;  %5442 = vmatprep.subr.bf16.mxu0 %v10921_v14  ;;  %v11004_v13 = vld [vmem:[%s12515_s23 + $0xd2c] ss:$40 sps:$4 sm:$0xff]   ;;  %v10999_v14 = vld [vmem:[%s12515_s23 + $0x828] ss:$40 sps:$4 sm:$0xff]  }
  0xcc   : > { %5483 = vmatprep.subr.bf16.mxu1 %v10924_v15  ;;  %v11002_v15 = vld [vmem:[%s12515_s23 + $0xd28] ss:$40 sps:$4 sm:$0xff]  }
  0xce   : > { %5443 = vmatpush1.bf16.msra.mxu0 %v10919_v16  ;;  %v11007_v16 = vld [vmem:[%s12515_s23 + $0x87c] ss:$40 sps:$4 sm:$0xff]  }
  0xcf   : > { %5484 = vmatpush1.bf16.msra.mxu1 %v10922_v17  ;;  %5444 = vmatprep.subr.bf16.mxu0 %v10927_v19  ;;  %v11010_v17 = vld [vmem:[%s12515_s23 + $0xd7c] ss:$40 sps:$4 sm:$0xff]   ;;  %v11005_v19 = vld [vmem:[%s12515_s23 + $0x878] ss:$40 sps:$4 sm:$0xff]  }
  0xd0   : > { %5485 = vmatprep.subr.bf16.mxu1 %v10930_v20  ;;  %v11008_v20 = vld [vmem:[%s12515_s23 + $0xd78] ss:$40 sps:$4 sm:$0xff]  }
  0xd2   : > { %5445 = vmatpush1.bf16.msra.mxu0 %v10925_v22  ;;  %v11013_v22 = vld [vmem:[%s12515_s23 + $0x8cc] ss:$40 sps:$4 sm:$0xff]  }
  0xd3   : > { %5486 = vmatpush1.bf16.msra.mxu1 %v10928_v23  ;;  %5446 = vmatprep.subr.bf16.mxu0 %v10933_v26  ;;  %v11016_v23 = vld [vmem:[%s12515_s23 + $0xdcc] ss:$40 sps:$4 sm:$0xff]   ;;  %v11011_v26 = vld [vmem:[%s12515_s23 + $0x8c8] ss:$40 sps:$4 sm:$0xff]  }
  0xd4   : > { %5487 = vmatprep.subr.bf16.mxu1 %v10936_v27  ;;  %v11014_v27 = vld [vmem:[%s12515_s23 + $0xdc8] ss:$40 sps:$4 sm:$0xff]  }
  0xd6   : > { %5447 = vmatpush1.bf16.msra.mxu0 %v10931_v28  ;;  %v11019_v28 = vld [vmem:[%s12515_s23 + $0x91c] ss:$40 sps:$4 sm:$0xff]  }
  0xd7   : > { %5488 = vmatpush1.bf16.msra.mxu1 %v10934_v29  ;;  %5498 = vmatprep.subr.bf16.mxu0 %v10941_v30  ;;  %v11022_v29 = vld [vmem:[%s12515_s23 + $0xe1c] ss:$40 sps:$4 sm:$0xff]   ;;  %v11017_v30 = vld [vmem:[%s12515_s23 + $0x918] ss:$40 sps:$4 sm:$0xff]  }
  0xd8   : > { %5539 = vmatprep.subr.bf16.mxu1 %v10944_v31  ;;  %v11020_v31 = vld [vmem:[%s12515_s23 + $0xe18] ss:$40 sps:$4 sm:$0xff]  }
  0xd9   : > { %5449 = vmatmul.mubr.bf16.vlgmr.msra.gmra.mrb[8].mxu0 %v12763_v32 }
  0xda   : > { %5490 = vmatmul.mubr.bf16.vlgmr.msra.gmra.mrb[8].mxu1 %v12592_v8  ;;  %5499 = vmatpush1.bf16.msra.mxu0 %v10939_v33  ;;  %v11025_v33 = vld [vmem:[%s12515_s23 + $0x96c] ss:$40 sps:$4 sm:$0xff]  }
  0xdb   : > { %5540 = vmatpush1.bf16.msra.mxu1 %v10942_v34  ;;  %5500 = vmatprep.subr.bf16.mxu0 %v10947_v35  ;;  %v11028_v34 = vld [vmem:[%s12515_s23 + $0xe6c] ss:$40 sps:$4 sm:$0xff]   ;;  %v11023_v35 = vld [vmem:[%s12515_s23 + $0x968] ss:$40 sps:$4 sm:$0xff]  }
  0xdc   : > { %5541 = vmatprep.subr.bf16.mxu1 %v10950_v36  ;;  %5530 = vmatprep.mubr.bf16.mxu0 %v12570_v53  ;;  %v11026_v36 = vld [vmem:[%s12515_s23 + $0xe68] ss:$40 sps:$4 sm:$0xff]  }
  0xdd   : > { %5571 = vmatprep.mubr.bf16.mxu1 %v12632_v38 }
  0xde   : > { %5501 = vmatpush1.bf16.msra.mxu0 %v10945_v37  ;;  %v11031_v37 = vld [vmem:[%s12515_s23 + $0x9bc] ss:$40 sps:$4 sm:$0xff]  }
  0xdf   : > { %5542 = vmatpush1.bf16.msra.mxu1 %v10948_v24  ;;  %5502 = vmatprep.subr.bf16.mxu0 %v10953_v40  ;;  %v11034_v24 = vld [vmem:[%s12515_s23 + $0xebc] ss:$40 sps:$4 sm:$0xff]   ;;  %v11029_v40 = vld [vmem:[%s12515_s23 + $0x9b8] ss:$40 sps:$4 sm:$0xff]  }
  0xe0   : > { %5543 = vmatprep.subr.bf16.mxu1 %v10956_v41  ;;  %v11032_v41 = vld [vmem:[%s12515_s23 + $0xeb8] ss:$40 sps:$4 sm:$0xff]  }
  0xe2   : > { %5503 = vmatpush1.bf16.msra.mxu0 %v10951_v42  ;;  %v11037_v42 = vld [vmem:[%s12515_s23 + $0xf0c] ss:$40 sps:$4 sm:$0xff]  }
  0xe3   : > { %5544 = vmatpush1.bf16.msra.mxu1 %v10954_v43  ;;  %5504 = vmatprep.subr.bf16.mxu0 %v10959_v44  ;;  %v11040_v43 = vld [vmem:[%s12515_s23 + $0x140c] ss:$40 sps:$4 sm:$0xff]   ;;  %v11035_v44 = vld [vmem:[%s12515_s23 + $0xf08] ss:$40 sps:$4 sm:$0xff]  }
  0xe4   : > { %5545 = vmatprep.subr.bf16.mxu1 %v10962_v45  ;;  %v11038_v45 = vld [vmem:[%s12515_s23 + $0x1408] ss:$40 sps:$4 sm:$0xff]  }
  0xe6   : > { %5505 = vmatpush1.bf16.msra.mxu0 %v10957_v46  ;;  %v11043_v46 = vld [vmem:[%s12515_s23 + $0xf5c] ss:$40 sps:$4 sm:$0xff]  }
  0xe7   : > { %5546 = vmatpush1.bf16.msra.mxu1 %v10960_v47  ;;  %5506 = vmatprep.subr.bf16.mxu0 %v10965_v48  ;;  %v11046_v47 = vld [vmem:[%s12515_s23 + $0x145c] ss:$40 sps:$4 sm:$0xff]   ;;  %v11041_v48 = vld [vmem:[%s12515_s23 + $0xf58] ss:$40 sps:$4 sm:$0xff]  }
  0xe8   : > { %5547 = vmatprep.subr.bf16.mxu1 %v10968_v50  ;;  %v11044_v50 = vld [vmem:[%s12515_s23 + $0x1458] ss:$40 sps:$4 sm:$0xff]  }
  0xea   : > { %5507 = vmatpush1.bf16.msra.mxu0 %v10963_v51  ;;  %v11049_v51 = vld [vmem:[%s12515_s23 + $0xfac] ss:$40 sps:$4 sm:$0xff]  }
  0xeb   : > { %5548 = vmatpush1.bf16.msra.mxu1 %v10966_v52  ;;  %5508 = vmatprep.subr.bf16.mxu0 %v10971_v54  ;;  %v11052_v52 = vld [vmem:[%s12515_s23 + $0x14ac] ss:$40 sps:$4 sm:$0xff]   ;;  %v11047_v54 = vld [vmem:[%s12515_s23 + $0xfa8] ss:$40 sps:$4 sm:$0xff]  }
  0xec   : > { %5549 = vmatprep.subr.bf16.mxu1 %v10974_v55  ;;  %v11050_v55 = vld [vmem:[%s12515_s23 + $0x14a8] ss:$40 sps:$4 sm:$0xff]  }
  0xee   : > { %5509 = vmatpush1.bf16.msra.mxu0 %v10969_v56  ;;  %v11055_v56 = vld [vmem:[%s12515_s23 + $0xffc] ss:$40 sps:$4 sm:$0xff]  }
  0xef   : > { %5550 = vmatpush1.bf16.msra.mxu1 %v10972_v57  ;;  %5510 = vmatprep.subr.bf16.mxu0 %v10977_v58  ;;  %v11058_v57 = vld [vmem:[%s12515_s23 + $0x14fc] ss:$40 sps:$4 sm:$0xff]   ;;  %v11053_v58 = vld [vmem:[%s12515_s23 + $0xff8] ss:$40 sps:$4 sm:$0xff]  }
  0xf0   : > { %5551 = vmatprep.subr.bf16.mxu1 %v10980_v59  ;;  %v11056_v59 = vld [vmem:[%s12515_s23 + $0x14f8] ss:$40 sps:$4 sm:$0xff]  }
  0xf2   : > { %5511 = vmatpush1.bf16.msra.mxu0 %v10975_v60  ;;  %v11061_v60 = vld [vmem:[%s12515_s23 + $0x104c] ss:$40 sps:$4 sm:$0xff]  }
  0xf3   : > { %5552 = vmatpush1.bf16.msra.mxu1 %v10978_v61  ;;  %5512 = vmatprep.subr.bf16.mxu0 %v10983_v62  ;;  %v11064_v61 = vld [vmem:[%s12515_s23 + $0x154c] ss:$40 sps:$4 sm:$0xff]   ;;  %v11059_v62 = vld [vmem:[%s12515_s23 + $0x1048] ss:$40 sps:$4 sm:$0xff]  }
  0xf4   : > { %5553 = vmatprep.subr.bf16.mxu1 %v10986_v63  ;;  %v11062_v63 = vld [vmem:[%s12515_s23 + $0x1548] ss:$40 sps:$4 sm:$0xff]  }
  0xf6   : > { %5513 = vmatpush1.bf16.msra.mxu0 %v10981_v0  ;;  %v11067_v0 = vld [vmem:[%s12515_s23 + $0x109c] ss:$40 sps:$4 sm:$0xff]  }
  0xf7   : > { %5554 = vmatpush1.bf16.msra.mxu1 %v10984_v1  ;;  %5514 = vmatprep.subr.bf16.mxu0 %v10989_v2  ;;  %v11070_v1 = vld [vmem:[%s12515_s23 + $0x159c] ss:$40 sps:$4 sm:$0xff]   ;;  %v11065_v2 = vld [vmem:[%s12515_s23 + $0x1098] ss:$40 sps:$4 sm:$0xff]  }
  0xf8   : > { %5555 = vmatprep.subr.bf16.mxu1 %v10992_v3  ;;  %v11068_v3 = vld [vmem:[%s12515_s23 + $0x1598] ss:$40 sps:$4 sm:$0xff]  }
  0xfa   : > { %5515 = vmatpush1.bf16.msra.mxu0 %v10987_v4  ;;  %v11073_v4 = vld [vmem:[%s12515_s23 + $0x10ec] ss:$40 sps:$4 sm:$0xff]  }
  0xfb   : > { %5556 = vmatpush1.bf16.msra.mxu1 %v10990_v5  ;;  %5516 = vmatprep.subr.bf16.mxu0 %v10995_v6  ;;  %v11076_v5 = vld [vmem:[%s12515_s23 + $0x15ec] ss:$40 sps:$4 sm:$0xff]  }
  0xfc   : > { %5557 = vmatprep.subr.bf16.mxu1 %v10998_v7 }
  0xfe   : > { %5517 = vmatpush1.bf16.msra.mxu0 %v10993_v10  ;;  %v11071_v10 = vld [vmem:[%s12515_s23 + $0x10e8] ss:$40 sps:$4 sm:$0xff]  }
  0xff   : > { %5558 = vmatpush1.bf16.msra.mxu1 %v10996_v11  ;;  %5518 = vmatprep.subr.bf16.mxu0 %v11001_v12  ;;  %v11074_v11 = vld [vmem:[%s12515_s23 + $0x15e8] ss:$40 sps:$4 sm:$0xff]  }
 0x100   : > { %5559 = vmatprep.subr.bf16.mxu1 %v11004_v13 }
 0x102   : > { %5519 = vmatpush1.bf16.msra.mxu0 %v10999_v14 }
 0x103   : > { %5560 = vmatpush1.bf16.msra.mxu1 %v11002_v15  ;;  %5520 = vmatprep.subr.bf16.mxu0 %v11007_v16  ;;  %v11079_v15 = vld [vmem:[%s12515_s23 + $0x113c] ss:$40 sps:$4 sm:$0xff]  }
 0x104   : > { %5561 = vmatprep.subr.bf16.mxu1 %v11010_v17 }
 0x106   : > { %5521 = vmatpush1.bf16.msra.mxu0 %v11005_v19 }
 0x107   : > { %5562 = vmatpush1.bf16.msra.mxu1 %v11008_v20  ;;  %5522 = vmatprep.subr.bf16.mxu0 %v11013_v22  ;;  %v11082_v22 = vld [vmem:[%s12515_s23 + $0x163c] ss:$40 sps:$4 sm:$0xff]  }
 0x108   : > { %5563 = vmatprep.subr.bf16.mxu1 %v11016_v23 }
 0x10a   : > { %5523 = vmatpush1.bf16.msra.mxu0 %v11011_v26  ;;  %v11077_v26 = vld [vmem:[%s12515_s23 + $0x1138] ss:$40 sps:$4 sm:$0xff]  }
 0x10b   : > { %5564 = vmatpush1.bf16.msra.mxu1 %v11014_v27  ;;  %5524 = vmatprep.subr.bf16.mxu0 %v11019_v28  ;;  %v11080_v27 = vld [vmem:[%s12515_s23 + $0x1638] ss:$40 sps:$4 sm:$0xff]   ;;  %v11085_v28 = vld [vmem:[%s12515_s23 + $0x118c] ss:$40 sps:$4 sm:$0xff]  }
 0x10c   : > { %5565 = vmatprep.subr.bf16.mxu1 %v11022_v29  ;;  %v11088_v29 = vld [vmem:[%s12515_s23 + $0x168c] ss:$40 sps:$4 sm:$0xff]  }
 0x10e   : > { %5525 = vmatpush1.bf16.msra.mxu0 %v11017_v30  ;;  %v11083_v30 = vld [vmem:[%s12515_s23 + $0x1188] ss:$40 sps:$4 sm:$0xff]  }
 0x10f   : > { %5566 = vmatpush1.bf16.msra.mxu1 %v11020_v31  ;;  %5526 = vmatprep.subr.bf16.mxu0 %v11025_v33  ;;  %v11086_v31 = vld [vmem:[%s12515_s23 + $0x1688] ss:$40 sps:$4 sm:$0xff]   ;;  %v11091_v33 = vld [vmem:[%s12515_s23 + $0x11dc] ss:$40 sps:$4 sm:$0xff]  }
 0x110   : > { %5567 = vmatprep.subr.bf16.mxu1 %v11028_v34  ;;  %v11094_v34 = vld [vmem:[%s12515_s23 + $0x16dc] ss:$40 sps:$4 sm:$0xff]  }
 0x112   : > { %5527 = vmatpush1.bf16.msra.mxu0 %v11023_v35  ;;  %v11089_v35 = vld [vmem:[%s12515_s23 + $0x11d8] ss:$40 sps:$4 sm:$0xff]  }
 0x113   : > { %5568 = vmatpush1.bf16.msra.mxu1 %v11026_v36  ;;  %5528 = vmatprep.subr.bf16.mxu0 %v11031_v37  ;;  %v11092_v36 = vld [vmem:[%s12515_s23 + $0x16d8] ss:$40 sps:$4 sm:$0xff]   ;;  %v11097_v37 = vld [vmem:[%s12515_s23 + $0x122c] ss:$40 sps:$4 sm:$0xff]  }
 0x114   : > { %5569 = vmatprep.subr.bf16.mxu1 %v11034_v24  ;;  %v11100_v24 = vld [vmem:[%s12515_s23 + $0x172c] ss:$40 sps:$4 sm:$0xff]  }
 0x116   : > { %5529 = vmatpush1.bf16.msra.mxu0 %v11029_v40  ;;  %v11095_v40 = vld [vmem:[%s12515_s23 + $0x1228] ss:$40 sps:$4 sm:$0xff]  }
 0x117   : > { %5570 = vmatpush1.bf16.msra.mxu1 %v11032_v41  ;;  %5580 = vmatprep.subr.bf16.mxu0 %v11037_v42  ;;  %v11098_v41 = vld [vmem:[%s12515_s23 + $0x1728] ss:$40 sps:$4 sm:$0xff]   ;;  %v11103_v42 = vld [vmem:[%s12515_s23 + $0x127c] ss:$40 sps:$4 sm:$0xff]  }
 0x118   : > { %5621 = vmatprep.subr.bf16.mxu1 %v11040_v43  ;;  %v11106_v43 = vld [vmem:[%s12515_s23 + $0x177c] ss:$40 sps:$4 sm:$0xff]  }
 0x119   : > { %5531 = vmatmul.mubr.bf16.vlgmr.msra.gmra.mrb[12].mxu0 %v12594_v9 }
 0x11a   : > { %5572 = vmatmul.mubr.bf16.vlgmr.msra.gmra.mrb[12].mxu1 %v12680_v18  ;;  %5581 = vmatpush1.bf16.msra.mxu0 %v11035_v44  ;;  %v11101_v44 = vld [vmem:[%s12515_s23 + $0x1278] ss:$40 sps:$4 sm:$0xff]  }
 0x11b   : > { %5622 = vmatpush1.bf16.msra.mxu1 %v11038_v45  ;;  %5582 = vmatprep.subr.bf16.mxu0 %v11043_v46  ;;  %v11104_v45 = vld [vmem:[%s12515_s23 + $0x1778] ss:$40 sps:$4 sm:$0xff]   ;;  %v11109_v46 = vld [vmem:[%s12515_s23 + $0x12cc] ss:$40 sps:$4 sm:$0xff]  }
 0x11c   : > { %5623 = vmatprep.subr.bf16.mxu1 %v11046_v47  ;;  %5612 = vmatprep.mubr.bf16.mxu0 %v12636_v39  ;;  %v11112_v47 = vld [vmem:[%s12515_s23 + $0x17cc] ss:$40 sps:$4 sm:$0xff]  }
 0x11d   : > { %5653 = vmatprep.mubr.bf16.mxu1 %v12695_v25 }
 0x11e   : > { %5583 = vmatpush1.bf16.msra.mxu0 %v11041_v48  ;;  %v11107_v48 = vld [vmem:[%s12515_s23 + $0x12c8] ss:$40 sps:$4 sm:$0xff]  }
 0x11f   : > { %5624 = vmatpush1.bf16.msra.mxu1 %v11044_v50  ;;  %5584 = vmatprep.subr.bf16.mxu0 %v11049_v51  ;;  %v11110_v50 = vld [vmem:[%s12515_s23 + $0x17c8] ss:$40 sps:$4 sm:$0xff]   ;;  %v11115_v51 = vld [vmem:[%s12515_s23 + $0x131c] ss:$40 sps:$4 sm:$0xff]  }
 0x120   : > { %5625 = vmatprep.subr.bf16.mxu1 %v11052_v52  ;;  %v11118_v52 = vld [vmem:[%s12515_s23 + $0x181c] ss:$40 sps:$4 sm:$0xff]  }
 0x122   : > { %5585 = vmatpush1.bf16.msra.mxu0 %v11047_v54  ;;  %v11113_v54 = vld [vmem:[%s12515_s23 + $0x1318] ss:$40 sps:$4 sm:$0xff]  }
 0x123   : > { %5626 = vmatpush1.bf16.msra.mxu1 %v11050_v55  ;;  %5586 = vmatprep.subr.bf16.mxu0 %v11055_v56  ;;  %v11116_v55 = vld [vmem:[%s12515_s23 + $0x1818] ss:$40 sps:$4 sm:$0xff]   ;;  %v11121_v56 = vld [vmem:[%s12515_s23 + $0x136c] ss:$40 sps:$4 sm:$0xff]  }
 0x124   : > { %5627 = vmatprep.subr.bf16.mxu1 %v11058_v57  ;;  %v11124_v57 = vld [vmem:[%s12515_s23 + $0x186c] ss:$40 sps:$4 sm:$0xff]  }
 0x126   : > { %5587 = vmatpush1.bf16.msra.mxu0 %v11053_v58  ;;  %v11119_v58 = vld [vmem:[%s12515_s23 + $0x1368] ss:$40 sps:$4 sm:$0xff]  }
 0x127   : > { %5628 = vmatpush1.bf16.msra.mxu1 %v11056_v59  ;;  %5588 = vmatprep.subr.bf16.mxu0 %v11061_v60  ;;  %v11122_v59 = vld [vmem:[%s12515_s23 + $0x1868] ss:$40 sps:$4 sm:$0xff]   ;;  %v11127_v60 = vld [vmem:[%s12515_s23 + $0x13bc] ss:$40 sps:$4 sm:$0xff]  }
 0x128   : > { %5629 = vmatprep.subr.bf16.mxu1 %v11064_v61  ;;  %v11130_v61 = vld [vmem:[%s12515_s23 + $0x18bc] ss:$40 sps:$4 sm:$0xff]  }
 0x12a   : > { %5589 = vmatpush1.bf16.msra.mxu0 %v11059_v62  ;;  %v11125_v62 = vld [vmem:[%s12515_s23 + $0x13b8] ss:$40 sps:$4 sm:$0xff]  }
 0x12b   : > { %5630 = vmatpush1.bf16.msra.mxu1 %v11062_v63  ;;  %5590 = vmatprep.subr.bf16.mxu0 %v11067_v0  ;;  %v11128_v63 = vld [vmem:[%s12515_s23 + $0x18b8] ss:$40 sps:$4 sm:$0xff]   ;;  %v11133_v0 = vld [vmem:[%s12515_s23 + $0x14] ss:$40 sps:$4 sm:$0xff]  }
 0x12c   : > { %5631 = vmatprep.subr.bf16.mxu1 %v11070_v1  ;;  %v5286_v6 = vpop.f32.mrb[0].mxu0  ;;  %v11136_v1 = vld [vmem:[%s12515_s23 + $0x514] ss:$40 sps:$4 sm:$0xff]  }
 0x12d   : > { %v5327_v7 = vpop.f32.mrb[0].mxu1  ;;  %v5288_v13 = vpop.f32.mrb[1].mxu0 }
 0x12e   : > { %v12863_v12 = vadd.f32 %v5327_v7, %v5286_v6  ;;  %v5329_v14 = vpop.f32.mrb[1].mxu1  ;;  %v5290_v17 = vpop.f32.mrb[2].mxu0  ;;  %5591 = vmatpush1.bf16.msra.mxu0 %v11065_v2  ;;  %v11131_v2 = vld [vmem:[%s12515_s23 + $0x10] ss:$40 sps:$4 sm:$0xff]   ;;  %v11137_v6 = vld [vmem:[%s12515_s23 + $0x60] ss:$40 sps:$4 sm:$0xff]  }
 0x12f   : > { %v12866_v16 = vadd.f32 %v5329_v14, %v5288_v13  ;;  %5632 = vmatpush1.bf16.msra.mxu1 %v11068_v3  ;;  %v5331_v19 = vpop.f32.mrb[2].mxu1  ;;  %v5291_v20 = vpop.f32.mrb[3].mxu0  ;;  %5592 = vmatprep.subr.bf16.mxu0 %v11073_v4  ;;  %v11134_v3 = vld [vmem:[%s12515_s23 + $0x510] ss:$40 sps:$4 sm:$0xff]   ;;  %v11139_v4 = vld [vmem:[%s12515_s23 + $0x64] ss:$40 sps:$4 sm:$0xff]  }
 0x130   : > { %5633 = vmatprep.subr.bf16.mxu1 %v11076_v5  ;;  %v5332_v23 = vpop.f32.mrb[3].mxu1  ;;  %v11142_v5 = vld [vmem:[%s12515_s23 + $0x564] ss:$40 sps:$4 sm:$0xff]   ;;  %v11140_v7 = vld [vmem:[%s12515_s23 + $0x560] ss:$40 sps:$4 sm:$0xff]  }
 0x131   : > { %v11143_v13 = vld [vmem:[%s12515_s23 + $0xb0] ss:$40 sps:$4 sm:$0xff]   ;;  %v11154_v17 = vld [vmem:[%s12515_s23 + $0x604] ss:$40 sps:$4 sm:$0xff]   ;;  %v11149_v19 = vld [vmem:[%s12515_s23 + $0x100] ss:$40 sps:$4 sm:$0xff]  }
 0x132   : > { %5593 = vmatpush1.bf16.msra.mxu0 %v11071_v10  ;;  %v11145_v10 = vld [vmem:[%s12515_s23 + $0xb4] ss:$40 sps:$4 sm:$0xff]   ;;  %v11146_v14 = vld [vmem:[%s12515_s23 + $0x5b0] ss:$40 sps:$4 sm:$0xff]   ;;  %v11152_v20 = vld [vmem:[%s12515_s23 + $0x600] ss:$40 sps:$4 sm:$0xff]  }
 0x133   : > { %5634 = vmatpush1.bf16.msra.mxu1 %v11074_v11  ;;  %5594 = vmatprep.subr.bf16.mxu0 %v11079_v15  ;;  %v11148_v11 = vld [vmem:[%s12515_s23 + $0x5b4] ss:$40 sps:$4 sm:$0xff]   ;;  %v11151_v15 = vld [vmem:[%s12515_s23 + $0x104] ss:$40 sps:$4 sm:$0xff]  }
 0x134   : > { %5635 = vmatprep.subr.bf16.mxu1 %v11082_v22  ;;  %v11157_v22 = vld [vmem:[%s12515_s23 + $0x154] ss:$40 sps:$4 sm:$0xff]  }
 0x135   : > { %v11160_v23 = vld [vmem:[%s12515_s23 + $0x654] ss:$40 sps:$4 sm:$0xff]  }
 0x136   : > { %5595 = vmatpush1.bf16.msra.mxu0 %v11077_v26  ;;  %v11155_v26 = vld [vmem:[%s12515_s23 + $0x150] ss:$40 sps:$4 sm:$0xff]  }
 0x137   : > { %5636 = vmatpush1.bf16.msra.mxu1 %v11080_v27  ;;  %5596 = vmatprep.subr.bf16.mxu0 %v11085_v28  ;;  %v11158_v27 = vld [vmem:[%s12515_s23 + $0x650] ss:$40 sps:$4 sm:$0xff]   ;;  %v11163_v28 = vld [vmem:[%s12515_s23 + $0x1a4] ss:$40 sps:$4 sm:$0xff]  }
 0x138   : > { %5637 = vmatprep.subr.bf16.mxu1 %v11088_v29  ;;  %v11166_v29 = vld [vmem:[%s12515_s23 + $0x6a4] ss:$40 sps:$4 sm:$0xff]  }
 0x13a   : > { %5597 = vmatpush1.bf16.msra.mxu0 %v11083_v30  ;;  %v11161_v30 = vld [vmem:[%s12515_s23 + $0x1a0] ss:$40 sps:$4 sm:$0xff]  }
 0x13b   : > { %5638 = vmatpush1.bf16.msra.mxu1 %v11086_v31  ;;  %5598 = vmatprep.subr.bf16.mxu0 %v11091_v33  ;;  %v11164_v31 = vld [vmem:[%s12515_s23 + $0x6a0] ss:$40 sps:$4 sm:$0xff]   ;;  %v11169_v33 = vld [vmem:[%s12515_s23 + $0x1f4] ss:$40 sps:$4 sm:$0xff]  }
 0x13c   : > { %5639 = vmatprep.subr.bf16.mxu1 %v11094_v34  ;;  %v11172_v34 = vld [vmem:[%s12515_s23 + $0x6f4] ss:$40 sps:$4 sm:$0xff]  }
 0x13e   : > { %5599 = vmatpush1.bf16.msra.mxu0 %v11089_v35 }
 0x13f   : > { %5640 = vmatpush1.bf16.msra.mxu1 %v11092_v36  ;;  %5600 = vmatprep.subr.bf16.mxu0 %v11097_v37  ;;  %v11167_v37 = vld [vmem:[%s12515_s23 + $0x1f0] ss:$40 sps:$4 sm:$0xff]  }
 0x140   : > { %5641 = vmatprep.subr.bf16.mxu1 %v11100_v24  ;;  %v11170_v24 = vld [vmem:[%s12515_s23 + $0x6f0] ss:$40 sps:$4 sm:$0xff]  }
 0x142   : > { %5601 = vmatpush1.bf16.msra.mxu0 %v11095_v40 }
 0x143   : > { %5642 = vmatpush1.bf16.msra.mxu1 %v11098_v41  ;;  %5602 = vmatprep.subr.bf16.mxu0 %v11103_v42 }
 0x144   : > { %5643 = vmatprep.subr.bf16.mxu1 %v11106_v43 }
 0x146   : > { %5603 = vmatpush1.bf16.msra.mxu0 %v11101_v44 }
 0x147   : > { %5644 = vmatpush1.bf16.msra.mxu1 %v11104_v45  ;;  %5604 = vmatprep.subr.bf16.mxu0 %v11109_v46 }
 0x148   : > { %5645 = vmatprep.subr.bf16.mxu1 %v11112_v47 }
 0x14a   : > { %5605 = vmatpush1.bf16.msra.mxu0 %v11107_v48  ;;  %v11178_v48 = vld [vmem:[%s12515_s23 + $0x744] ss:$40 sps:$4 sm:$0xff]  }
 0x14b   : > { %5646 = vmatpush1.bf16.msra.mxu1 %v11110_v50  ;;  %5606 = vmatprep.subr.bf16.mxu0 %v11115_v51 }
 0x14c   : > { %5647 = vmatprep.subr.bf16.mxu1 %v11118_v52  ;;  %v11176_v52 = vld [vmem:[%s12515_s23 + $0x740] ss:$40 sps:$4 sm:$0xff]  }
 0x14e   : > { %5607 = vmatpush1.bf16.msra.mxu0 %v11113_v54  ;;  %v11181_v54 = vld [vmem:[%s12515_s23 + $0x294] ss:$40 sps:$4 sm:$0xff]  }
 0x14f   : > { %5648 = vmatpush1.bf16.msra.mxu1 %v11116_v55  ;;  %5608 = vmatprep.subr.bf16.mxu0 %v11121_v56  ;;  %v11184_v55 = vld [vmem:[%s12515_s23 + $0x794] ss:$40 sps:$4 sm:$0xff]   ;;  %v11179_v56 = vld [vmem:[%s12515_s23 + $0x290] ss:$40 sps:$4 sm:$0xff]  }
 0x150   : > { %5649 = vmatprep.subr.bf16.mxu1 %v11124_v57  ;;  %v11182_v57 = vld [vmem:[%s12515_s23 + $0x790] ss:$40 sps:$4 sm:$0xff]  }
 0x152   : > { %5609 = vmatpush1.bf16.msra.mxu0 %v11119_v58  ;;  %v11187_v58 = vld [vmem:[%s12515_s23 + $0x2e4] ss:$40 sps:$4 sm:$0xff]  }
 0x153   : > { %5650 = vmatpush1.bf16.msra.mxu1 %v11122_v59  ;;  %5610 = vmatprep.subr.bf16.mxu0 %v11127_v60  ;;  %v11190_v59 = vld [vmem:[%s12515_s23 + $0x7e4] ss:$40 sps:$4 sm:$0xff]   ;;  %v11185_v60 = vld [vmem:[%s12515_s23 + $0x2e0] ss:$40 sps:$4 sm:$0xff]  }
 0x154   : > { %5651 = vmatprep.subr.bf16.mxu1 %v11130_v61  ;;  %v11188_v61 = vld [vmem:[%s12515_s23 + $0x7e0] ss:$40 sps:$4 sm:$0xff]  }
 0x156   : > { %5611 = vmatpush1.bf16.msra.mxu0 %v11125_v62  ;;  %v11193_v62 = vld [vmem:[%s12515_s23 + $0x334] ss:$40 sps:$4 sm:$0xff]  }
 0x157   : > { %5652 = vmatpush1.bf16.msra.mxu1 %v11128_v63  ;;  %5662 = vmatprep.subr.bf16.mxu0 %v11133_v0  ;;  %v11196_v63 = vld [vmem:[%s12515_s23 + $0x834] ss:$40 sps:$4 sm:$0xff]   ;;  %v11191_v0 = vld [vmem:[%s12515_s23 + $0x330] ss:$40 sps:$4 sm:$0xff]  }
 0x158   : > { %5703 = vmatprep.subr.bf16.mxu1 %v11136_v1  ;;  %v11194_v1 = vld [vmem:[%s12515_s23 + $0x830] ss:$40 sps:$4 sm:$0xff]  }
 0x159   : > { %5613 = vmatmul.mubr.bf16.vlgmr.msra.gmra.mrb[16].mxu0 %v12686_v21 }
 0x15a   : > { %5654 = vmatmul.mubr.bf16.vlgmr.msra.gmra.mrb[16].mxu1 %v12763_v32  ;;  %5663 = vmatpush1.bf16.msra.mxu0 %v11131_v2  ;;  %v11199_v2 = vld [vmem:[%s12515_s23 + $0x384] ss:$40 sps:$4 sm:$0xff]  }
 0x15b   : > { %5704 = vmatpush1.bf16.msra.mxu1 %v11134_v3  ;;  %5664 = vmatprep.subr.bf16.mxu0 %v11139_v4  ;;  %v11202_v3 = vld [vmem:[%s12515_s23 + $0x884] ss:$40 sps:$4 sm:$0xff]   ;;  %v11197_v4 = vld [vmem:[%s12515_s23 + $0x380] ss:$40 sps:$4 sm:$0xff]  }
 0x15c   : > { %5705 = vmatprep.subr.bf16.mxu1 %v11142_v5  ;;  %5694 = vmatprep.mubr.bf16.mxu0 %v12565_v49  ;;  %v11200_v5 = vld [vmem:[%s12515_s23 + $0x880] ss:$40 sps:$4 sm:$0xff]  }
 0x15d   : > { %5735 = vmatprep.mubr.bf16.mxu1 %v12570_v53 }
 0x15e   : > { %5665 = vmatpush1.bf16.msra.mxu0 %v11137_v6  ;;  %v11205_v6 = vld [vmem:[%s12515_s23 + $0x3d4] ss:$40 sps:$4 sm:$0xff]  }
 0x15f   : > { %5706 = vmatpush1.bf16.msra.mxu1 %v11140_v7  ;;  %5666 = vmatprep.subr.bf16.mxu0 %v11145_v10  ;;  %v11208_v7 = vld [vmem:[%s12515_s23 + $0x8d4] ss:$40 sps:$4 sm:$0xff]   ;;  %v11203_v10 = vld [vmem:[%s12515_s23 + $0x3d0] ss:$40 sps:$4 sm:$0xff]  }
 0x160   : > { %5707 = vmatprep.subr.bf16.mxu1 %v11148_v11  ;;  %v11206_v11 = vld [vmem:[%s12515_s23 + $0x8d0] ss:$40 sps:$4 sm:$0xff]  }
 0x162   : > { %5667 = vmatpush1.bf16.msra.mxu0 %v11143_v13  ;;  %v11211_v13 = vld [vmem:[%s12515_s23 + $0x424] ss:$40 sps:$4 sm:$0xff]  }
 0x163   : > { %5708 = vmatpush1.bf16.msra.mxu1 %v11146_v14  ;;  %5668 = vmatprep.subr.bf16.mxu0 %v11151_v15  ;;  %v11214_v14 = vld [vmem:[%s12515_s23 + $0x924] ss:$40 sps:$4 sm:$0xff]   ;;  %v11209_v15 = vld [vmem:[%s12515_s23 + $0x420] ss:$40 sps:$4 sm:$0xff]  }
 0x164   : > { %5709 = vmatprep.subr.bf16.mxu1 %v11154_v17  ;;  %v11212_v17 = vld [vmem:[%s12515_s23 + $0x920] ss:$40 sps:$4 sm:$0xff]  }
 0x166   : > { %5669 = vmatpush1.bf16.msra.mxu0 %v11149_v19  ;;  %v11217_v19 = vld [vmem:[%s12515_s23 + $0x474] ss:$40 sps:$4 sm:$0xff]  }
 0x167   : > { %5710 = vmatpush1.bf16.msra.mxu1 %v11152_v20  ;;  %5670 = vmatprep.subr.bf16.mxu0 %v11157_v22  ;;  %v11220_v20 = vld [vmem:[%s12515_s23 + $0x974] ss:$40 sps:$4 sm:$0xff]   ;;  %v11215_v22 = vld [vmem:[%s12515_s23 + $0x470] ss:$40 sps:$4 sm:$0xff]  }
 0x168   : > { %5711 = vmatprep.subr.bf16.mxu1 %v11160_v23  ;;  %v11218_v23 = vld [vmem:[%s12515_s23 + $0x970] ss:$40 sps:$4 sm:$0xff]  }
 0x16a   : > { %5671 = vmatpush1.bf16.msra.mxu0 %v11155_v26  ;;  %v11223_v26 = vld [vmem:[%s12515_s23 + $0x4c4] ss:$40 sps:$4 sm:$0xff]  }
 0x16b   : > { %5712 = vmatpush1.bf16.msra.mxu1 %v11158_v27  ;;  %5672 = vmatprep.subr.bf16.mxu0 %v11163_v28  ;;  %v11226_v27 = vld [vmem:[%s12515_s23 + $0x9c4] ss:$40 sps:$4 sm:$0xff]   ;;  %v11221_v28 = vld [vmem:[%s12515_s23 + $0x4c0] ss:$40 sps:$4 sm:$0xff]  }
 0x16c   : > { %5713 = vmatprep.subr.bf16.mxu1 %v11166_v29  ;;  %v5368_v35 = vpop.f32.mrb[4].mxu0  ;;  %v11224_v29 = vld [vmem:[%s12515_s23 + $0x9c0] ss:$40 sps:$4 sm:$0xff]  }
 0x16d   : > { %v5409_v36 = vpop.f32.mrb[4].mxu1  ;;  %v5369_v40 = vadd.f32 %v5368_v35, %v12863_v12  ;;  %v5370_v41 = vpop.f32.mrb[5].mxu0  ;;  %v11175_v12 = vld [vmem:[%s12515_s23 + $0x244] ss:$40 sps:$4 sm:$0xff]  }
 0x16e   : > { %v5411_v42 = vpop.f32.mrb[5].mxu1  ;;  %v5371_v43 = vadd.f32 %v5370_v41, %v12866_v16  ;;  %v5372_v44 = vpop.f32.mrb[6].mxu0  ;;  %5673 = vmatpush1.bf16.msra.mxu0 %v11161_v30  ;;  %v11173_v16 = vld [vmem:[%s12515_s23 + $0x240] ss:$40 sps:$4 sm:$0xff]   ;;  %v11229_v30 = vld [vmem:[%s12515_s23 + $0xa14] ss:$40 sps:$4 sm:$0xff]  }
 0x16f   : > { %5714 = vmatpush1.bf16.msra.mxu1 %v11164_v31  ;;  %v5413_v45 = vpop.f32.mrb[6].mxu1  ;;  %v12937_v46 = vadd.f32 %v5409_v36, %v5369_v40  ;;  %v5373_v47 = vpop.f32.mrb[7].mxu0  ;;  %5674 = vmatprep.subr.bf16.mxu0 %v11169_v33  ;;  %v11232_v31 = vld [vmem:[%s12515_s23 + $0xf14] ss:$40 sps:$4 sm:$0xff]   ;;  %v11227_v33 = vld [vmem:[%s12515_s23 + $0xa10] ss:$40 sps:$4 sm:$0xff]  }
 0x170   : > { %5715 = vmatprep.subr.bf16.mxu1 %v11172_v34  ;;  %v5414_v50 = vpop.f32.mrb[7].mxu1  ;;  %v12941_v51 = vadd.f32 %v5411_v42, %v5371_v43  ;;  %v11230_v34 = vld [vmem:[%s12515_s23 + $0xf10] ss:$40 sps:$4 sm:$0xff]   ;;  %v11235_v35 = vld [vmem:[%s12515_s23 + $0xa64] ss:$40 sps:$4 sm:$0xff]  }
 0x171   : > { %v11238_v36 = vld [vmem:[%s12515_s23 + $0xf64] ss:$40 sps:$4 sm:$0xff]   ;;  %v11241_v40 = vld [vmem:[%s12515_s23 + $0xab4] ss:$40 sps:$4 sm:$0xff]   ;;  %v11239_v42 = vld [vmem:[%s12515_s23 + $0xab0] ss:$40 sps:$4 sm:$0xff]  }
 0x172   : > { %5675 = vmatpush1.bf16.msra.mxu0 %v11167_v37  ;;  %v11233_v37 = vld [vmem:[%s12515_s23 + $0xa60] ss:$40 sps:$4 sm:$0xff]   ;;  %v11244_v41 = vld [vmem:[%s12515_s23 + $0xfb4] ss:$40 sps:$4 sm:$0xff]   ;;  %v11242_v43 = vld [vmem:[%s12515_s23 + $0xfb0] ss:$40 sps:$4 sm:$0xff]  }
 0x173   : > { %5716 = vmatpush1.bf16.msra.mxu1 %v11170_v24  ;;  %5676 = vmatprep.subr.bf16.mxu0 %v11175_v12  ;;  %v11236_v24 = vld [vmem:[%s12515_s23 + $0xf60] ss:$40 sps:$4 sm:$0xff]   ;;  %v11247_v44 = vld [vmem:[%s12515_s23 + $0xb04] ss:$40 sps:$4 sm:$0xff]   ;;  %v11256_v50 = vld [vmem:[%s12515_s23 + $0x1054] ss:$40 sps:$4 sm:$0xff]  }
 0x174   : > { %5717 = vmatprep.subr.bf16.mxu1 %v11178_v48  ;;  %v11250_v45 = vld [vmem:[%s12515_s23 + $0x1004] ss:$40 sps:$4 sm:$0xff]   ;;  %v11245_v47 = vld [vmem:[%s12515_s23 + $0xb00] ss:$40 sps:$4 sm:$0xff]   ;;  %v11253_v48 = vld [vmem:[%s12515_s23 + $0xb54] ss:$40 sps:$4 sm:$0xff]  }
 0x175   : > { %v11248_v12 = vld [vmem:[%s12515_s23 + $0x1000] ss:$40 sps:$4 sm:$0xff]  }
 0x176   : > { %5677 = vmatpush1.bf16.msra.mxu0 %v11173_v16  ;;  %v11251_v16 = vld [vmem:[%s12515_s23 + $0xb50] ss:$40 sps:$4 sm:$0xff]  }
 0x177   : > { %5718 = vmatpush1.bf16.msra.mxu1 %v11176_v52  ;;  %5678 = vmatprep.subr.bf16.mxu0 %v11181_v54  ;;  %v11254_v52 = vld [vmem:[%s12515_s23 + $0x1050] ss:$40 sps:$4 sm:$0xff]   ;;  %v11259_v54 = vld [vmem:[%s12515_s23 + $0xba4] ss:$40 sps:$4 sm:$0xff]  }
 0x178   : > { %5719 = vmatprep.subr.bf16.mxu1 %v11184_v55  ;;  %v11262_v55 = vld [vmem:[%s12515_s23 + $0x10a4] ss:$40 sps:$4 sm:$0xff]  }
 0x17a   : > { %5679 = vmatpush1.bf16.msra.mxu0 %v11179_v56  ;;  %v11257_v56 = vld [vmem:[%s12515_s23 + $0xba0] ss:$40 sps:$4 sm:$0xff]  }
 0x17b   : > { %5720 = vmatpush1.bf16.msra.mxu1 %v11182_v57  ;;  %5680 = vmatprep.subr.bf16.mxu0 %v11187_v58  ;;  %v11260_v57 = vld [vmem:[%s12515_s23 + $0x10a0] ss:$40 sps:$4 sm:$0xff]   ;;  %v11265_v58 = vld [vmem:[%s12515_s23 + $0xbf4] ss:$40 sps:$4 sm:$0xff]  }
 0x17c   : > { %5721 = vmatprep.subr.bf16.mxu1 %v11190_v59  ;;  %v11268_v59 = vld [vmem:[%s12515_s23 + $0x10f4] ss:$40 sps:$4 sm:$0xff]  }
 0x17e   : > { %5681 = vmatpush1.bf16.msra.mxu0 %v11185_v60  ;;  %v402_v60 = vld [vmem:[#allocation2] sm:$0xff] }
 0x17f   : > { %5722 = vmatpush1.bf16.msra.mxu1 %v11188_v61  ;;  %5682 = vmatprep.subr.bf16.mxu0 %v11193_v62  ;;  %v403_v62 = vld [vmem:[#allocation2 + $0x8] sm:$0xff] }
 0x180   : > { %5723 = vmatprep.subr.bf16.mxu1 %v11196_v63  ;;  %v11263_v63 = vld [vmem:[%s12515_s23 + $0xbf0] ss:$40 sps:$4 sm:$0xff]  }
 0x182   : > { %5683 = vmatpush1.bf16.msra.mxu0 %v11191_v0 }
 0x183   : > { %5724 = vmatpush1.bf16.msra.mxu1 %v11194_v1  ;;  %5684 = vmatprep.subr.bf16.mxu0 %v11199_v2 }
 0x184   : > { %5725 = vmatprep.subr.bf16.mxu1 %v11202_v3 }
 0x186   : > { %5685 = vmatpush1.bf16.msra.mxu0 %v11197_v4 }
 0x187   : > { %5726 = vmatpush1.bf16.msra.mxu1 %v11200_v5  ;;  %5686 = vmatprep.subr.bf16.mxu0 %v11205_v6  ;;  %v11266_v6 = vld [vmem:[%s12515_s23 + $0x10f0] ss:$40 sps:$4 sm:$0xff]  }
 0x188   : > { %5727 = vmatprep.subr.bf16.mxu1 %v11208_v7 }
 0x18a   : > { %5687 = vmatpush1.bf16.msra.mxu0 %v11203_v10 }
 0x18b   : > { %5728 = vmatpush1.bf16.msra.mxu1 %v11206_v11  ;;  %5688 = vmatprep.subr.bf16.mxu0 %v11211_v13  ;;  %v11271_v13 = vld [vmem:[%s12515_s23 + $0xc44] ss:$40 sps:$4 sm:$0xff]  }
 0x18c   : > { %5729 = vmatprep.subr.bf16.mxu1 %v11214_v14 }
 0x18e   : > { %5689 = vmatpush1.bf16.msra.mxu0 %v11209_v15 }
 0x18f   : > { %5730 = vmatpush1.bf16.msra.mxu1 %v11212_v17  ;;  %5690 = vmatprep.subr.bf16.mxu0 %v11217_v19  ;;  %v11269_v17 = vld [vmem:[%s12515_s23 + $0xc40] ss:$40 sps:$4 sm:$0xff]   ;;  %v11277_v19 = vld [vmem:[%s12515_s23 + $0xc94] ss:$40 sps:$4 sm:$0xff]  }
 0x190   : > { %5731 = vmatprep.subr.bf16.mxu1 %v11220_v20  ;;  %v11280_v20 = vld [vmem:[%s12515_s23 + $0x1194] ss:$40 sps:$4 sm:$0xff]  }
 0x192   : > { %5691 = vmatpush1.bf16.msra.mxu0 %v11215_v22  ;;  %v11275_v22 = vld [vmem:[%s12515_s23 + $0xc90] ss:$40 sps:$4 sm:$0xff]  }
 0x193   : > { %5732 = vmatpush1.bf16.msra.mxu1 %v11218_v23  ;;  %5692 = vmatprep.subr.bf16.mxu0 %v11223_v26  ;;  %v11278_v23 = vld [vmem:[%s12515_s23 + $0x1190] ss:$40 sps:$4 sm:$0xff]   ;;  %v11283_v26 = vld [vmem:[%s12515_s23 + $0xce4] ss:$40 sps:$4 sm:$0xff]  }
 0x194   : > { %5733 = vmatprep.subr.bf16.mxu1 %v11226_v27  ;;  %v11286_v27 = vld [vmem:[%s12515_s23 + $0x11e4] ss:$40 sps:$4 sm:$0xff]  }
 0x196   : > { %5693 = vmatpush1.bf16.msra.mxu0 %v11221_v28  ;;  %v11281_v28 = vld [vmem:[%s12515_s23 + $0xce0] ss:$40 sps:$4 sm:$0xff]  }
 0x197   : > { %5734 = vmatpush1.bf16.msra.mxu1 %v11224_v29  ;;  %5744 = vmatprep.subr.bf16.mxu0 %v11229_v30  ;;  %v11284_v29 = vld [vmem:[%s12515_s23 + $0x11e0] ss:$40 sps:$4 sm:$0xff]   ;;  %v11289_v30 = vld [vmem:[%s12515_s23 + $0xd34] ss:$40 sps:$4 sm:$0xff]  }
 0x198   : > { %5785 = vmatprep.subr.bf16.mxu1 %v11232_v31  ;;  %v11292_v31 = vld [vmem:[%s12515_s23 + $0x1234] ss:$40 sps:$4 sm:$0xff]  }
 0x199   : > { %5695 = vmatmul.mubr.bf16.vlgmr.msra.gmra.mrb[20].mxu0 %v12592_v8 }
 0x19a   : > { %5736 = vmatmul.mubr.bf16.vlgmr.msra.gmra.mrb[20].mxu1 %v12594_v9  ;;  %5745 = vmatpush1.bf16.msra.mxu0 %v11227_v33  ;;  %v11287_v33 = vld [vmem:[%s12515_s23 + $0xd30] ss:$40 sps:$4 sm:$0xff]  }
 0x19b   : > { %5786 = vmatpush1.bf16.msra.mxu1 %v11230_v34  ;;  %5746 = vmatprep.subr.bf16.mxu0 %v11235_v35  ;;  %v11290_v34 = vld [vmem:[%s12515_s23 + $0x1230] ss:$40 sps:$4 sm:$0xff]   ;;  %v11295_v35 = vld [vmem:[%s12515_s23 + $0xd84] ss:$40 sps:$4 sm:$0xff]  }
 0x19c   : > { %5787 = vmatprep.subr.bf16.mxu1 %v11238_v36  ;;  %5776 = vmatprep.mubr.bf16.mxu0 %v12632_v38  ;;  %v11298_v36 = vld [vmem:[%s12515_s23 + $0x1284] ss:$40 sps:$4 sm:$0xff]  }
 0x19d   : > { %5817 = vmatprep.mubr.bf16.mxu1 %v12636_v39 }
 0x19e   : > { %5747 = vmatpush1.bf16.msra.mxu0 %v11233_v37  ;;  %v11293_v37 = vld [vmem:[%s12515_s23 + $0xd80] ss:$40 sps:$4 sm:$0xff]  }
 0x19f   : > { %5788 = vmatpush1.bf16.msra.mxu1 %v11236_v24  ;;  %5748 = vmatprep.subr.bf16.mxu0 %v11241_v40  ;;  %v11296_v24 = vld [vmem:[%s12515_s23 + $0x1280] ss:$40 sps:$4 sm:$0xff]   ;;  %v11301_v40 = vld [vmem:[%s12515_s23 + $0xdd4] ss:$40 sps:$4 sm:$0xff]  }
 0x1a0   : > { %5789 = vmatprep.subr.bf16.mxu1 %v11244_v41  ;;  %v11304_v41 = vld [vmem:[%s12515_s23 + $0x12d4] ss:$40 sps:$4 sm:$0xff]  }
 0x1a2   : > { %5749 = vmatpush1.bf16.msra.mxu0 %v11239_v42  ;;  %v11299_v42 = vld [vmem:[%s12515_s23 + $0xdd0] ss:$40 sps:$4 sm:$0xff]  }
 0x1a3   : > { %5790 = vmatpush1.bf16.msra.mxu1 %v11242_v43  ;;  %5750 = vmatprep.subr.bf16.mxu0 %v11247_v44  ;;  %v11302_v43 = vld [vmem:[%s12515_s23 + $0x12d0] ss:$40 sps:$4 sm:$0xff]   ;;  %v11307_v44 = vld [vmem:[%s12515_s23 + $0xe24] ss:$40 sps:$4 sm:$0xff]  }
 0x1a4   : > { %5791 = vmatprep.subr.bf16.mxu1 %v11250_v45  ;;  %v11310_v45 = vld [vmem:[%s12515_s23 + $0x1324] ss:$40 sps:$4 sm:$0xff]  }
 0x1a6   : > { %5751 = vmatpush1.bf16.msra.mxu0 %v11245_v47  ;;  %v11305_v47 = vld [vmem:[%s12515_s23 + $0xe20] ss:$40 sps:$4 sm:$0xff]  }
 0x1a7   : > { %5792 = vmatpush1.bf16.msra.mxu1 %v11248_v12  ;;  %5752 = vmatprep.subr.bf16.mxu0 %v11253_v48  ;;  %v11308_v12 = vld [vmem:[%s12515_s23 + $0x1320] ss:$40 sps:$4 sm:$0xff]   ;;  %v11313_v48 = vld [vmem:[%s12515_s23 + $0xe74] ss:$40 sps:$4 sm:$0xff]  }
 0x1a8   : > { %5793 = vmatprep.subr.bf16.mxu1 %v11256_v50  ;;  %v11316_v50 = vld [vmem:[%s12515_s23 + $0x1374] ss:$40 sps:$4 sm:$0xff]  }
 0x1aa   : > { %5753 = vmatpush1.bf16.msra.mxu0 %v11251_v16  ;;  %v11311_v16 = vld [vmem:[%s12515_s23 + $0xe70] ss:$40 sps:$4 sm:$0xff]  }
 0x1ab   : > { %5794 = vmatpush1.bf16.msra.mxu1 %v11254_v52  ;;  %5754 = vmatprep.subr.bf16.mxu0 %v11259_v54  ;;  %v11314_v52 = vld [vmem:[%s12515_s23 + $0x1370] ss:$40 sps:$4 sm:$0xff]   ;;  %v11319_v54 = vld [vmem:[%s12515_s23 + $0xec4] ss:$40 sps:$4 sm:$0xff]  }
 0x1ac   : > { %5795 = vmatprep.subr.bf16.mxu1 %v11262_v55  ;;  %v5450_v61 = vpop.f32.mrb[8].mxu0  ;;  %v11322_v55 = vld [vmem:[%s12515_s23 + $0x13c4] ss:$40 sps:$4 sm:$0xff]  }
 0x1ad   : > { %v13008_v0 = vpop.f32.mrb[8].mxu1  ;;  %v5451_v1 = vadd.f32 %v5450_v61, %v12937_v46  ;;  %v5452_v2 = vpop.f32.mrb[9].mxu0  ;;  %v11274_v46 = vld [vmem:[%s12515_s23 + $0x1144] ss:$40 sps:$4 sm:$0xff]   ;;  %v11326_v61 = vld [vmem:[%s12515_s23 + $0x18] ss:$40 sps:$4 sm:$0xff]  }
 0x1ae   : > { %v13011_v3 = vpop.f32.mrb[9].mxu1  ;;  %v5453_v4 = vadd.f32 %v5452_v2, %v12941_v51  ;;  %v5454_v5 = vpop.f32.mrb[10].mxu0  ;;  %5755 = vmatpush1.bf16.msra.mxu0 %v11257_v56  ;;  %v11272_v51 = vld [vmem:[%s12515_s23 + $0x1140] ss:$40 sps:$4 sm:$0xff]  }
 0x1af   : > { %5796 = vmatpush1.bf16.msra.mxu1 %v11260_v57  ;;  %v5495_v7 = vpop.f32.mrb[10].mxu1  ;;  %v6277_v10 = vadd.f32 %v5451_v1, %v402_v60  ;;  %v5455_v11 = vpop.f32.mrb[11].mxu0  ;;  %5756 = vmatprep.subr.bf16.mxu0 %v11265_v58  ;;  %v11317_v56 = vld [vmem:[%s12515_s23 + $0xec0] ss:$40 sps:$4 sm:$0xff]   ;;  %v11325_v58 = vld [vmem:[%s12515_s23 + $0x1414] ss:$40 sps:$4 sm:$0xff]  }
 0x1b0   : > { %5797 = vmatprep.subr.bf16.mxu1 %v11268_v59  ;;  %v5496_v14 = vpop.f32.mrb[11].mxu1  ;;  %v6278_v15 = vadd.f32 %v5453_v4, %v403_v62  ;;  %v11320_v57 = vld [vmem:[%s12515_s23 + $0x13c0] ss:$40 sps:$4 sm:$0xff]   ;;  %v11328_v59 = vld [vmem:[%s12515_s23 + $0x1c] ss:$40 sps:$4 sm:$0xff]  }
 0x1b1   : > { %6287 = vst [vmem:[#allocation2] sm:$0xff] %v6277_v10  ;;  %v11323_v60 = vld [vmem:[%s12515_s23 + $0x1410] ss:$40 sps:$4 sm:$0xff]   ;;  %v11331_v62 = vld [vmem:[%s12515_s23 + $0x1464] ss:$40 sps:$4 sm:$0xff]  }
 0x1b2   : > { %6288 = vst [vmem:[#allocation2 + $0x8] sm:$0xff] %v6278_v15  ;;  %5757 = vmatpush1.bf16.msra.mxu0 %v11263_v63  ;;  %v11334_v63 = vld [vmem:[%s12515_s23 + $0x6c] ss:$40 sps:$4 sm:$0xff]   ;;  %v11329_v1 = vld [vmem:[%s12515_s23 + $0x1460] ss:$40 sps:$4 sm:$0xff]  }
 0x1b3   : > { %5798 = vmatpush1.bf16.msra.mxu1 %v11266_v6  ;;  %5758 = vmatprep.subr.bf16.mxu0 %v11271_v13  ;;  %v11332_v2 = vld [vmem:[%s12515_s23 + $0x68] ss:$40 sps:$4 sm:$0xff]   ;;  %v11337_v4 = vld [vmem:[%s12515_s23 + $0x14b4] ss:$40 sps:$4 sm:$0xff]   ;;  %v11338_v7 = vld [vmem:[%s12515_s23 + $0xb8] ss:$40 sps:$4 sm:$0xff]  }
 0x1b4   : > { %5799 = vmatprep.subr.bf16.mxu1 %v11274_v46  ;;  %v11340_v5 = vld [vmem:[%s12515_s23 + $0xbc] ss:$40 sps:$4 sm:$0xff]   ;;  %v11335_v6 = vld [vmem:[%s12515_s23 + $0x14b0] ss:$40 sps:$4 sm:$0xff]   ;;  %v11346_v11 = vld [vmem:[%s12515_s23 + $0x10c] ss:$40 sps:$4 sm:$0xff]  }
 0x1b5   : > { %v11343_v10 = vld [vmem:[%s12515_s23 + $0x1504] ss:$40 sps:$4 sm:$0xff]   ;;  %v11341_v13 = vld [vmem:[%s12515_s23 + $0x1500] ss:$40 sps:$4 sm:$0xff]   ;;  %v11349_v14 = vld [vmem:[%s12515_s23 + $0x1554] ss:$40 sps:$4 sm:$0xff]  }
 0x1b6   : > { %5759 = vmatpush1.bf16.msra.mxu0 %v11269_v17  ;;  %v11344_v46 = vld [vmem:[%s12515_s23 + $0x108] ss:$40 sps:$4 sm:$0xff]   ;;  %v11352_v15 = vld [vmem:[%s12515_s23 + $0x15c] ss:$40 sps:$4 sm:$0xff]  }
 0x1b7   : > { %5800 = vmatpush1.bf16.msra.mxu1 %v11272_v51  ;;  %5760 = vmatprep.subr.bf16.mxu0 %v11277_v19  ;;  %v11347_v17 = vld [vmem:[%s12515_s23 + $0x1550] ss:$40 sps:$4 sm:$0xff]   ;;  %v11355_v19 = vld [vmem:[%s12515_s23 + $0x15a4] ss:$40 sps:$4 sm:$0xff]  }
 0x1b8   : > { %5801 = vmatprep.subr.bf16.mxu1 %v11280_v20  ;;  %v11350_v51 = vld [vmem:[%s12515_s23 + $0x158] ss:$40 sps:$4 sm:$0xff]   ;;  %v11358_v20 = vld [vmem:[%s12515_s23 + $0x1ac] ss:$40 sps:$4 sm:$0xff]  }
 0x1ba   : > { %5761 = vmatpush1.bf16.msra.mxu0 %v11275_v22  ;;  %v11353_v22 = vld [vmem:[%s12515_s23 + $0x15a0] ss:$40 sps:$4 sm:$0xff]  }
 0x1bb   : > { %5802 = vmatpush1.bf16.msra.mxu1 %v11278_v23  ;;  %5762 = vmatprep.subr.bf16.mxu0 %v11283_v26  ;;  %v11356_v23 = vld [vmem:[%s12515_s23 + $0x1a8] ss:$40 sps:$4 sm:$0xff]   ;;  %v11361_v26 = vld [vmem:[%s12515_s23 + $0x15f4] ss:$40 sps:$4 sm:$0xff]  }
 0x1bc   : > { %5803 = vmatprep.subr.bf16.mxu1 %v11286_v27  ;;  %v11364_v27 = vld [vmem:[%s12515_s23 + $0x1fc] ss:$40 sps:$4 sm:$0xff]  }
 0x1be   : > { %5763 = vmatpush1.bf16.msra.mxu0 %v11281_v28 }
 0x1bf   : > { %5804 = vmatpush1.bf16.msra.mxu1 %v11284_v29  ;;  %5764 = vmatprep.subr.bf16.mxu0 %v11289_v30 }
 0x1c0   : > { %5805 = vmatprep.subr.bf16.mxu1 %v11292_v31 }
 0x1c2   : > { %5765 = vmatpush1.bf16.msra.mxu0 %v11287_v33 }
 0x1c3   : > { %5806 = vmatpush1.bf16.msra.mxu1 %v11290_v34  ;;  %5766 = vmatprep.subr.bf16.mxu0 %v11295_v35 }
 0x1c4   : > { %5807 = vmatprep.subr.bf16.mxu1 %v11298_v36  ;;  %v11359_v36 = vld [vmem:[%s12515_s23 + $0x15f0] ss:$40 sps:$4 sm:$0xff]  }
 0x1c6   : > { %5767 = vmatpush1.bf16.msra.mxu0 %v11293_v37  ;;  %v11362_v37 = vld [vmem:[%s12515_s23 + $0x1f8] ss:$40 sps:$4 sm:$0xff]  }
 0x1c7   : > { %5808 = vmatpush1.bf16.msra.mxu1 %v11296_v24  ;;  %5768 = vmatprep.subr.bf16.mxu0 %v11301_v40 }
 0x1c8   : > { %5809 = vmatprep.subr.bf16.mxu1 %v11304_v41 }
 0x1ca   : > { %5769 = vmatpush1.bf16.msra.mxu0 %v11299_v42  ;;  %v11370_v42 = vld [vmem:[%s12515_s23 + $0x24c] ss:$40 sps:$4 sm:$0xff]  }
 0x1cb   : > { %5810 = vmatpush1.bf16.msra.mxu1 %v11302_v43  ;;  %5770 = vmatprep.subr.bf16.mxu0 %v11307_v44  ;;  %v11365_v44 = vld [vmem:[%s12515_s23 + $0x1640] ss:$40 sps:$4 sm:$0xff]  }
 0x1cc   : > { %5811 = vmatprep.subr.bf16.mxu1 %v11310_v45  ;;  %v11368_v45 = vld [vmem:[%s12515_s23 + $0x248] ss:$40 sps:$4 sm:$0xff]  }
 0x1ce   : > { %5771 = vmatpush1.bf16.msra.mxu0 %v11305_v47  ;;  %v11373_v47 = vld [vmem:[%s12515_s23 + $0x1694] ss:$40 sps:$4 sm:$0xff]  }
 0x1cf   : > { %5812 = vmatpush1.bf16.msra.mxu1 %v11308_v12  ;;  %5772 = vmatprep.subr.bf16.mxu0 %v11313_v48  ;;  %v11376_v12 = vld [vmem:[%s12515_s23 + $0x29c] ss:$40 sps:$4 sm:$0xff]   ;;  %v11371_v48 = vld [vmem:[%s12515_s23 + $0x1690] ss:$40 sps:$4 sm:$0xff]  }
 0x1d0   : > { %5813 = vmatprep.subr.bf16.mxu1 %v11316_v50  ;;  %v11374_v50 = vld [vmem:[%s12515_s23 + $0x298] ss:$40 sps:$4 sm:$0xff]  }
 0x1d2   : > { %5773 = vmatpush1.bf16.msra.mxu0 %v11311_v16  ;;  %v11379_v16 = vld [vmem:[%s12515_s23 + $0x16e4] ss:$40 sps:$4 sm:$0xff]  }
 0x1d3   : > { %5814 = vmatpush1.bf16.msra.mxu1 %v11314_v52  ;;  %5774 = vmatprep.subr.bf16.mxu0 %v11319_v54  ;;  %v11382_v52 = vld [vmem:[%s12515_s23 + $0x2ec] ss:$40 sps:$4 sm:$0xff]   ;;  %v11377_v54 = vld [vmem:[%s12515_s23 + $0x16e0] ss:$40 sps:$4 sm:$0xff]  }
 0x1d4   : > { %5815 = vmatprep.subr.bf16.mxu1 %v11322_v55  ;;  %v11380_v55 = vld [vmem:[%s12515_s23 + $0x2e8] ss:$40 sps:$4 sm:$0xff]  }
 0x1d6   : > { %5775 = vmatpush1.bf16.msra.mxu0 %v11317_v56  ;;  %v11385_v56 = vld [vmem:[%s12515_s23 + $0x1734] ss:$40 sps:$4 sm:$0xff]  }
 0x1d7   : > { %5816 = vmatpush1.bf16.msra.mxu1 %v11320_v57  ;;  %5826 = vmatprep.subr.bf16.mxu0 %v11325_v58  ;;  %v11388_v57 = vld [vmem:[%s12515_s23 + $0x33c] ss:$40 sps:$4 sm:$0xff]   ;;  %v11383_v58 = vld [vmem:[%s12515_s23 + $0x1730] ss:$40 sps:$4 sm:$0xff]  }
 0x1d8   : > { %5867 = vmatprep.subr.bf16.mxu1 %v11328_v59  ;;  %v11386_v59 = vld [vmem:[%s12515_s23 + $0x338] ss:$40 sps:$4 sm:$0xff]  }
 0x1d9   : > { %5777 = vmatmul.mubr.bf16.vlgmr.msra.gmra.mrb[24].mxu0 %v12680_v18 }
 0x1da   : > { %5818 = vmatmul.mubr.bf16.vlgmr.msra.gmra.mrb[24].mxu1 %v12686_v21  ;;  %5827 = vmatpush1.bf16.msra.mxu0 %v11323_v60  ;;  %v11391_v60 = vld [vmem:[%s12515_s23 + $0x1784] ss:$40 sps:$4 sm:$0xff]  }
 0x1db   : > { %5868 = vmatpush1.bf16.msra.mxu1 %v11326_v61  ;;  %5828 = vmatprep.subr.bf16.mxu0 %v11331_v62  ;;  %v11394_v61 = vld [vmem:[%s12515_s23 + $0x38c] ss:$40 sps:$4 sm:$0xff]   ;;  %v11389_v62 = vld [vmem:[%s12515_s23 + $0x1780] ss:$40 sps:$4 sm:$0xff]  }
 0x1dc   : > { %5869 = vmatprep.subr.bf16.mxu1 %v11334_v63  ;;  %5858 = vmatprep.mubr.bf16.mxu0 %v12695_v25  ;;  %v11392_v63 = vld [vmem:[%s12515_s23 + $0x388] ss:$40 sps:$4 sm:$0xff]  }
 0x1dd   : > { %5899 = vmatprep.mubr.bf16.mxu1 %v12565_v49 }
 0x1de   : > { %5829 = vmatpush1.bf16.msra.mxu0 %v11329_v1  ;;  %v11397_v1 = vld [vmem:[%s12515_s23 + $0x17d4] ss:$40 sps:$4 sm:$0xff]  }
 0x1df   : > { %5870 = vmatpush1.bf16.msra.mxu1 %v11332_v2  ;;  %5830 = vmatprep.subr.bf16.mxu0 %v11337_v4  ;;  %v11400_v2 = vld [vmem:[%s12515_s23 + $0x3dc] ss:$40 sps:$4 sm:$0xff]   ;;  %v11395_v4 = vld [vmem:[%s12515_s23 + $0x17d0] ss:$40 sps:$4 sm:$0xff]  }
 0x1e0   : > { %5871 = vmatprep.subr.bf16.mxu1 %v11340_v5  ;;  %v11398_v5 = vld [vmem:[%s12515_s23 + $0x3d8] ss:$40 sps:$4 sm:$0xff]  }
 0x1e2   : > { %5831 = vmatpush1.bf16.msra.mxu0 %v11335_v6  ;;  %v11403_v6 = vld [vmem:[%s12515_s23 + $0x1824] ss:$40 sps:$4 sm:$0xff]  }
 0x1e3   : > { %5872 = vmatpush1.bf16.msra.mxu1 %v11338_v7  ;;  %5832 = vmatprep.subr.bf16.mxu0 %v11343_v10  ;;  %v11406_v7 = vld [vmem:[%s12515_s23 + $0x42c] ss:$40 sps:$4 sm:$0xff]   ;;  %v11401_v10 = vld [vmem:[%s12515_s23 + $0x1820] ss:$40 sps:$4 sm:$0xff]  }
 0x1e4   : > { %5873 = vmatprep.subr.bf16.mxu1 %v11346_v11  ;;  %v11404_v11 = vld [vmem:[%s12515_s23 + $0x428] ss:$40 sps:$4 sm:$0xff]  }
 0x1e6   : > { %5833 = vmatpush1.bf16.msra.mxu0 %v11341_v13  ;;  %v11409_v13 = vld [vmem:[%s12515_s23 + $0x1874] ss:$40 sps:$4 sm:$0xff]  }
 0x1e7   : > { %5874 = vmatpush1.bf16.msra.mxu1 %v11344_v46  ;;  %5834 = vmatprep.subr.bf16.mxu0 %v11349_v14  ;;  %v11412_v46 = vld [vmem:[%s12515_s23 + $0x47c] ss:$40 sps:$4 sm:$0xff]   ;;  %v11407_v14 = vld [vmem:[%s12515_s23 + $0x1870] ss:$40 sps:$4 sm:$0xff]  }
 0x1e8   : > { %5875 = vmatprep.subr.bf16.mxu1 %v11352_v15  ;;  %v11410_v15 = vld [vmem:[%s12515_s23 + $0x478] ss:$40 sps:$4 sm:$0xff]  }
 0x1ea   : > { %5835 = vmatpush1.bf16.msra.mxu0 %v11347_v17  ;;  %v11415_v17 = vld [vmem:[%s12515_s23 + $0x18c4] ss:$40 sps:$4 sm:$0xff]  }
 0x1eb   : > { %5876 = vmatpush1.bf16.msra.mxu1 %v11350_v51  ;;  %5836 = vmatprep.subr.bf16.mxu0 %v11355_v19  ;;  %v11418_v51 = vld [vmem:[%s12515_s23 + $0x4cc] ss:$40 sps:$4 sm:$0xff]   ;;  %v11413_v19 = vld [vmem:[%s12515_s23 + $0x18c0] ss:$40 sps:$4 sm:$0xff]  }
 0x1ec   : > { %5877 = vmatprep.subr.bf16.mxu1 %v11358_v20  ;;  %v5532_v28 = vpop.f32.mrb[12].mxu0  ;;  %v11416_v20 = vld [vmem:[%s12515_s23 + $0x4c8] ss:$40 sps:$4 sm:$0xff]  }
 0x1ed   : > { %v5573_v29 = vpop.f32.mrb[12].mxu1  ;;  %v5533_v30 = vadd.f32 %v5532_v28, %v13008_v0  ;;  %v5534_v31 = vpop.f32.mrb[13].mxu0  ;;  %v11367_v0 = vld [vmem:[%s12515_s23 + $0x1644] ss:$40 sps:$4 sm:$0xff]  }
 0x1ee   : > { %v5575_v33 = vpop.f32.mrb[13].mxu1  ;;  %v5535_v34 = vadd.f32 %v5534_v31, %v13011_v3  ;;  %v5536_v35 = vpop.f32.mrb[14].mxu0  ;;  %5837 = vmatpush1.bf16.msra.mxu0 %v11353_v22  ;;  %v11421_v22 = vld [vmem:[%s12515_s23 + $0x51c] ss:$40 sps:$4 sm:$0xff]   ;;  %v11427_v28 = vld [vmem:[%s12515_s23 + $0x56c] ss:$40 sps:$4 sm:$0xff]  }
 0x1ef   : > { %5878 = vmatpush1.bf16.msra.mxu1 %v11356_v23  ;;  %v5577_v24 = vpop.f32.mrb[14].mxu1  ;;  %v13085_v40 = vadd.f32 %v5573_v29, %v5533_v30  ;;  %v5537_v41 = vpop.f32.mrb[15].mxu0  ;;  %5838 = vmatprep.subr.bf16.mxu0 %v11361_v26  ;;  %v11424_v23 = vld [vmem:[%s12515_s23 + $0xa1c] ss:$40 sps:$4 sm:$0xff]   ;;  %v11419_v26 = vld [vmem:[%s12515_s23 + $0x518] ss:$40 sps:$4 sm:$0xff]  }
 0x1f0   : > { %5879 = vmatprep.subr.bf16.mxu1 %v11364_v27  ;;  %v5578_v3 = vpop.f32.mrb[15].mxu1  ;;  %v13089_v43 = vadd.f32 %v5575_v33, %v5535_v34  ;;  %v11422_v27 = vld [vmem:[%s12515_s23 + $0xa18] ss:$40 sps:$4 sm:$0xff]   ;;  %v11430_v29 = vld [vmem:[%s12515_s23 + $0xa6c] ss:$40 sps:$4 sm:$0xff]  }
 0x1f1   : > { %v11425_v30 = vld [vmem:[%s12515_s23 + $0x568] ss:$40 sps:$4 sm:$0xff]   ;;  %v11433_v33 = vld [vmem:[%s12515_s23 + $0x5bc] ss:$40 sps:$4 sm:$0xff]   ;;  %v11431_v35 = vld [vmem:[%s12515_s23 + $0x5b8] ss:$40 sps:$4 sm:$0xff]  }
 0x1f2   : > { %5839 = vmatpush1.bf16.msra.mxu0 %v11359_v36  ;;  %v11428_v31 = vld [vmem:[%s12515_s23 + $0xa68] ss:$40 sps:$4 sm:$0xff]   ;;  %v11436_v34 = vld [vmem:[%s12515_s23 + $0xabc] ss:$40 sps:$4 sm:$0xff]   ;;  %v11434_v36 = vld [vmem:[%s12515_s23 + $0xab8] ss:$40 sps:$4 sm:$0xff]  }
 0x1f3   : > { %5880 = vmatpush1.bf16.msra.mxu1 %v11362_v37  ;;  %5840 = vmatprep.subr.bf16.mxu0 %v11367_v0  ;;  %v11439_v37 = vld [vmem:[%s12515_s23 + $0x60c] ss:$40 sps:$4 sm:$0xff]   ;;  %v11437_v41 = vld [vmem:[%s12515_s23 + $0x608] ss:$40 sps:$4 sm:$0xff]   ;;  %v11448_v3 = vld [vmem:[%s12515_s23 + $0xb5c] ss:$40 sps:$4 sm:$0xff]  }
 0x1f4   : > { %5881 = vmatprep.subr.bf16.mxu1 %v11370_v42  ;;  %v11442_v24 = vld [vmem:[%s12515_s23 + $0xb0c] ss:$40 sps:$4 sm:$0xff]   ;;  %v11440_v0 = vld [vmem:[%s12515_s23 + $0xb08] ss:$40 sps:$4 sm:$0xff]   ;;  %v11445_v42 = vld [vmem:[%s12515_s23 + $0x65c] ss:$40 sps:$4 sm:$0xff]  }
 0x1f6   : > { %5841 = vmatpush1.bf16.msra.mxu0 %v11365_v44  ;;  %v11443_v44 = vld [vmem:[%s12515_s23 + $0x658] ss:$40 sps:$4 sm:$0xff]  }
 0x1f7   : > { %5882 = vmatpush1.bf16.msra.mxu1 %v11368_v45  ;;  %5842 = vmatprep.subr.bf16.mxu0 %v11373_v47  ;;  %v11446_v45 = vld [vmem:[%s12515_s23 + $0xb58] ss:$40 sps:$4 sm:$0xff]   ;;  %v11451_v47 = vld [vmem:[%s12515_s23 + $0x6ac] ss:$40 sps:$4 sm:$0xff]  }
 0x1f8   : > { %5883 = vmatprep.subr.bf16.mxu1 %v11376_v12  ;;  %v11454_v12 = vld [vmem:[%s12515_s23 + $0xbac] ss:$40 sps:$4 sm:$0xff]  }
 0x1fa   : > { %5843 = vmatpush1.bf16.msra.mxu0 %v11371_v48  ;;  %v11449_v48 = vld [vmem:[%s12515_s23 + $0x6a8] ss:$40 sps:$4 sm:$0xff]  }
 0x1fb   : > { %5884 = vmatpush1.bf16.msra.mxu1 %v11374_v50  ;;  %5844 = vmatprep.subr.bf16.mxu0 %v11379_v16  ;;  %v11452_v50 = vld [vmem:[%s12515_s23 + $0xba8] ss:$40 sps:$4 sm:$0xff]   ;;  %v11457_v16 = vld [vmem:[%s12515_s23 + $0x6fc] ss:$40 sps:$4 sm:$0xff]  }
 0x1fc   : > { %5885 = vmatprep.subr.bf16.mxu1 %v11382_v52  ;;  %v11460_v52 = vld [vmem:[%s12515_s23 + $0xbfc] ss:$40 sps:$4 sm:$0xff]  }
 0x1fe   : > { %5845 = vmatpush1.bf16.msra.mxu0 %v11377_v54 }
 0x1ff   : > { %5886 = vmatpush1.bf16.msra.mxu1 %v11380_v55  ;;  %5846 = vmatprep.subr.bf16.mxu0 %v11385_v56 }
 0x200   : > { %5887 = vmatprep.subr.bf16.mxu1 %v11388_v57 }
 0x202   : > { %5847 = vmatpush1.bf16.msra.mxu0 %v11383_v58 }
 0x203   : > { %5888 = vmatpush1.bf16.msra.mxu1 %v11386_v59  ;;  %5848 = vmatprep.subr.bf16.mxu0 %v11391_v60  ;;  %v11455_v59 = vld [vmem:[%s12515_s23 + $0x6f8] ss:$40 sps:$4 sm:$0xff]  }
 0x204   : > { %5889 = vmatprep.subr.bf16.mxu1 %v11394_v61 }
 0x206   : > { %5849 = vmatpush1.bf16.msra.mxu0 %v11389_v62  ;;  %v404_v62 = vld [vmem:[#allocation2 + $0x10] sm:$0xff] }
 0x207   : > { %5890 = vmatpush1.bf16.msra.mxu1 %v11392_v63  ;;  %5850 = vmatprep.subr.bf16.mxu0 %v11397_v1  ;;  %v405_v63 = vld [vmem:[#allocation2 + $0x18] sm:$0xff] }
 0x208   : > { %5891 = vmatprep.subr.bf16.mxu1 %v11400_v2  ;;  %v11458_v1 = vld [vmem:[%s12515_s23 + $0xbf8] ss:$40 sps:$4 sm:$0xff]  }
 0x20a   : > { %5851 = vmatpush1.bf16.msra.mxu0 %v11395_v4 }
 0x20b   : > { %5892 = vmatpush1.bf16.msra.mxu1 %v11398_v5  ;;  %5852 = vmatprep.subr.bf16.mxu0 %v11403_v6  ;;  %v11466_v6 = vld [vmem:[%s12515_s23 + $0xc4c] ss:$40 sps:$4 sm:$0xff]  }
 0x20c   : > { %5893 = vmatprep.subr.bf16.mxu1 %v11406_v7 }
 0x20e   : > { %5853 = vmatpush1.bf16.msra.mxu0 %v11401_v10 }
 0x20f   : > { %5894 = vmatpush1.bf16.msra.mxu1 %v11404_v11  ;;  %5854 = vmatprep.subr.bf16.mxu0 %v11409_v13  ;;  %v11461_v13 = vld [vmem:[%s12515_s23 + $0x748] ss:$40 sps:$4 sm:$0xff]  }
 0x210   : > { %5895 = vmatprep.subr.bf16.mxu1 %v11412_v46  ;;  %v11464_v46 = vld [vmem:[%s12515_s23 + $0xc48] ss:$40 sps:$4 sm:$0xff]  }
 0x212   : > { %5855 = vmatpush1.bf16.msra.mxu0 %v11407_v14  ;;  %v11469_v14 = vld [vmem:[%s12515_s23 + $0x79c] ss:$40 sps:$4 sm:$0xff]  }
 0x213   : > { %5896 = vmatpush1.bf16.msra.mxu1 %v11410_v15  ;;  %5856 = vmatprep.subr.bf16.mxu0 %v11415_v17  ;;  %v11472_v15 = vld [vmem:[%s12515_s23 + $0xc9c] ss:$40 sps:$4 sm:$0xff]   ;;  %v11467_v17 = vld [vmem:[%s12515_s23 + $0x798] ss:$40 sps:$4 sm:$0xff]  }
 0x214   : > { %5897 = vmatprep.subr.bf16.mxu1 %v11418_v51  ;;  %v11470_v51 = vld [vmem:[%s12515_s23 + $0xc98] ss:$40 sps:$4 sm:$0xff]  }
 0x216   : > { %5857 = vmatpush1.bf16.msra.mxu0 %v11413_v19  ;;  %v11475_v19 = vld [vmem:[%s12515_s23 + $0x7ec] ss:$40 sps:$4 sm:$0xff]  }
 0x217   : > { %5898 = vmatpush1.bf16.msra.mxu1 %v11416_v20  ;;  %5908 = vmatprep.subr.bf16.mxu0 %v11421_v22  ;;  %v11478_v20 = vld [vmem:[%s12515_s23 + $0xcec] ss:$40 sps:$4 sm:$0xff]   ;;  %v11473_v22 = vld [vmem:[%s12515_s23 + $0x7e8] ss:$40 sps:$4 sm:$0xff]  }
 0x218   : > { %5949 = vmatprep.subr.bf16.mxu1 %v11424_v23  ;;  %v11476_v23 = vld [vmem:[%s12515_s23 + $0xce8] ss:$40 sps:$4 sm:$0xff]  }
 0x219   : > { %5859 = vmatmul.mubr.bf16.vlgmr.msra.gmra.mrb[28].mxu0 %v12763_v32 }
 0x21a   : > { %5900 = vmatmul.mubr.bf16.vlgmr.msra.gmra.mrb[28].mxu1 %v12592_v8  ;;  %5909 = vmatpush1.bf16.msra.mxu0 %v11419_v26  ;;  %v11481_v26 = vld [vmem:[%s12515_s23 + $0x83c] ss:$40 sps:$4 sm:$0xff]  }
 0x21b   : > { %5950 = vmatpush1.bf16.msra.mxu1 %v11422_v27  ;;  %5910 = vmatprep.subr.bf16.mxu0 %v11427_v28  ;;  %v11484_v27 = vld [vmem:[%s12515_s23 + $0xd3c] ss:$40 sps:$4 sm:$0xff]   ;;  %v11479_v28 = vld [vmem:[%s12515_s23 + $0x838] ss:$40 sps:$4 sm:$0xff]  }
 0x21c   : > { %5951 = vmatprep.subr.bf16.mxu1 %v11430_v29  ;;  %5940 = vmatprep.mubr.bf16.mxu0 %v12570_v53  ;;  %v11482_v29 = vld [vmem:[%s12515_s23 + $0xd38] ss:$40 sps:$4 sm:$0xff]  }
 0x21d   : > { %5981 = vmatprep.mubr.bf16.mxu1 %v12632_v38 }
 0x21e   : > { %5911 = vmatpush1.bf16.msra.mxu0 %v11425_v30  ;;  %v11487_v30 = vld [vmem:[%s12515_s23 + $0x88c] ss:$40 sps:$4 sm:$0xff]  }
 0x21f   : > { %5952 = vmatpush1.bf16.msra.mxu1 %v11428_v31  ;;  %5912 = vmatprep.subr.bf16.mxu0 %v11433_v33  ;;  %v11490_v31 = vld [vmem:[%s12515_s23 + $0xd8c] ss:$40 sps:$4 sm:$0xff]   ;;  %v11485_v33 = vld [vmem:[%s12515_s23 + $0x888] ss:$40 sps:$4 sm:$0xff]  }
 0x220   : > { %5953 = vmatprep.subr.bf16.mxu1 %v11436_v34  ;;  %v11488_v34 = vld [vmem:[%s12515_s23 + $0xd88] ss:$40 sps:$4 sm:$0xff]  }
 0x222   : > { %5913 = vmatpush1.bf16.msra.mxu0 %v11431_v35  ;;  %v11493_v35 = vld [vmem:[%s12515_s23 + $0x8dc] ss:$40 sps:$4 sm:$0xff]  }
 0x223   : > { %5954 = vmatpush1.bf16.msra.mxu1 %v11434_v36  ;;  %5914 = vmatprep.subr.bf16.mxu0 %v11439_v37  ;;  %v11496_v36 = vld [vmem:[%s12515_s23 + $0xddc] ss:$40 sps:$4 sm:$0xff]   ;;  %v11491_v37 = vld [vmem:[%s12515_s23 + $0x8d8] ss:$40 sps:$4 sm:$0xff]  }
 0x224   : > { %5955 = vmatprep.subr.bf16.mxu1 %v11442_v24  ;;  %v11494_v24 = vld [vmem:[%s12515_s23 + $0xdd8] ss:$40 sps:$4 sm:$0xff]  }
 0x226   : > { %5915 = vmatpush1.bf16.msra.mxu0 %v11437_v41  ;;  %v11499_v41 = vld [vmem:[%s12515_s23 + $0x92c] ss:$40 sps:$4 sm:$0xff]  }
 0x227   : > { %5956 = vmatpush1.bf16.msra.mxu1 %v11440_v0  ;;  %5916 = vmatprep.subr.bf16.mxu0 %v11445_v42  ;;  %v11502_v0 = vld [vmem:[%s12515_s23 + $0xe2c] ss:$40 sps:$4 sm:$0xff]   ;;  %v11497_v42 = vld [vmem:[%s12515_s23 + $0x928] ss:$40 sps:$4 sm:$0xff]  }
 0x228   : > { %5957 = vmatprep.subr.bf16.mxu1 %v11448_v3  ;;  %v11500_v3 = vld [vmem:[%s12515_s23 + $0xe28] ss:$40 sps:$4 sm:$0xff]  }
 0x22a   : > { %5917 = vmatpush1.bf16.msra.mxu0 %v11443_v44  ;;  %v11505_v44 = vld [vmem:[%s12515_s23 + $0x97c] ss:$40 sps:$4 sm:$0xff]  }
 0x22b   : > { %5958 = vmatpush1.bf16.msra.mxu1 %v11446_v45  ;;  %5918 = vmatprep.subr.bf16.mxu0 %v11451_v47  ;;  %v11508_v45 = vld [vmem:[%s12515_s23 + $0xe7c] ss:$40 sps:$4 sm:$0xff]   ;;  %v11503_v47 = vld [vmem:[%s12515_s23 + $0x978] ss:$40 sps:$4 sm:$0xff]  }
 0x22c   : > { %5959 = vmatprep.subr.bf16.mxu1 %v11454_v12  ;;  %v5614_v54 = vpop.f32.mrb[16].mxu0  ;;  %v11506_v12 = vld [vmem:[%s12515_s23 + $0xe78] ss:$40 sps:$4 sm:$0xff]  }
 0x22d   : > { %v5655_v55 = vpop.f32.mrb[16].mxu1  ;;  %v5615_v56 = vadd.f32 %v5614_v54, %v13085_v40  ;;  %v5616_v57 = vpop.f32.mrb[17].mxu0  ;;  %v11463_v40 = vld [vmem:[%s12515_s23 + $0x74c] ss:$40 sps:$4 sm:$0xff]   ;;  %v11517_v54 = vld [vmem:[%s12515_s23 + $0xf1c] ss:$40 sps:$4 sm:$0xff]  }
 0x22e   : > { %v5657_v58 = vpop.f32.mrb[17].mxu1  ;;  %v5617_v60 = vadd.f32 %v5616_v57, %v13089_v43  ;;  %v5618_v61 = vpop.f32.mrb[18].mxu0  ;;  %5919 = vmatpush1.bf16.msra.mxu0 %v11449_v48  ;;  %v11511_v48 = vld [vmem:[%s12515_s23 + $0x9cc] ss:$40 sps:$4 sm:$0xff]   ;;  %v11518_v57 = vld [vmem:[%s12515_s23 + $0x1418] ss:$40 sps:$4 sm:$0xff]  }
 0x22f   : > { %5960 = vmatpush1.bf16.msra.mxu1 %v11452_v50  ;;  %v5659_v2 = vpop.f32.mrb[18].mxu1  ;;  %v5656_v4 = vadd.f32 %v5655_v55, %v5615_v56  ;;  %v5619_v5 = vpop.f32.mrb[19].mxu0  ;;  %5920 = vmatprep.subr.bf16.mxu0 %v11457_v16  ;;  %v11514_v50 = vld [vmem:[%s12515_s23 + $0xecc] ss:$40 sps:$4 sm:$0xff]   ;;  %v11509_v16 = vld [vmem:[%s12515_s23 + $0x9c8] ss:$40 sps:$4 sm:$0xff]  }
 0x230   : > { %5961 = vmatprep.subr.bf16.mxu1 %v11460_v52  ;;  %v5660_v7 = vpop.f32.mrb[19].mxu1  ;;  %v5658_v43 = vadd.f32 %v5657_v58, %v5617_v60  ;;  %v11512_v52 = vld [vmem:[%s12515_s23 + $0xec8] ss:$40 sps:$4 sm:$0xff]   ;;  %v11520_v55 = vld [vmem:[%s12515_s23 + $0x141c] ss:$40 sps:$4 sm:$0xff]  }
 0x231   : > { %v6279_v10 = vadd.f32 %v5656_v4, %v404_v62  ;;  %v11515_v56 = vld [vmem:[%s12515_s23 + $0xf18] ss:$40 sps:$4 sm:$0xff]   ;;  %v11523_v58 = vld [vmem:[%s12515_s23 + $0xf6c] ss:$40 sps:$4 sm:$0xff]   ;;  %v11521_v60 = vld [vmem:[%s12515_s23 + $0xf68] ss:$40 sps:$4 sm:$0xff]  }
 0x232   : > { %v6280_v11 = vadd.f32 %v5658_v43, %v405_v63  ;;  %5921 = vmatpush1.bf16.msra.mxu0 %v11455_v59  ;;  %v11526_v59 = vld [vmem:[%s12515_s23 + $0x146c] ss:$40 sps:$4 sm:$0xff]   ;;  %v11524_v61 = vld [vmem:[%s12515_s23 + $0x1468] ss:$40 sps:$4 sm:$0xff]   ;;  %v11529_v62 = vld [vmem:[%s12515_s23 + $0xfbc] ss:$40 sps:$4 sm:$0xff]  }
 0x233   : > { %5962 = vmatpush1.bf16.msra.mxu1 %v11458_v1  ;;  %6289 = vst [vmem:[#allocation2 + $0x10] sm:$0xff] %v6279_v10  ;;  %5922 = vmatprep.subr.bf16.mxu0 %v11463_v40  ;;  %v11532_v63 = vld [vmem:[%s12515_s23 + $0x14bc] ss:$40 sps:$4 sm:$0xff]   ;;  %v11527_v1 = vld [vmem:[%s12515_s23 + $0xfb8] ss:$40 sps:$4 sm:$0xff]  }
 0x234   : > { %5963 = vmatprep.subr.bf16.mxu1 %v11466_v6  ;;  %6290 = vst [vmem:[#allocation2 + $0x18] sm:$0xff] %v6280_v11  ;;  %v11530_v2 = vld [vmem:[%s12515_s23 + $0x14b8] ss:$40 sps:$4 sm:$0xff]   ;;  %v11535_v4 = vld [vmem:[%s12515_s23 + $0x100c] ss:$40 sps:$4 sm:$0xff]  }
 0x235   : > { %v11538_v5 = vld [vmem:[%s12515_s23 + $0x150c] ss:$40 sps:$4 sm:$0xff]   ;;  %v11533_v40 = vld [vmem:[%s12515_s23 + $0x1008] ss:$40 sps:$4 sm:$0xff]   ;;  %v11541_v7 = vld [vmem:[%s12515_s23 + $0x105c] ss:$40 sps:$4 sm:$0xff]  }
 0x236   : > { %5923 = vmatpush1.bf16.msra.mxu0 %v11461_v13  ;;  %v11536_v6 = vld [vmem:[%s12515_s23 + $0x1508] ss:$40 sps:$4 sm:$0xff]   ;;  %v11544_v43 = vld [vmem:[%s12515_s23 + $0x155c] ss:$40 sps:$4 sm:$0xff]   ;;  %v11539_v10 = vld [vmem:[%s12515_s23 + $0x1058] ss:$40 sps:$4 sm:$0xff]  }
 0x237   : > { %5964 = vmatpush1.bf16.msra.mxu1 %v11464_v46  ;;  %5924 = vmatprep.subr.bf16.mxu0 %v11469_v14  ;;  %v11542_v11 = vld [vmem:[%s12515_s23 + $0x1558] ss:$40 sps:$4 sm:$0xff]   ;;  %v11547_v13 = vld [vmem:[%s12515_s23 + $0x10ac] ss:$40 sps:$4 sm:$0xff]   ;;  %v11545_v14 = vld [vmem:[%s12515_s23 + $0x10a8] ss:$40 sps:$4 sm:$0xff]  }
 0x238   : > { %5965 = vmatprep.subr.bf16.mxu1 %v11472_v15  ;;  %v11550_v46 = vld [vmem:[%s12515_s23 + $0x15ac] ss:$40 sps:$4 sm:$0xff]   ;;  %v11548_v15 = vld [vmem:[%s12515_s23 + $0x15a8] ss:$40 sps:$4 sm:$0xff]  }
 0x23a   : > { %5925 = vmatpush1.bf16.msra.mxu0 %v11467_v17  ;;  %v11553_v17 = vld [vmem:[%s12515_s23 + $0x10fc] ss:$40 sps:$4 sm:$0xff]  }
 0x23b   : > { %5966 = vmatpush1.bf16.msra.mxu1 %v11470_v51  ;;  %5926 = vmatprep.subr.bf16.mxu0 %v11475_v19  ;;  %v11556_v51 = vld [vmem:[%s12515_s23 + $0x15fc] ss:$40 sps:$4 sm:$0xff]  }
 0x23c   : > { %5967 = vmatprep.subr.bf16.mxu1 %v11478_v20 }
 0x23e   : > { %5927 = vmatpush1.bf16.msra.mxu0 %v11473_v22 }
 0x23f   : > { %5968 = vmatpush1.bf16.msra.mxu1 %v11476_v23  ;;  %5928 = vmatprep.subr.bf16.mxu0 %v11481_v26 }
 0x240   : > { %5969 = vmatprep.subr.bf16.mxu1 %v11484_v27 }
 0x242   : > { %5929 = vmatpush1.bf16.msra.mxu0 %v11479_v28 }
 0x243   : > { %5970 = vmatpush1.bf16.msra.mxu1 %v11482_v29  ;;  %5930 = vmatprep.subr.bf16.mxu0 %v11487_v30  ;;  %v11551_v29 = vld [vmem:[%s12515_s23 + $0x10f8] ss:$40 sps:$4 sm:$0xff]  }
 0x244   : > { %5971 = vmatprep.subr.bf16.mxu1 %v11490_v31  ;;  %v11554_v30 = vld [vmem:[%s12515_s23 + $0x15f8] ss:$40 sps:$4 sm:$0xff]  }
 0x246   : > { %5931 = vmatpush1.bf16.msra.mxu0 %v11485_v33 }
 0x247   : > { %5972 = vmatpush1.bf16.msra.mxu1 %v11488_v34  ;;  %5932 = vmatprep.subr.bf16.mxu0 %v11493_v35  ;;  %v11559_v34 = vld [vmem:[%s12515_s23 + $0x114c] ss:$40 sps:$4 sm:$0xff]  }
 0x248   : > { %5973 = vmatprep.subr.bf16.mxu1 %v11496_v36  ;;  %v11562_v35 = vld [vmem:[%s12515_s23 + $0x164c] ss:$40 sps:$4 sm:$0xff]  }
 0x24a   : > { %5933 = vmatpush1.bf16.msra.mxu0 %v11491_v37  ;;  %v11557_v37 = vld [vmem:[%s12515_s23 + $0x1148] ss:$40 sps:$4 sm:$0xff]  }
 0x24b   : > { %5974 = vmatpush1.bf16.msra.mxu1 %v11494_v24  ;;  %5934 = vmatprep.subr.bf16.mxu0 %v11499_v41  ;;  %v11560_v24 = vld [vmem:[%s12515_s23 + $0x1648] ss:$40 sps:$4 sm:$0xff]   ;;  %v11565_v41 = vld [vmem:[%s12515_s23 + $0x119c] ss:$40 sps:$4 sm:$0xff]  }
 0x24c   : > { %5975 = vmatprep.subr.bf16.mxu1 %v11502_v0  ;;  %v11568_v0 = vld [vmem:[%s12515_s23 + $0x169c] ss:$40 sps:$4 sm:$0xff]  }
 0x24e   : > { %5935 = vmatpush1.bf16.msra.mxu0 %v11497_v42  ;;  %v11563_v42 = vld [vmem:[%s12515_s23 + $0x1198] ss:$40 sps:$4 sm:$0xff]  }
 0x24f   : > { %5976 = vmatpush1.bf16.msra.mxu1 %v11500_v3  ;;  %5936 = vmatprep.subr.bf16.mxu0 %v11505_v44  ;;  %v11566_v3 = vld [vmem:[%s12515_s23 + $0x1698] ss:$40 sps:$4 sm:$0xff]   ;;  %v11571_v44 = vld [vmem:[%s12515_s23 + $0x11ec] ss:$40 sps:$4 sm:$0xff]  }
 0x250   : > { %5977 = vmatprep.subr.bf16.mxu1 %v11508_v45  ;;  %v11574_v45 = vld [vmem:[%s12515_s23 + $0x16ec] ss:$40 sps:$4 sm:$0xff]  }
 0x252   : > { %5937 = vmatpush1.bf16.msra.mxu0 %v11503_v47  ;;  %v11569_v47 = vld [vmem:[%s12515_s23 + $0x11e8] ss:$40 sps:$4 sm:$0xff]  }
 0x253   : > { %5978 = vmatpush1.bf16.msra.mxu1 %v11506_v12  ;;  %5938 = vmatprep.subr.bf16.mxu0 %v11511_v48  ;;  %v11572_v12 = vld [vmem:[%s12515_s23 + $0x16e8] ss:$40 sps:$4 sm:$0xff]   ;;  %v11577_v48 = vld [vmem:[%s12515_s23 + $0x123c] ss:$40 sps:$4 sm:$0xff]  }
 0x254   : > { %5979 = vmatprep.subr.bf16.mxu1 %v11514_v50  ;;  %v11580_v50 = vld [vmem:[%s12515_s23 + $0x173c] ss:$40 sps:$4 sm:$0xff]  }
 0x256   : > { %5939 = vmatpush1.bf16.msra.mxu0 %v11509_v16  ;;  %v11575_v16 = vld [vmem:[%s12515_s23 + $0x1238] ss:$40 sps:$4 sm:$0xff]  }
 0x257   : > { %5980 = vmatpush1.bf16.msra.mxu1 %v11512_v52  ;;  %5990 = vmatprep.subr.bf16.mxu0 %v11517_v54  ;;  %v11578_v52 = vld [vmem:[%s12515_s23 + $0x1738] ss:$40 sps:$4 sm:$0xff]   ;;  %v11583_v54 = vld [vmem:[%s12515_s23 + $0x128c] ss:$40 sps:$4 sm:$0xff]  }
 0x258   : > { %6031 = vmatprep.subr.bf16.mxu1 %v11520_v55  ;;  %v11586_v55 = vld [vmem:[%s12515_s23 + $0x178c] ss:$40 sps:$4 sm:$0xff]  }
 0x259   : > { %5941 = vmatmul.mubr.bf16.vlgmr.msra.gmra.mrb[32].mxu0 %v12594_v9 }
 0x25a   : > { %5982 = vmatmul.mubr.bf16.vlgmr.msra.gmra.mrb[32].mxu1 %v12680_v18  ;;  %5991 = vmatpush1.bf16.msra.mxu0 %v11515_v56  ;;  %v11581_v56 = vld [vmem:[%s12515_s23 + $0x1288] ss:$40 sps:$4 sm:$0xff]  }
 0x25b   : > { %6032 = vmatpush1.bf16.msra.mxu1 %v11518_v57  ;;  %5992 = vmatprep.subr.bf16.mxu0 %v11523_v58  ;;  %v11584_v57 = vld [vmem:[%s12515_s23 + $0x1788] ss:$40 sps:$4 sm:$0xff]   ;;  %v11589_v58 = vld [vmem:[%s12515_s23 + $0x12dc] ss:$40 sps:$4 sm:$0xff]  }
 0x25c   : > { %6033 = vmatprep.subr.bf16.mxu1 %v11526_v59  ;;  %6022 = vmatprep.mubr.bf16.mxu0 %v12636_v39  ;;  %v11592_v59 = vld [vmem:[%s12515_s23 + $0x17dc] ss:$40 sps:$4 sm:$0xff]  }
 0x25d   : > { %6063 = vmatprep.mubr.bf16.mxu1 %v12695_v25 }
 0x25e   : > { %5993 = vmatpush1.bf16.msra.mxu0 %v11521_v60  ;;  %v11587_v60 = vld [vmem:[%s12515_s23 + $0x12d8] ss:$40 sps:$4 sm:$0xff]  }
 0x25f   : > { %6034 = vmatpush1.bf16.msra.mxu1 %v11524_v61  ;;  %5994 = vmatprep.subr.bf16.mxu0 %v11529_v62  ;;  %v11590_v61 = vld [vmem:[%s12515_s23 + $0x17d8] ss:$40 sps:$4 sm:$0xff]   ;;  %v11595_v62 = vld [vmem:[%s12515_s23 + $0x132c] ss:$40 sps:$4 sm:$0xff]  }
 0x260   : > { %6035 = vmatprep.subr.bf16.mxu1 %v11532_v63  ;;  %v11598_v63 = vld [vmem:[%s12515_s23 + $0x182c] ss:$40 sps:$4 sm:$0xff]  }
 0x262   : > { %5995 = vmatpush1.bf16.msra.mxu0 %v11527_v1  ;;  %v11593_v1 = vld [vmem:[%s12515_s23 + $0x1328] ss:$40 sps:$4 sm:$0xff]  }
 0x263   : > { %6036 = vmatpush1.bf16.msra.mxu1 %v11530_v2  ;;  %5996 = vmatprep.subr.bf16.mxu0 %v11535_v4  ;;  %v11596_v2 = vld [vmem:[%s12515_s23 + $0x1828] ss:$40 sps:$4 sm:$0xff]   ;;  %v11601_v4 = vld [vmem:[%s12515_s23 + $0x137c] ss:$40 sps:$4 sm:$0xff]  }
 0x264   : > { %6037 = vmatprep.subr.bf16.mxu1 %v11538_v5  ;;  %v11604_v5 = vld [vmem:[%s12515_s23 + $0x187c] ss:$40 sps:$4 sm:$0xff]  }
 0x266   : > { %5997 = vmatpush1.bf16.msra.mxu0 %v11533_v40  ;;  %v11599_v40 = vld [vmem:[%s12515_s23 + $0x1378] ss:$40 sps:$4 sm:$0xff]  }
 0x267   : > { %6038 = vmatpush1.bf16.msra.mxu1 %v11536_v6  ;;  %5998 = vmatprep.subr.bf16.mxu0 %v11541_v7  ;;  %v11602_v6 = vld [vmem:[%s12515_s23 + $0x1878] ss:$40 sps:$4 sm:$0xff]   ;;  %v11607_v7 = vld [vmem:[%s12515_s23 + $0x13cc] ss:$40 sps:$4 sm:$0xff]  }
 0x268   : > { %6039 = vmatprep.subr.bf16.mxu1 %v11544_v43  ;;  %v11610_v43 = vld [vmem:[%s12515_s23 + $0x18cc] ss:$40 sps:$4 sm:$0xff]  }
 0x26a   : > { %5999 = vmatpush1.bf16.msra.mxu0 %v11539_v10  ;;  %v11605_v10 = vld [vmem:[%s12515_s23 + $0x13c8] ss:$40 sps:$4 sm:$0xff]  }
 0x26b   : > { %6040 = vmatpush1.bf16.msra.mxu1 %v11542_v11  ;;  %6000 = vmatprep.subr.bf16.mxu0 %v11547_v13  ;;  %v11608_v11 = vld [vmem:[%s12515_s23 + $0x18c8] ss:$40 sps:$4 sm:$0xff]   ;;  %v11613_v13 = vld [vmem:[%s12515_s23 + $0x24] ss:$40 sps:$4 sm:$0xff]  }
 0x26c   : > { %6041 = vmatprep.subr.bf16.mxu1 %v11550_v46  ;;  %v5696_v19 = vpop.f32.mrb[20].mxu0  ;;  %v11616_v46 = vld [vmem:[%s12515_s23 + $0x524] ss:$40 sps:$4 sm:$0xff]  }
 0x26d   : > { %v5737_v20 = vpop.f32.mrb[20].mxu1  ;;  %v5698_v23 = vpop.f32.mrb[21].mxu0 }
 0x26e   : > { %v13225_v22 = vadd.f32 %v5737_v20, %v5696_v19  ;;  %v5739_v26 = vpop.f32.mrb[21].mxu1  ;;  %v5700_v28 = vpop.f32.mrb[22].mxu0  ;;  %6001 = vmatpush1.bf16.msra.mxu0 %v11545_v14  ;;  %v11611_v14 = vld [vmem:[%s12515_s23 + $0x20] ss:$40 sps:$4 sm:$0xff]   ;;  %v11617_v19 = vld [vmem:[%s12515_s23 + $0x70] ss:$40 sps:$4 sm:$0xff]  }
 0x26f   : > { %v13227_v27 = vadd.f32 %v5739_v26, %v5698_v23  ;;  %6042 = vmatpush1.bf16.msra.mxu1 %v11548_v15  ;;  %v5741_v31 = vpop.f32.mrb[22].mxu1  ;;  %v5701_v33 = vpop.f32.mrb[23].mxu0  ;;  %6002 = vmatprep.subr.bf16.mxu0 %v11553_v17  ;;  %v11614_v15 = vld [vmem:[%s12515_s23 + $0x520] ss:$40 sps:$4 sm:$0xff]   ;;  %v11619_v17 = vld [vmem:[%s12515_s23 + $0x74] ss:$40 sps:$4 sm:$0xff]  }
 0x270   : > { %6043 = vmatprep.subr.bf16.mxu1 %v11556_v51  ;;  %v5742_v36 = vpop.f32.mrb[23].mxu1  ;;  %v11622_v51 = vld [vmem:[%s12515_s23 + $0x574] ss:$40 sps:$4 sm:$0xff]   ;;  %v11620_v20 = vld [vmem:[%s12515_s23 + $0x570] ss:$40 sps:$4 sm:$0xff]  }
 0x271   : > { %v11625_v23 = vld [vmem:[%s12515_s23 + $0xc4] ss:$40 sps:$4 sm:$0xff]   ;;  %v11623_v28 = vld [vmem:[%s12515_s23 + $0xc0] ss:$40 sps:$4 sm:$0xff]   ;;  %v11634_v31 = vld [vmem:[%s12515_s23 + $0x614] ss:$40 sps:$4 sm:$0xff]  }
 0x272   : > { %6003 = vmatpush1.bf16.msra.mxu0 %v11551_v29  ;;  %v11628_v26 = vld [vmem:[%s12515_s23 + $0x5c4] ss:$40 sps:$4 sm:$0xff]   ;;  %v11626_v29 = vld [vmem:[%s12515_s23 + $0x5c0] ss:$40 sps:$4 sm:$0xff]   ;;  %v11629_v33 = vld [vmem:[%s12515_s23 + $0x110] ss:$40 sps:$4 sm:$0xff]  }
 0x273   : > { %6044 = vmatpush1.bf16.msra.mxu1 %v11554_v30  ;;  %6004 = vmatprep.subr.bf16.mxu0 %v11559_v34  ;;  %v11631_v30 = vld [vmem:[%s12515_s23 + $0x114] ss:$40 sps:$4 sm:$0xff]   ;;  %v11640_v34 = vld [vmem:[%s12515_s23 + $0x664] ss:$40 sps:$4 sm:$0xff]   ;;  %v11638_v36 = vld [vmem:[%s12515_s23 + $0x660] ss:$40 sps:$4 sm:$0xff]  }
 0x274   : > { %6045 = vmatprep.subr.bf16.mxu1 %v11562_v35  ;;  %v11635_v35 = vld [vmem:[%s12515_s23 + $0x160] ss:$40 sps:$4 sm:$0xff]  }
 0x276   : > { %6005 = vmatpush1.bf16.msra.mxu0 %v11557_v37  ;;  %v11643_v37 = vld [vmem:[%s12515_s23 + $0x1b4] ss:$40 sps:$4 sm:$0xff]  }
 0x277   : > { %6046 = vmatpush1.bf16.msra.mxu1 %v11560_v24  ;;  %6006 = vmatprep.subr.bf16.mxu0 %v11565_v41  ;;  %v11646_v24 = vld [vmem:[%s12515_s23 + $0x6b4] ss:$40 sps:$4 sm:$0xff]   ;;  %v11641_v41 = vld [vmem:[%s12515_s23 + $0x1b0] ss:$40 sps:$4 sm:$0xff]  }
 0x278   : > { %6047 = vmatprep.subr.bf16.mxu1 %v11568_v0  ;;  %v11644_v0 = vld [vmem:[%s12515_s23 + $0x6b0] ss:$40 sps:$4 sm:$0xff]  }
 0x27a   : > { %6007 = vmatpush1.bf16.msra.mxu0 %v11563_v42  ;;  %v11649_v42 = vld [vmem:[%s12515_s23 + $0x204] ss:$40 sps:$4 sm:$0xff]  }
 0x27b   : > { %6048 = vmatpush1.bf16.msra.mxu1 %v11566_v3  ;;  %6008 = vmatprep.subr.bf16.mxu0 %v11571_v44  ;;  %v11652_v3 = vld [vmem:[%s12515_s23 + $0x704] ss:$40 sps:$4 sm:$0xff]  }
 0x27c   : > { %6049 = vmatprep.subr.bf16.mxu1 %v11574_v45 }
 0x27e   : > { %6009 = vmatpush1.bf16.msra.mxu0 %v11569_v47 }
 0x27f   : > { %6050 = vmatpush1.bf16.msra.mxu1 %v11572_v12  ;;  %6010 = vmatprep.subr.bf16.mxu0 %v11577_v48 }
 0x280   : > { %6051 = vmatprep.subr.bf16.mxu1 %v11580_v50 }
 0x282   : > { %6011 = vmatpush1.bf16.msra.mxu0 %v11575_v16 }
 0x283   : > { %6052 = vmatpush1.bf16.msra.mxu1 %v11578_v52  ;;  %6012 = vmatprep.subr.bf16.mxu0 %v11583_v54  ;;  %v11647_v52 = vld [vmem:[%s12515_s23 + $0x200] ss:$40 sps:$4 sm:$0xff]  }
 0x284   : > { %6053 = vmatprep.subr.bf16.mxu1 %v11586_v55  ;;  %v11650_v54 = vld [vmem:[%s12515_s23 + $0x700] ss:$40 sps:$4 sm:$0xff]  }
 0x286   : > { %6013 = vmatpush1.bf16.msra.mxu0 %v11581_v56 }
 0x287   : > { %6054 = vmatpush1.bf16.msra.mxu1 %v11584_v57  ;;  %6014 = vmatprep.subr.bf16.mxu0 %v11589_v58  ;;  %v11658_v58 = vld [vmem:[%s12515_s23 + $0x754] ss:$40 sps:$4 sm:$0xff]  }
 0x288   : > { %6055 = vmatprep.subr.bf16.mxu1 %v11592_v59 }
 0x28a   : > { %6015 = vmatpush1.bf16.msra.mxu0 %v11587_v60  ;;  %v11653_v60 = vld [vmem:[%s12515_s23 + $0x250] ss:$40 sps:$4 sm:$0xff]  }
 0x28b   : > { %6056 = vmatpush1.bf16.msra.mxu1 %v11590_v61  ;;  %6016 = vmatprep.subr.bf16.mxu0 %v11595_v62  ;;  %v11656_v61 = vld [vmem:[%s12515_s23 + $0x750] ss:$40 sps:$4 sm:$0xff]   ;;  %v11661_v62 = vld [vmem:[%s12515_s23 + $0x2a4] ss:$40 sps:$4 sm:$0xff]  }
 0x28c   : > { %6057 = vmatprep.subr.bf16.mxu1 %v11598_v63  ;;  %v11664_v63 = vld [vmem:[%s12515_s23 + $0x7a4] ss:$40 sps:$4 sm:$0xff]  }
 0x28e   : > { %6017 = vmatpush1.bf16.msra.mxu0 %v11593_v1  ;;  %v11659_v1 = vld [vmem:[%s12515_s23 + $0x2a0] ss:$40 sps:$4 sm:$0xff]  }
 0x28f   : > { %6058 = vmatpush1.bf16.msra.mxu1 %v11596_v2  ;;  %6018 = vmatprep.subr.bf16.mxu0 %v11601_v4  ;;  %v11662_v2 = vld [vmem:[%s12515_s23 + $0x7a0] ss:$40 sps:$4 sm:$0xff]   ;;  %v11667_v4 = vld [vmem:[%s12515_s23 + $0x2f4] ss:$40 sps:$4 sm:$0xff]  }
 0x290   : > { %6059 = vmatprep.subr.bf16.mxu1 %v11604_v5  ;;  %v11670_v5 = vld [vmem:[%s12515_s23 + $0x7f4] ss:$40 sps:$4 sm:$0xff]  }
 0x292   : > { %6019 = vmatpush1.bf16.msra.mxu0 %v11599_v40  ;;  %v11665_v40 = vld [vmem:[%s12515_s23 + $0x2f0] ss:$40 sps:$4 sm:$0xff]  }
 0x293   : > { %6060 = vmatpush1.bf16.msra.mxu1 %v11602_v6  ;;  %6020 = vmatprep.subr.bf16.mxu0 %v11607_v7  ;;  %v11668_v6 = vld [vmem:[%s12515_s23 + $0x7f0] ss:$40 sps:$4 sm:$0xff]   ;;  %v11673_v7 = vld [vmem:[%s12515_s23 + $0x344] ss:$40 sps:$4 sm:$0xff]  }
 0x294   : > { %6061 = vmatprep.subr.bf16.mxu1 %v11610_v43  ;;  %v11676_v43 = vld [vmem:[%s12515_s23 + $0x844] ss:$40 sps:$4 sm:$0xff]  }
 0x296   : > { %6021 = vmatpush1.bf16.msra.mxu0 %v11605_v10  ;;  %v11671_v10 = vld [vmem:[%s12515_s23 + $0x340] ss:$40 sps:$4 sm:$0xff]  }
 0x297   : > { %6062 = vmatpush1.bf16.msra.mxu1 %v11608_v11  ;;  %6072 = vmatprep.subr.bf16.mxu0 %v11613_v13  ;;  %v11674_v11 = vld [vmem:[%s12515_s23 + $0x840] ss:$40 sps:$4 sm:$0xff]   ;;  %v11679_v13 = vld [vmem:[%s12515_s23 + $0x394] ss:$40 sps:$4 sm:$0xff]  }
 0x298   : > { %6113 = vmatprep.subr.bf16.mxu1 %v11616_v46  ;;  %v11682_v46 = vld [vmem:[%s12515_s23 + $0x894] ss:$40 sps:$4 sm:$0xff]  }
 0x299   : > { %6023 = vmatmul.mubr.bf16.vlgmr.msra.gmra.mrb[36].mxu0 %v12686_v21 }
 0x29a   : > { %6064 = vmatmul.mubr.bf16.vlgmr.msra.gmra.mrb[36].mxu1 %v12763_v32  ;;  %6073 = vmatpush1.bf16.msra.mxu0 %v11611_v14  ;;  %v11677_v14 = vld [vmem:[%s12515_s23 + $0x390] ss:$40 sps:$4 sm:$0xff]  }
 0x29b   : > { %6114 = vmatpush1.bf16.msra.mxu1 %v11614_v15  ;;  %6074 = vmatprep.subr.bf16.mxu0 %v11619_v17  ;;  %v11680_v15 = vld [vmem:[%s12515_s23 + $0x890] ss:$40 sps:$4 sm:$0xff]   ;;  %v11685_v17 = vld [vmem:[%s12515_s23 + $0x3e4] ss:$40 sps:$4 sm:$0xff]  }
 0x29c   : > { %6115 = vmatprep.subr.bf16.mxu1 %v11622_v51  ;;  %6104 = vmatprep.mubr.bf16.mxu0 %v12565_v49  ;;  %v11632_v49 = vld [vmem:[%s12515_s23 + $0x610] ss:$40 sps:$4 sm:$0xff]   ;;  %v11688_v51 = vld [vmem:[%s12515_s23 + $0x8e4] ss:$40 sps:$4 sm:$0xff]  }
 0x29d   : > { %6145 = vmatprep.mubr.bf16.mxu1 %v12570_v53  ;;  %v11637_v53 = vld [vmem:[%s12515_s23 + $0x164] ss:$40 sps:$4 sm:$0xff]  }
 0x29e   : > { %6075 = vmatpush1.bf16.msra.mxu0 %v11617_v19  ;;  %v11683_v19 = vld [vmem:[%s12515_s23 + $0x3e0] ss:$40 sps:$4 sm:$0xff]  }
 0x29f   : > { %6116 = vmatpush1.bf16.msra.mxu1 %v11620_v20  ;;  %6076 = vmatprep.subr.bf16.mxu0 %v11625_v23  ;;  %v11686_v20 = vld [vmem:[%s12515_s23 + $0x8e0] ss:$40 sps:$4 sm:$0xff]   ;;  %v11691_v23 = vld [vmem:[%s12515_s23 + $0x434] ss:$40 sps:$4 sm:$0xff]  }
 0x2a0   : > { %6117 = vmatprep.subr.bf16.mxu1 %v11628_v26  ;;  %v11694_v26 = vld [vmem:[%s12515_s23 + $0x934] ss:$40 sps:$4 sm:$0xff]  }
 0x2a2   : > { %6077 = vmatpush1.bf16.msra.mxu0 %v11623_v28  ;;  %v11689_v28 = vld [vmem:[%s12515_s23 + $0x430] ss:$40 sps:$4 sm:$0xff]  }
 0x2a3   : > { %6118 = vmatpush1.bf16.msra.mxu1 %v11626_v29  ;;  %6078 = vmatprep.subr.bf16.mxu0 %v11631_v30  ;;  %v11692_v29 = vld [vmem:[%s12515_s23 + $0x930] ss:$40 sps:$4 sm:$0xff]   ;;  %v11697_v30 = vld [vmem:[%s12515_s23 + $0x484] ss:$40 sps:$4 sm:$0xff]  }
 0x2a4   : > { %6119 = vmatprep.subr.bf16.mxu1 %v11634_v31  ;;  %v11700_v31 = vld [vmem:[%s12515_s23 + $0x984] ss:$40 sps:$4 sm:$0xff]  }
 0x2a6   : > { %6079 = vmatpush1.bf16.msra.mxu0 %v11629_v33  ;;  %v11695_v33 = vld [vmem:[%s12515_s23 + $0x480] ss:$40 sps:$4 sm:$0xff]  }
 0x2a7   : > { %6120 = vmatpush1.bf16.msra.mxu1 %v11632_v49  ;;  %6080 = vmatprep.subr.bf16.mxu0 %v11637_v53  ;;  %v11698_v49 = vld [vmem:[%s12515_s23 + $0x980] ss:$40 sps:$4 sm:$0xff]   ;;  %v11703_v53 = vld [vmem:[%s12515_s23 + $0x4d4] ss:$40 sps:$4 sm:$0xff]  }
 0x2a8   : > { %6121 = vmatprep.subr.bf16.mxu1 %v11640_v34  ;;  %v11706_v34 = vld [vmem:[%s12515_s23 + $0x9d4] ss:$40 sps:$4 sm:$0xff]  }
 0x2aa   : > { %6081 = vmatpush1.bf16.msra.mxu0 %v11635_v35  ;;  %v11701_v35 = vld [vmem:[%s12515_s23 + $0x4d0] ss:$40 sps:$4 sm:$0xff]  }
 0x2ab   : > { %6122 = vmatpush1.bf16.msra.mxu1 %v11638_v36  ;;  %6082 = vmatprep.subr.bf16.mxu0 %v11643_v37  ;;  %v11704_v36 = vld [vmem:[%s12515_s23 + $0x9d0] ss:$40 sps:$4 sm:$0xff]   ;;  %v11709_v37 = vld [vmem:[%s12515_s23 + $0xa24] ss:$40 sps:$4 sm:$0xff]  }
 0x2ac   : > { %6123 = vmatprep.subr.bf16.mxu1 %v11646_v24  ;;  %v5778_v44 = vpop.f32.mrb[24].mxu0  ;;  %v11712_v24 = vld [vmem:[%s12515_s23 + $0xf24] ss:$40 sps:$4 sm:$0xff]  }
 0x2ad   : > { %v5819_v45 = vpop.f32.mrb[24].mxu1  ;;  %v5779_v47 = vadd.f32 %v5778_v44, %v13225_v22  ;;  %v5780_v12 = vpop.f32.mrb[25].mxu0  ;;  %v11655_v22 = vld [vmem:[%s12515_s23 + $0x254] ss:$40 sps:$4 sm:$0xff]   ;;  %v11713_v44 = vld [vmem:[%s12515_s23 + $0xa70] ss:$40 sps:$4 sm:$0xff]  }
 0x2ae   : > { %v5821_v48 = vpop.f32.mrb[25].mxu1  ;;  %v5781_v50 = vadd.f32 %v5780_v12, %v13227_v27  ;;  %v5782_v16 = vpop.f32.mrb[26].mxu0  ;;  %6083 = vmatpush1.bf16.msra.mxu0 %v11641_v41  ;;  %v11707_v41 = vld [vmem:[%s12515_s23 + $0xa20] ss:$40 sps:$4 sm:$0xff]   ;;  %v11724_v12 = vld [vmem:[%s12515_s23 + $0xfc4] ss:$40 sps:$4 sm:$0xff]  }
 0x2af   : > { %6124 = vmatpush1.bf16.msra.mxu1 %v11644_v0  ;;  %v5823_v55 = vpop.f32.mrb[26].mxu1  ;;  %v13301_v56 = vadd.f32 %v5819_v45, %v5779_v47  ;;  %v5783_v57 = vpop.f32.mrb[27].mxu0  ;;  %6084 = vmatprep.subr.bf16.mxu0 %v11649_v42  ;;  %v11710_v0 = vld [vmem:[%s12515_s23 + $0xf20] ss:$40 sps:$4 sm:$0xff]   ;;  %v11715_v42 = vld [vmem:[%s12515_s23 + $0xa74] ss:$40 sps:$4 sm:$0xff]  }
 0x2b0   : > { %6125 = vmatprep.subr.bf16.mxu1 %v11652_v3  ;;  %v5824_v27 = vpop.f32.mrb[27].mxu1  ;;  %v13305_v59 = vadd.f32 %v5821_v48, %v5781_v50  ;;  %v11718_v3 = vld [vmem:[%s12515_s23 + $0xf74] ss:$40 sps:$4 sm:$0xff]   ;;  %v11716_v45 = vld [vmem:[%s12515_s23 + $0xf70] ss:$40 sps:$4 sm:$0xff]  }
 0x2b1   : > { %v11721_v47 = vld [vmem:[%s12515_s23 + $0xac4] ss:$40 sps:$4 sm:$0xff]   ;;  %v11727_v48 = vld [vmem:[%s12515_s23 + $0xb14] ss:$40 sps:$4 sm:$0xff]   ;;  %v11725_v16 = vld [vmem:[%s12515_s23 + $0xb10] ss:$40 sps:$4 sm:$0xff]  }
 0x2b2   : > { %6085 = vmatpush1.bf16.msra.mxu0 %v11647_v52  ;;  %v11730_v50 = vld [vmem:[%s12515_s23 + $0x1014] ss:$40 sps:$4 sm:$0xff]   ;;  %v11736_v52 = vld [vmem:[%s12515_s23 + $0x1064] ss:$40 sps:$4 sm:$0xff]   ;;  %v11734_v55 = vld [vmem:[%s12515_s23 + $0x1060] ss:$40 sps:$4 sm:$0xff]  }
 0x2b3   : > { %6126 = vmatpush1.bf16.msra.mxu1 %v11650_v54  ;;  %6086 = vmatprep.subr.bf16.mxu0 %v11655_v22  ;;  %v11731_v54 = vld [vmem:[%s12515_s23 + $0xb60] ss:$40 sps:$4 sm:$0xff]   ;;  %v11739_v57 = vld [vmem:[%s12515_s23 + $0xbb4] ss:$40 sps:$4 sm:$0xff]   ;;  %v11740_v27 = vld [vmem:[%s12515_s23 + $0x10b0] ss:$40 sps:$4 sm:$0xff]  }
 0x2b4   : > { %6127 = vmatprep.subr.bf16.mxu1 %v11658_v58  ;;  %v11742_v22 = vld [vmem:[%s12515_s23 + $0x10b4] ss:$40 sps:$4 sm:$0xff]   ;;  %v11737_v58 = vld [vmem:[%s12515_s23 + $0xbb0] ss:$40 sps:$4 sm:$0xff]  }
 0x2b6   : > { %6087 = vmatpush1.bf16.msra.mxu0 %v11653_v60  ;;  %v11745_v60 = vld [vmem:[%s12515_s23 + $0xc04] ss:$40 sps:$4 sm:$0xff]  }
 0x2b7   : > { %6128 = vmatpush1.bf16.msra.mxu1 %v11656_v61  ;;  %6088 = vmatprep.subr.bf16.mxu0 %v11661_v62  ;;  %v11748_v61 = vld [vmem:[%s12515_s23 + $0x1104] ss:$40 sps:$4 sm:$0xff]  }
 0x2b8   : > { %6129 = vmatprep.subr.bf16.mxu1 %v11664_v63  ;;  %v406_v62 = vld [vmem:[#allocation2 + $0x20] sm:$0xff] }
 0x2ba   : > { %6089 = vmatpush1.bf16.msra.mxu0 %v11659_v1 }
 0x2bb   : > { %6130 = vmatpush1.bf16.msra.mxu1 %v11662_v2  ;;  %6090 = vmatprep.subr.bf16.mxu0 %v11667_v4  ;;  %v407_v4 = vld [vmem:[#allocation2 + $0x28] sm:$0xff] }
 0x2bc   : > { %6131 = vmatprep.subr.bf16.mxu1 %v11670_v5 }
 0x2be   : > { %6091 = vmatpush1.bf16.msra.mxu0 %v11665_v40 }
 0x2bf   : > { %6132 = vmatpush1.bf16.msra.mxu1 %v11668_v6  ;;  %6092 = vmatprep.subr.bf16.mxu0 %v11673_v7 }
 0x2c0   : > { %6133 = vmatprep.subr.bf16.mxu1 %v11676_v43  ;;  %v11743_v43 = vld [vmem:[%s12515_s23 + $0xc00] ss:$40 sps:$4 sm:$0xff]  }
 0x2c2   : > { %6093 = vmatpush1.bf16.msra.mxu0 %v11671_v10  ;;  %v11746_v10 = vld [vmem:[%s12515_s23 + $0x1100] ss:$40 sps:$4 sm:$0xff]  }
 0x2c3   : > { %6134 = vmatpush1.bf16.msra.mxu1 %v11674_v11  ;;  %6094 = vmatprep.subr.bf16.mxu0 %v11679_v13 }
 0x2c4   : > { %6135 = vmatprep.subr.bf16.mxu1 %v11682_v46 }
 0x2c6   : > { %6095 = vmatpush1.bf16.msra.mxu0 %v11677_v14  ;;  %v11754_v14 = vld [vmem:[%s12515_s23 + $0x1154] ss:$40 sps:$4 sm:$0xff]  }
 0x2c7   : > { %6136 = vmatpush1.bf16.msra.mxu1 %v11680_v15  ;;  %6096 = vmatprep.subr.bf16.mxu0 %v11685_v17  ;;  %v11749_v17 = vld [vmem:[%s12515_s23 + $0xc50] ss:$40 sps:$4 sm:$0xff]  }
 0x2c8   : > { %6137 = vmatprep.subr.bf16.mxu1 %v11688_v51  ;;  %v11752_v51 = vld [vmem:[%s12515_s23 + $0x1150] ss:$40 sps:$4 sm:$0xff]  }
 0x2ca   : > { %6097 = vmatpush1.bf16.msra.mxu0 %v11683_v19  ;;  %v11757_v19 = vld [vmem:[%s12515_s23 + $0xca4] ss:$40 sps:$4 sm:$0xff]  }
 0x2cb   : > { %6138 = vmatpush1.bf16.msra.mxu1 %v11686_v20  ;;  %6098 = vmatprep.subr.bf16.mxu0 %v11691_v23  ;;  %v11760_v20 = vld [vmem:[%s12515_s23 + $0x11a4] ss:$40 sps:$4 sm:$0xff]   ;;  %v11755_v23 = vld [vmem:[%s12515_s23 + $0xca0] ss:$40 sps:$4 sm:$0xff]  }
 0x2cc   : > { %6139 = vmatprep.subr.bf16.mxu1 %v11694_v26  ;;  %v11758_v26 = vld [vmem:[%s12515_s23 + $0x11a0] ss:$40 sps:$4 sm:$0xff]  }
 0x2ce   : > { %6099 = vmatpush1.bf16.msra.mxu0 %v11689_v28  ;;  %v11763_v28 = vld [vmem:[%s12515_s23 + $0xcf4] ss:$40 sps:$4 sm:$0xff]  }
 0x2cf   : > { %6140 = vmatpush1.bf16.msra.mxu1 %v11692_v29  ;;  %6100 = vmatprep.subr.bf16.mxu0 %v11697_v30  ;;  %v11766_v29 = vld [vmem:[%s12515_s23 + $0x11f4] ss:$40 sps:$4 sm:$0xff]   ;;  %v11761_v30 = vld [vmem:[%s12515_s23 + $0xcf0] ss:$40 sps:$4 sm:$0xff]  }
 0x2d0   : > { %6141 = vmatprep.subr.bf16.mxu1 %v11700_v31  ;;  %v11764_v31 = vld [vmem:[%s12515_s23 + $0x11f0] ss:$40 sps:$4 sm:$0xff]  }
 0x2d2   : > { %6101 = vmatpush1.bf16.msra.mxu0 %v11695_v33  ;;  %v11769_v33 = vld [vmem:[%s12515_s23 + $0xd44] ss:$40 sps:$4 sm:$0xff]  }
 0x2d3   : > { %6142 = vmatpush1.bf16.msra.mxu1 %v11698_v49  ;;  %6102 = vmatprep.subr.bf16.mxu0 %v11703_v53  ;;  %v11772_v49 = vld [vmem:[%s12515_s23 + $0x1244] ss:$40 sps:$4 sm:$0xff]   ;;  %v11767_v53 = vld [vmem:[%s12515_s23 + $0xd40] ss:$40 sps:$4 sm:$0xff]  }
 0x2d4   : > { %6143 = vmatprep.subr.bf16.mxu1 %v11706_v34  ;;  %v11770_v34 = vld [vmem:[%s12515_s23 + $0x1240] ss:$40 sps:$4 sm:$0xff]  }
 0x2d6   : > { %6103 = vmatpush1.bf16.msra.mxu0 %v11701_v35  ;;  %v11775_v35 = vld [vmem:[%s12515_s23 + $0xd94] ss:$40 sps:$4 sm:$0xff]  }
 0x2d7   : > { %6144 = vmatpush1.bf16.msra.mxu1 %v11704_v36  ;;  %6154 = vmatprep.subr.bf16.mxu0 %v11709_v37  ;;  %v11778_v36 = vld [vmem:[%s12515_s23 + $0x1294] ss:$40 sps:$4 sm:$0xff]   ;;  %v11773_v37 = vld [vmem:[%s12515_s23 + $0xd90] ss:$40 sps:$4 sm:$0xff]  }
 0x2d8   : > { %6195 = vmatprep.subr.bf16.mxu1 %v11712_v24  ;;  %v11776_v24 = vld [vmem:[%s12515_s23 + $0x1290] ss:$40 sps:$4 sm:$0xff]  }
 0x2d9   : > { %6105 = vmatmul.mubr.bf16.vlgmr.msra.gmra.mrb[40].mxu0 %v12592_v8  ;;  %v11719_v8 = vld [vmem:[%s12515_s23 + $0xac0] ss:$40 sps:$4 sm:$0xff]  }
 0x2da   : > { %6146 = vmatmul.mubr.bf16.vlgmr.msra.gmra.mrb[40].mxu1 %v12594_v9  ;;  %6155 = vmatpush1.bf16.msra.mxu0 %v11707_v41  ;;  %v11722_v9 = vld [vmem:[%s12515_s23 + $0xfc0] ss:$40 sps:$4 sm:$0xff]   ;;  %v11781_v41 = vld [vmem:[%s12515_s23 + $0xde4] ss:$40 sps:$4 sm:$0xff]  }
 0x2db   : > { %6196 = vmatpush1.bf16.msra.mxu1 %v11710_v0  ;;  %6156 = vmatprep.subr.bf16.mxu0 %v11715_v42  ;;  %v11784_v0 = vld [vmem:[%s12515_s23 + $0x12e4] ss:$40 sps:$4 sm:$0xff]   ;;  %v11779_v42 = vld [vmem:[%s12515_s23 + $0xde0] ss:$40 sps:$4 sm:$0xff]  }
 0x2dc   : > { %6197 = vmatprep.subr.bf16.mxu1 %v11718_v3  ;;  %6186 = vmatprep.mubr.bf16.mxu0 %v12632_v38  ;;  %v11728_v38 = vld [vmem:[%s12515_s23 + $0x1010] ss:$40 sps:$4 sm:$0xff]   ;;  %v11782_v3 = vld [vmem:[%s12515_s23 + $0x12e0] ss:$40 sps:$4 sm:$0xff]  }
 0x2dd   : > { %6227 = vmatprep.mubr.bf16.mxu1 %v12636_v39  ;;  %v11733_v39 = vld [vmem:[%s12515_s23 + $0xb64] ss:$40 sps:$4 sm:$0xff]  }
 0x2de   : > { %6157 = vmatpush1.bf16.msra.mxu0 %v11713_v44  ;;  %v11787_v44 = vld [vmem:[%s12515_s23 + $0xe34] ss:$40 sps:$4 sm:$0xff]  }
 0x2df   : > { %6198 = vmatpush1.bf16.msra.mxu1 %v11716_v45  ;;  %6158 = vmatprep.subr.bf16.mxu0 %v11721_v47  ;;  %v11790_v45 = vld [vmem:[%s12515_s23 + $0x1334] ss:$40 sps:$4 sm:$0xff]   ;;  %v11785_v47 = vld [vmem:[%s12515_s23 + $0xe30] ss:$40 sps:$4 sm:$0xff]  }
 0x2e0   : > { %6199 = vmatprep.subr.bf16.mxu1 %v11724_v12  ;;  %v11788_v12 = vld [vmem:[%s12515_s23 + $0x1330] ss:$40 sps:$4 sm:$0xff]  }
 0x2e2   : > { %6159 = vmatpush1.bf16.msra.mxu0 %v11719_v8  ;;  %v11793_v8 = vld [vmem:[%s12515_s23 + $0xe84] ss:$40 sps:$4 sm:$0xff]  }
 0x2e3   : > { %6200 = vmatpush1.bf16.msra.mxu1 %v11722_v9  ;;  %6160 = vmatprep.subr.bf16.mxu0 %v11727_v48  ;;  %v11796_v9 = vld [vmem:[%s12515_s23 + $0x1384] ss:$40 sps:$4 sm:$0xff]   ;;  %v11791_v48 = vld [vmem:[%s12515_s23 + $0xe80] ss:$40 sps:$4 sm:$0xff]  }
 0x2e4   : > { %6201 = vmatprep.subr.bf16.mxu1 %v11730_v50  ;;  %v11794_v50 = vld [vmem:[%s12515_s23 + $0x1380] ss:$40 sps:$4 sm:$0xff]  }
 0x2e6   : > { %6161 = vmatpush1.bf16.msra.mxu0 %v11725_v16  ;;  %v11799_v16 = vld [vmem:[%s12515_s23 + $0xed4] ss:$40 sps:$4 sm:$0xff]  }
 0x2e7   : > { %6202 = vmatpush1.bf16.msra.mxu1 %v11728_v38  ;;  %6162 = vmatprep.subr.bf16.mxu0 %v11733_v39  ;;  %v11802_v38 = vld [vmem:[%s12515_s23 + $0x13d4] ss:$40 sps:$4 sm:$0xff]   ;;  %v11797_v39 = vld [vmem:[%s12515_s23 + $0xed0] ss:$40 sps:$4 sm:$0xff]  }
 0x2e8   : > { %6203 = vmatprep.subr.bf16.mxu1 %v11736_v52  ;;  %v11800_v52 = vld [vmem:[%s12515_s23 + $0x13d0] ss:$40 sps:$4 sm:$0xff]  }
 0x2ea   : > { %6163 = vmatpush1.bf16.msra.mxu0 %v11731_v54  ;;  %v11805_v54 = vld [vmem:[%s12515_s23 + $0x1424] ss:$40 sps:$4 sm:$0xff]  }
 0x2eb   : > { %6204 = vmatpush1.bf16.msra.mxu1 %v11734_v55  ;;  %6164 = vmatprep.subr.bf16.mxu0 %v11739_v57  ;;  %v11803_v55 = vld [vmem:[%s12515_s23 + $0x1420] ss:$40 sps:$4 sm:$0xff]   ;;  %v11808_v57 = vld [vmem:[%s12515_s23 + $0x1474] ss:$40 sps:$4 sm:$0xff]  }
 0x2ec   : > { %6205 = vmatprep.subr.bf16.mxu1 %v11742_v22  ;;  %v5860_v63 = vpop.f32.mrb[28].mxu0  ;;  %v11806_v22 = vld [vmem:[%s12515_s23 + $0x1470] ss:$40 sps:$4 sm:$0xff]  }
 0x2ed   : > { %v13371_v1 = vpop.f32.mrb[28].mxu1  ;;  %v5861_v2 = vadd.f32 %v5860_v63, %v13301_v56  ;;  %v5862_v5 = vpop.f32.mrb[29].mxu0  ;;  %v11751_v56 = vld [vmem:[%s12515_s23 + $0xc54] ss:$40 sps:$4 sm:$0xff]   ;;  %v11818_v63 = vld [vmem:[%s12515_s23 + $0x15b0] ss:$40 sps:$4 sm:$0xff]  }
 0x2ee   : > { %v13374_v40 = vpop.f32.mrb[29].mxu1  ;;  %v5863_v6 = vadd.f32 %v5862_v5, %v13305_v59  ;;  %v5864_v7 = vpop.f32.mrb[30].mxu0  ;;  %6165 = vmatpush1.bf16.msra.mxu0 %v11737_v58  ;;  %v11811_v58 = vld [vmem:[%s12515_s23 + $0x14c4] ss:$40 sps:$4 sm:$0xff]  }
 0x2ef   : > { %6206 = vmatpush1.bf16.msra.mxu1 %v11740_v27  ;;  %v5905_v11 = vpop.f32.mrb[30].mxu1  ;;  %v6281_v13 = vadd.f32 %v5861_v2, %v406_v62  ;;  %v5865_v46 = vpop.f32.mrb[31].mxu0  ;;  %6166 = vmatprep.subr.bf16.mxu0 %v11745_v60  ;;  %v11809_v27 = vld [vmem:[%s12515_s23 + $0x14c0] ss:$40 sps:$4 sm:$0xff]   ;;  %v11814_v60 = vld [vmem:[%s12515_s23 + $0x1514] ss:$40 sps:$4 sm:$0xff]  }
 0x2f0   : > { %6207 = vmatprep.subr.bf16.mxu1 %v11748_v61  ;;  %v5906_v15 = vpop.f32.mrb[31].mxu1  ;;  %v6282_v59 = vadd.f32 %v5863_v6, %v407_v4  ;;  %v11812_v61 = vld [vmem:[%s12515_s23 + $0x1510] ss:$40 sps:$4 sm:$0xff]   ;;  %v11820_v62 = vld [vmem:[%s12515_s23 + $0x15b4] ss:$40 sps:$4 sm:$0xff]  }
 0x2f1   : > { %6291 = vst [vmem:[#allocation2 + $0x20] sm:$0xff] %v6281_v13  ;;  %v11821_v11 = vld [vmem:[%s12515_s23 + $0x1600] ss:$40 sps:$4 sm:$0xff]  }
 0x2f2   : > { %6292 = vst [vmem:[#allocation2 + $0x28] sm:$0xff] %v6282_v59  ;;  %6167 = vmatpush1.bf16.msra.mxu0 %v11743_v43  ;;  %v11824_v59 = vld [vmem:[%s12515_s23 + $0x1650] ss:$40 sps:$4 sm:$0xff]  }
 0x2f3   : > { %6208 = vmatpush1.bf16.msra.mxu1 %v11746_v10  ;;  %6168 = vmatprep.subr.bf16.mxu0 %v11751_v56 }
 0x2f4   : > { %6209 = vmatprep.subr.bf16.mxu1 %v11754_v14  ;;  %v11826_v14 = vld [vmem:[%s12515_s23 + $0x1654] ss:$40 sps:$4 sm:$0xff]  }
 0x2f6   : > { %6169 = vmatpush1.bf16.msra.mxu0 %v11749_v17  ;;  %v11827_v17 = vld [vmem:[%s12515_s23 + $0x16a0] ss:$40 sps:$4 sm:$0xff]  }
 0x2f7   : > { %6210 = vmatpush1.bf16.msra.mxu1 %v11752_v51  ;;  %6170 = vmatprep.subr.bf16.mxu0 %v11757_v19  ;;  %v11832_v51 = vld [vmem:[%s12515_s23 + $0x16f4] ss:$40 sps:$4 sm:$0xff]   ;;  %v11830_v19 = vld [vmem:[%s12515_s23 + $0x16f0] ss:$40 sps:$4 sm:$0xff]  }
 0x2f8   : > { %6211 = vmatprep.subr.bf16.mxu1 %v11760_v20  ;;  %v11835_v20 = vld [vmem:[%s12515_s23 + $0x1744] ss:$40 sps:$4 sm:$0xff]  }
 0x2fa   : > { %6171 = vmatpush1.bf16.msra.mxu0 %v11755_v23  ;;  %v11833_v23 = vld [vmem:[%s12515_s23 + $0x1740] ss:$40 sps:$4 sm:$0xff]  }
 0x2fb   : > { %6212 = vmatpush1.bf16.msra.mxu1 %v11758_v26  ;;  %6172 = vmatprep.subr.bf16.mxu0 %v11763_v28  ;;  %v11838_v26 = vld [vmem:[%s12515_s23 + $0x1794] ss:$40 sps:$4 sm:$0xff]   ;;  %v11836_v28 = vld [vmem:[%s12515_s23 + $0x1790] ss:$40 sps:$4 sm:$0xff]  }
 0x2fc   : > { %6213 = vmatprep.subr.bf16.mxu1 %v11766_v29  ;;  %v11841_v29 = vld [vmem:[%s12515_s23 + $0x17e4] ss:$40 sps:$4 sm:$0xff]  }
 0x2fe   : > { %6173 = vmatpush1.bf16.msra.mxu0 %v11761_v30  ;;  %v11839_v30 = vld [vmem:[%s12515_s23 + $0x17e0] ss:$40 sps:$4 sm:$0xff]  }
 0x2ff   : > { %6214 = vmatpush1.bf16.msra.mxu1 %v11764_v31  ;;  %6174 = vmatprep.subr.bf16.mxu0 %v11769_v33  ;;  %v11844_v31 = vld [vmem:[%s12515_s23 + $0x1834] ss:$40 sps:$4 sm:$0xff]   ;;  %v11842_v33 = vld [vmem:[%s12515_s23 + $0x1830] ss:$40 sps:$4 sm:$0xff]  }
 0x300   : > { %6215 = vmatprep.subr.bf16.mxu1 %v11772_v49  ;;  %v11847_v49 = vld [vmem:[%s12515_s23 + $0x1884] ss:$40 sps:$4 sm:$0xff]  }
 0x302   : > { %6175 = vmatpush1.bf16.msra.mxu0 %v11767_v53  ;;  %v11845_v53 = vld [vmem:[%s12515_s23 + $0x1880] ss:$40 sps:$4 sm:$0xff]  }
 0x303   : > { %6216 = vmatpush1.bf16.msra.mxu1 %v11770_v34  ;;  %6176 = vmatprep.subr.bf16.mxu0 %v11775_v35  ;;  %v11850_v34 = vld [vmem:[%s12515_s23 + $0x18d4] ss:$40 sps:$4 sm:$0xff]   ;;  %v11848_v35 = vld [vmem:[%s12515_s23 + $0x18d0] ss:$40 sps:$4 sm:$0xff]  }
 0x304   : > { %6217 = vmatprep.subr.bf16.mxu1 %v11778_v36 }
 0x306   : > { %6177 = vmatpush1.bf16.msra.mxu0 %v11773_v37 }
 0x307   : > { %6218 = vmatpush1.bf16.msra.mxu1 %v11776_v24  ;;  %6178 = vmatprep.subr.bf16.mxu0 %v11781_v41 }
 0x308   : > { %6219 = vmatprep.subr.bf16.mxu1 %v11784_v0 }
 0x30a   : > { %6179 = vmatpush1.bf16.msra.mxu0 %v11779_v42 }
 0x30b   : > { %6220 = vmatpush1.bf16.msra.mxu1 %v11782_v3  ;;  %6180 = vmatprep.subr.bf16.mxu0 %v11787_v44  ;;  %v408_v44 = vld [vmem:[#allocation2 + $0x30] sm:$0xff] }
 0x30c   : > { %6221 = vmatprep.subr.bf16.mxu1 %v11790_v45 }
 0x30e   : > { %6181 = vmatpush1.bf16.msra.mxu0 %v11785_v47 }
 0x30f   : > { %6222 = vmatpush1.bf16.msra.mxu1 %v11788_v12  ;;  %6182 = vmatprep.subr.bf16.mxu0 %v11793_v8  ;;  %v409_v8 = vld [vmem:[#allocation2 + $0x38] sm:$0xff] }
 0x310   : > { %6223 = vmatprep.subr.bf16.mxu1 %v11796_v9 }
 0x312   : > { %6183 = vmatpush1.bf16.msra.mxu0 %v11791_v48 }
 0x313   : > { %6224 = vmatpush1.bf16.msra.mxu1 %v11794_v50  ;;  %6184 = vmatprep.subr.bf16.mxu0 %v11799_v16 }
 0x314   : > { %6225 = vmatprep.subr.bf16.mxu1 %v11802_v38 }
 0x316   : > { %6185 = vmatpush1.bf16.msra.mxu0 %v11797_v39 }
 0x317   : > { %6226 = vmatpush1.bf16.msra.mxu1 %v11800_v52  ;;  %6236 = vmatprep.subr.bf16.mxu0 %v11805_v54 }
 0x319   : > { %6187 = vmatmul.mubr.bf16.vlgmr.msra.gmra.mrb[44].mxu0 %v12680_v18  ;;  %v11817_v18 = vld [vmem:[%s12515_s23 + $0x1564] ss:$40 sps:$4 sm:$0xff]  }
 0x31a   : > { %6228 = vmatmul.mubr.bf16.vlgmr.msra.gmra.mrb[44].mxu1 %v12686_v21  ;;  %6237 = vmatpush1.bf16.msra.mxu0 %v11803_v55  ;;  %v11815_v21 = vld [vmem:[%s12515_s23 + $0x1560] ss:$40 sps:$4 sm:$0xff]  }
 0x31b   : > { %6268 = vmatprep.mubr.bf16.mxu0 %v12695_v25  ;;  %6238 = vmatprep.subr.bf16.mxu0 %v11808_v57  ;;  %v11823_v25 = vld [vmem:[%s12515_s23 + $0x1604] ss:$40 sps:$4 sm:$0xff]  }
 0x31e   : > { %6239 = vmatpush1.bf16.msra.mxu0 %v11806_v22 }
 0x31f   : > { %6240 = vmatprep.subr.bf16.mxu0 %v11811_v58 }
 0x322   : > { %6241 = vmatpush1.bf16.msra.mxu0 %v11809_v27 }
 0x323   : > { %6242 = vmatprep.subr.bf16.mxu0 %v11814_v60 }
 0x326   : > { %6243 = vmatpush1.bf16.msra.mxu0 %v11812_v61 }
 0x327   : > { %6244 = vmatprep.subr.bf16.mxu0 %v11817_v18 }
 0x32a   : > { %6245 = vmatpush1.bf16.msra.mxu0 %v11815_v21 }
 0x32b   : > { %6246 = vmatprep.subr.bf16.mxu0 %v11820_v62 }
 0x32c   : > { %v5942_v2 = vpop.f32.mrb[32].mxu0 }
 0x32d   : > { %v5983_v4 = vpop.f32.mrb[32].mxu1  ;;  %v5943_v5 = vadd.f32 %v5942_v2, %v13371_v1  ;;  %v5944_v6 = vpop.f32.mrb[33].mxu0 }
 0x32e   : > { %v5985_v7 = vpop.f32.mrb[33].mxu1  ;;  %v5945_v43 = vadd.f32 %v5944_v6, %v13374_v40  ;;  %v5946_v10 = vpop.f32.mrb[34].mxu0  ;;  %6247 = vmatpush1.bf16.msra.mxu0 %v11818_v63  ;;  %v11829_v40 = vld [vmem:[%s12515_s23 + $0x16a4] ss:$40 sps:$4 sm:$0xff]  }
 0x32f   : > { %v5987_v13 = vpop.f32.mrb[34].mxu1  ;;  %v5984_v46 = vadd.f32 %v5983_v4, %v5943_v5  ;;  %v5947_v56 = vpop.f32.mrb[35].mxu0  ;;  %6248 = vmatprep.subr.bf16.mxu0 %v11823_v25 }
 0x330   : > { %v5988_v15 = vpop.f32.mrb[35].mxu1  ;;  %v5986_v1 = vadd.f32 %v5985_v7, %v5945_v43  ;;  %v410_v43 = vld [vmem:[#allocation2 + $0x40] sm:$0xff]  ;;  %v411_v13 = vld [vmem:[#allocation2 + $0x48] sm:$0xff] }
 0x332   : > { %6249 = vmatpush1.bf16.msra.mxu0 %v11821_v11 }
 0x333   : > { %6250 = vmatprep.subr.bf16.mxu0 %v11826_v14 }
 0x336   : > { %6251 = vmatpush1.bf16.msra.mxu0 %v11824_v59 }
 0x337   : > { %6252 = vmatprep.subr.bf16.mxu0 %v11829_v40  ;;  %v11851_v40 = vld [vmem:[%s14697_s3 + $0x4] ss:$16 sps:$4 sm:$0xff] (!%p10162_p7)  }
 0x33a   : > { %6253 = vmatpush1.bf16.msra.mxu0 %v11827_v17  ;;  %v11853_v17 = vld [vmem:[%s14697_s3 + $0xc] ss:$16 sps:$4 sm:$0xff] (!%p10162_p7)  }
 0x33b   : > { %6254 = vmatprep.subr.bf16.mxu0 %v11832_v51  ;;  %v11855_v51 = vld [vmem:[%s14697_s3] ss:$16 sps:$4 sm:$0xff] (!%p10162_p7)   ;;  %8523 = vmatprep.subr.bf16.mxu1 (!%p10162_p7), %v11853_v17  ;;  %v11934_v17 = vld [vmem:[%s14697_s3 + $0x1a8] ss:$16 sps:$4 sm:$0xff] (!%p10162_p7)  }
 0x33e   : > { %6255 = vmatpush1.bf16.msra.mxu0 %v11830_v19  ;;  %v11856_v19 = vld [vmem:[%s14697_s3 + $0x8] ss:$16 sps:$4 sm:$0xff] (!%p10162_p7)  }
 0x33f   : > { %6256 = vmatprep.subr.bf16.mxu0 %v11835_v20  ;;  %v11857_v20 = vld [vmem:[%s14697_s3 + $0x24] ss:$16 sps:$4 sm:$0xff] (!%p10162_p7)   ;;  %8524 = vmatpush1.bf16.msra.mxu1 (!%p10162_p7), %v11856_v19 }
 0x340   : > { %v11935_v19 = vld [vmem:[%s14697_s3 + $0x1c4] ss:$16 sps:$4 sm:$0xff] (!%p10162_p7)  }
 0x342   : > { %6257 = vmatpush1.bf16.msra.mxu0 %v11833_v23  ;;  %v11859_v23 = vld [vmem:[%s14697_s3 + $0x2c] ss:$16 sps:$4 sm:$0xff] (!%p10162_p7)  }
 0x343   : > { %6258 = vmatprep.subr.bf16.mxu0 %v11838_v26  ;;  %v11861_v26 = vld [vmem:[%s14697_s3 + $0x20] ss:$16 sps:$4 sm:$0xff] (!%p10162_p7)   ;;  %8525 = vmatprep.subr.bf16.mxu1 (!%p10162_p7), %v11859_v23  ;;  %v11937_v23 = vld [vmem:[%s14697_s3 + $0x1cc] ss:$16 sps:$4 sm:$0xff] (!%p10162_p7)  }
 0x346   : > { %6259 = vmatpush1.bf16.msra.mxu0 %v11836_v28  ;;  %v11862_v28 = vld [vmem:[%s14697_s3 + $0x28] ss:$16 sps:$4 sm:$0xff] (!%p10162_p7)  }
 0x347   : > { %6260 = vmatprep.subr.bf16.mxu0 %v11841_v29  ;;  %v11863_v29 = vld [vmem:[%s14697_s3 + $0x44] ss:$16 sps:$4 sm:$0xff] (!%p10162_p7)   ;;  %8526 = vmatpush1.bf16.msra.mxu1 (!%p10162_p7), %v11862_v28 }
 0x34a   : > { %6261 = vmatpush1.bf16.msra.mxu0 %v11839_v30  ;;  %v11865_v30 = vld [vmem:[%s14697_s3 + $0x4c] ss:$16 sps:$4 sm:$0xff] (!%p10162_p7)  }
 0x34b   : > { %6262 = vmatprep.subr.bf16.mxu0 %v11844_v31  ;;  %v11867_v31 = vld [vmem:[%s14697_s3 + $0x40] ss:$16 sps:$4 sm:$0xff] (!%p10162_p7)   ;;  %8527 = vmatprep.subr.bf16.mxu1 (!%p10162_p7), %v11865_v30  ;;  %v11941_v30 = vld [vmem:[%s14697_s3 + $0x1e4] ss:$16 sps:$4 sm:$0xff] (!%p10162_p7)  }
 0x34e   : > { %6263 = vmatpush1.bf16.msra.mxu0 %v11842_v33  ;;  %v11868_v33 = vld [vmem:[%s14697_s3 + $0x48] ss:$16 sps:$4 sm:$0xff] (!%p10162_p7)  }
 0x34f   : > { %6264 = vmatprep.subr.bf16.mxu0 %v11847_v49  ;;  %v11869_v49 = vld [vmem:[%s14697_s3 + $0x64] ss:$16 sps:$4 sm:$0xff] (!%p10162_p7)   ;;  %8528 = vmatpush1.bf16.msra.mxu1 (!%p10162_p7), %v11868_v33  ;;  %v11945_v33 = vld [vmem:[%s14697_s3 + $0x1e0] ss:$16 sps:$4 sm:$0xff] (!%p10162_p7)  }
 0x352   : > { %6265 = vmatpush1.bf16.msra.mxu0 %v11845_v53  ;;  %v11871_v53 = vld [vmem:[%s14697_s3 + $0x6c] ss:$16 sps:$4 sm:$0xff] (!%p10162_p7)  }
 0x353   : > { %6266 = vmatprep.subr.bf16.mxu0 %v11850_v34  ;;  %v11873_v34 = vld [vmem:[%s14697_s3 + $0x60] ss:$16 sps:$4 sm:$0xff] (!%p10162_p7)   ;;  %8529 = vmatprep.subr.bf16.mxu1 (!%p10162_p7), %v11871_v53  ;;  %v11946_v53 = vld [vmem:[%s14697_s3 + $0x1e8] ss:$16 sps:$4 sm:$0xff] (!%p10162_p7)  }
 0x356   : > { %6267 = vmatpush1.bf16.msra.mxu0 %v11848_v35  ;;  %v11874_v35 = vld [vmem:[%s14697_s3 + $0x68] ss:$16 sps:$4 sm:$0xff] (!%p10162_p7)  }
 0x357   : > { %8318 = vmatprep.subr.bf16.mxu0 (!%p10162_p7), %v11851_v40  ;;  %8530 = vmatpush1.bf16.msra.mxu1 (!%p10162_p7), %v11874_v35  ;;  %v11933_v40 = vld [vmem:[%s14697_s3 + $0x1a0] ss:$16 sps:$4 sm:$0xff] (!%p10162_p7)   ;;  %v11952_v35 = vld [vmem:[%s14697_s3 + $0x20c] ss:$16 sps:$4 sm:$0xff] (!%p10162_p7)  }
 0x359   : > { %6269 = vmatmul.mubr.bf16.vlgmr.msra.gmra.mrb[48].mxu0 %v12763_v32 }
 0x35a   : > { %8319 = vmatpush1.bf16.msra.mxu0 (!%p10162_p7), %v11855_v51 }
 0x35b   : > { %8320 = vmatprep.subr.bf16.mxu0 (!%p10162_p7), %v11857_v20  ;;  %v6302_v20 = vld [vmem:[#allocation2] sm:$0xff] (!%p10162_p7) }
 0x35e   : > { %8321 = vmatpush1.bf16.msra.mxu0 (!%p10162_p7), %v11861_v26  ;;  %v11939_v26 = vld [vmem:[%s14697_s3 + $0x1c0] ss:$16 sps:$4 sm:$0xff] (!%p10162_p7)  }
 0x35f   : > { %8322 = vmatprep.subr.bf16.mxu0 (!%p10162_p7), %v11863_v29  ;;  %v11940_v29 = vld [vmem:[%s14697_s3 + $0x1c8] ss:$16 sps:$4 sm:$0xff] (!%p10162_p7)  }
 0x362   : > { %8323 = vmatpush1.bf16.msra.mxu0 (!%p10162_p7), %v11867_v31  ;;  %v11943_v31 = vld [vmem:[%s14697_s3 + $0x1ec] ss:$16 sps:$4 sm:$0xff] (!%p10162_p7)  }
 0x363   : > { %8324 = vmatprep.subr.bf16.mxu0 (!%p10162_p7), %v11869_v49 }
 0x366   : > { %8325 = vmatpush1.bf16.msra.mxu0 (!%p10162_p7), %v11873_v34  ;;  %v11949_v34 = vld [vmem:[%s14697_s3 + $0x204] ss:$16 sps:$4 sm:$0xff] (!%p10162_p7)  }
 0x36c   : > { %v6024_v36 = vpop.f32.mrb[36].mxu0 }
 0x36d   : > { %v6065_v37 = vpop.f32.mrb[36].mxu1  ;;  %v6025_v24 = vadd.f32 %v6024_v36, %v5984_v46  ;;  %v6026_v41 = vpop.f32.mrb[37].mxu0  ;;  %v11875_v36 = vld [vmem:[%s14697_s3 + $0x84] ss:$16 sps:$4 sm:$0xff] (!%p10162_p7)  }
 0x36e   : > { %v6067_v0 = vpop.f32.mrb[37].mxu1  ;;  %v6027_v42 = vadd.f32 %v6026_v41, %v5986_v1  ;;  %v6028_v3 = vpop.f32.mrb[38].mxu0  ;;  %v11880_v41 = vld [vmem:[%s14697_s3 + $0x88] ss:$16 sps:$4 sm:$0xff] (!%p10162_p7)   ;;  %8326 = vmatprep.subr.bf16.mxu0 (!%p10162_p7), %v11875_v36  ;;  %v11947_v36 = vld [vmem:[%s14697_s3 + $0x200] ss:$16 sps:$4 sm:$0xff] (!%p10162_p7)  }
 0x36f   : > { %v6069_v45 = vpop.f32.mrb[38].mxu1  ;;  %v6066_v47 = vadd.f32 %v6065_v37, %v6025_v24  ;;  %v6029_v12 = vpop.f32.mrb[39].mxu0  ;;  %v11877_v37 = vld [vmem:[%s14697_s3 + $0x8c] ss:$16 sps:$4 sm:$0xff] (!%p10162_p7)   ;;  %v11879_v24 = vld [vmem:[%s14697_s3 + $0x80] ss:$16 sps:$4 sm:$0xff] (!%p10162_p7)  }
 0x370   : > { %v6070_v9 = vpop.f32.mrb[39].mxu1  ;;  %v6068_v48 = vadd.f32 %v6067_v0, %v6027_v42  ;;  %v11881_v0 = vld [vmem:[%s14697_s3 + $0xa4] ss:$16 sps:$4 sm:$0xff] (!%p10162_p7)   ;;  %8531 = vmatprep.subr.bf16.mxu1 (!%p10162_p7), %v11877_v37  ;;  %v11883_v42 = vld [vmem:[%s14697_s3 + $0xac] ss:$16 sps:$4 sm:$0xff] (!%p10162_p7)   ;;  %8327 = vmatpush1.bf16.msra.mxu0 (!%p10162_p7), %v11879_v24 }
 0x371   : > { %v6283_v50 = vadd.f32 %v6066_v47, %v408_v44  ;;  %v11885_v3 = vld [vmem:[%s14697_s3 + $0xa0] ss:$16 sps:$4 sm:$0xff] (!%p10162_p7)   ;;  %8532 = vmatpush1.bf16.msra.mxu1 (!%p10162_p7), %v11880_v41  ;;  %v11886_v44 = vld [vmem:[%s14697_s3 + $0xa8] ss:$16 sps:$4 sm:$0xff] (!%p10162_p7)   ;;  %v11887_v45 = vld [vmem:[%s14697_s3 + $0xc4] ss:$16 sps:$4 sm:$0xff] (!%p10162_p7)   ;;  %8328 = vmatprep.subr.bf16.mxu0 (!%p10162_p7), %v11881_v0 }
 0x372   : > { %v6284_v16 = vadd.f32 %v6068_v48, %v409_v8  ;;  %8533 = vmatprep.subr.bf16.mxu1 (!%p10162_p7), %v11883_v42  ;;  %v11889_v47 = vld [vmem:[%s14697_s3 + $0xcc] ss:$16 sps:$4 sm:$0xff] (!%p10162_p7)   ;;  %v11891_v12 = vld [vmem:[%s14697_s3 + $0xc0] ss:$16 sps:$4 sm:$0xff] (!%p10162_p7)   ;;  %v11892_v8 = vld [vmem:[%s14697_s3 + $0xc8] ss:$16 sps:$4 sm:$0xff] (!%p10162_p7)  }
 0x373   : > { %6293 = vst [vmem:[#allocation2 + $0x30] sm:$0xff] %v6283_v50  ;;  %v11893_v9 = vld [vmem:[%s14697_s3 + $0xe4] ss:$16 sps:$4 sm:$0xff] (!%p10162_p7)   ;;  %v11895_v48 = vld [vmem:[%s14697_s3 + $0xec] ss:$16 sps:$4 sm:$0xff] (!%p10162_p7)  }
 0x374   : > { %6294 = vst [vmem:[#allocation2 + $0x38] sm:$0xff] %v6284_v16  ;;  %8329 = vmatpush1.bf16.msra.mxu0 (!%p10162_p7), %v11885_v3  ;;  %v11897_v50 = vld [vmem:[%s14697_s3 + $0xe0] ss:$16 sps:$4 sm:$0xff] (!%p10162_p7)   ;;  %v11898_v16 = vld [vmem:[%s14697_s3 + $0xe8] ss:$16 sps:$4 sm:$0xff] (!%p10162_p7)  }
 0x375   : > { %8534 = vmatpush1.bf16.msra.mxu1 (!%p10162_p7), %v11886_v44  ;;  %8330 = vmatprep.subr.bf16.mxu0 (!%p10162_p7), %v11887_v45  ;;  %v11950_v24 = vld [vmem:[%s14697_s3 + $0x208] ss:$16 sps:$4 sm:$0xff] (!%p10162_p7)   ;;  %v11955_v41 = vld [vmem:[%s14697_s3 + $0x224] ss:$16 sps:$4 sm:$0xff] (!%p10162_p7)   ;;  %v11958_v0 = vld [vmem:[%s14697_s3 + $0x22c] ss:$16 sps:$4 sm:$0xff] (!%p10162_p7)  }
 0x376   : > { %8535 = vmatprep.subr.bf16.mxu1 (!%p10162_p7), %v11889_v47  ;;  %v11953_v42 = vld [vmem:[%s14697_s3 + $0x220] ss:$16 sps:$4 sm:$0xff] (!%p10162_p7)   ;;  %v11956_v3 = vld [vmem:[%s14697_s3 + $0x228] ss:$16 sps:$4 sm:$0xff] (!%p10162_p7)   ;;  %v11961_v44 = vld [vmem:[%s14697_s3 + $0x244] ss:$16 sps:$4 sm:$0xff] (!%p10162_p7)  }
 0x377   : > { %v11964_v45 = vld [vmem:[%s14697_s3 + $0x24c] ss:$16 sps:$4 sm:$0xff] (!%p10162_p7)   ;;  %v11959_v47 = vld [vmem:[%s14697_s3 + $0x240] ss:$16 sps:$4 sm:$0xff] (!%p10162_p7)  }
 0x378   : > { %8331 = vmatpush1.bf16.msra.mxu0 (!%p10162_p7), %v11891_v12  ;;  %v11962_v12 = vld [vmem:[%s14697_s3 + $0x248] ss:$16 sps:$4 sm:$0xff] (!%p10162_p7)  }
 0x379   : > { %8536 = vmatpush1.bf16.msra.mxu1 (!%p10162_p7), %v11892_v8  ;;  %8332 = vmatprep.subr.bf16.mxu0 (!%p10162_p7), %v11893_v9  ;;  %v11967_v8 = vld [vmem:[%s14697_s3 + $0x264] ss:$16 sps:$4 sm:$0xff] (!%p10162_p7)   ;;  %v11970_v9 = vld [vmem:[%s14697_s3 + $0x26c] ss:$16 sps:$4 sm:$0xff] (!%p10162_p7)  }
 0x37a   : > { %8537 = vmatprep.subr.bf16.mxu1 (!%p10162_p7), %v11895_v48  ;;  %v11965_v48 = vld [vmem:[%s14697_s3 + $0x260] ss:$16 sps:$4 sm:$0xff] (!%p10162_p7)  }
 0x37c   : > { %8333 = vmatpush1.bf16.msra.mxu0 (!%p10162_p7), %v11897_v50  ;;  %v11968_v50 = vld [vmem:[%s14697_s3 + $0x268] ss:$16 sps:$4 sm:$0xff] (!%p10162_p7)  }
 0x37d   : > { %8538 = vmatpush1.bf16.msra.mxu1 (!%p10162_p7), %v11898_v16  ;;  %v11973_v16 = vld [vmem:[%s14697_s3 + $0x284] ss:$16 sps:$4 sm:$0xff] (!%p10162_p7)  }
 0x3ac   : > { %v6106_v38 = vpop.f32.mrb[40].mxu0 }
 0x3ad   : > { %v6147_v32 = vpop.f32.mrb[40].mxu1  ;;  %v6108_v52 = vpop.f32.mrb[41].mxu0 }
 0x3ae   : > { %v6148_v39 = vadd.f32 %v6147_v32, %v6106_v38  ;;  %v6149_v54 = vpop.f32.mrb[41].mxu1  ;;  %v6110_v57 = vpop.f32.mrb[42].mxu0  ;;  %v11899_v38 = vld [vmem:[%s14697_s3 + $0x104] ss:$16 sps:$4 sm:$0xff] (!%p10162_p7)   ;;  %v11901_v32 = vld [vmem:[%s14697_s3 + $0x10c] ss:$16 sps:$4 sm:$0xff] (!%p10162_p7)  }
 0x3af   : > { %v6150_v55 = vadd.f32 %v6149_v54, %v6108_v52  ;;  %v6151_v22 = vpop.f32.mrb[42].mxu1  ;;  %v6111_v58 = vpop.f32.mrb[43].mxu0  ;;  %v11904_v52 = vld [vmem:[%s14697_s3 + $0x108] ss:$16 sps:$4 sm:$0xff] (!%p10162_p7)   ;;  %v11905_v54 = vld [vmem:[%s14697_s3 + $0x124] ss:$16 sps:$4 sm:$0xff] (!%p10162_p7)   ;;  %8334 = vmatprep.subr.bf16.mxu0 (!%p10162_p7), %v11899_v38  ;;  %8539 = vmatprep.subr.bf16.mxu1 (!%p10162_p7), %v11901_v32 }
 0x3b0   : > { %v6152_v27 = vpop.f32.mrb[43].mxu1  ;;  %v11907_v57 = vld [vmem:[%s14697_s3 + $0x12c] ss:$16 sps:$4 sm:$0xff] (!%p10162_p7)   ;;  %v11909_v22 = vld [vmem:[%s14697_s3 + $0x120] ss:$16 sps:$4 sm:$0xff] (!%p10162_p7)   ;;  %8540 = vmatpush1.bf16.msra.mxu1 (!%p10162_p7), %v11904_v52 }
 0x3b1   : > { %v11910_v58 = vld [vmem:[%s14697_s3 + $0x128] ss:$16 sps:$4 sm:$0xff] (!%p10162_p7)   ;;  %v11911_v27 = vld [vmem:[%s14697_s3 + $0x144] ss:$16 sps:$4 sm:$0xff] (!%p10162_p7)   ;;  %8541 = vmatprep.subr.bf16.mxu1 (!%p10162_p7), %v11907_v57  ;;  %v11976_v38 = vld [vmem:[%s14697_s3 + $0x28c] ss:$16 sps:$4 sm:$0xff] (!%p10162_p7)  }
 0x3b2   : > { %v11971_v32 = vld [vmem:[%s14697_s3 + $0x280] ss:$16 sps:$4 sm:$0xff] (!%p10162_p7)   ;;  %v11974_v52 = vld [vmem:[%s14697_s3 + $0x288] ss:$16 sps:$4 sm:$0xff] (!%p10162_p7)  }
 0x3b3   : > { %v11977_v57 = vld [vmem:[%s14697_s3 + $0x2a0] ss:$16 sps:$4 sm:$0xff] (!%p10162_p7)  }
 0x3b4   : > { %8542 = vmatpush1.bf16.msra.mxu1 (!%p10162_p7), %v11910_v58  ;;  %v11980_v58 = vld [vmem:[%s14697_s3 + $0x2a8] ss:$16 sps:$4 sm:$0xff] (!%p10162_p7)  }
 0x3ec   : > { %v6188_v60 = vpop.f32.mrb[44].mxu0 }
 0x3ed   : > { %v6229_v61 = vpop.f32.mrb[44].mxu1  ;;  %v6189_v18 = vadd.f32 %v6188_v60, %v6148_v39  ;;  %v6190_v21 = vpop.f32.mrb[45].mxu0  ;;  %v11903_v39 = vld [vmem:[%s14697_s3 + $0x100] ss:$16 sps:$4 sm:$0xff] (!%p10162_p7)  }
 0x3ee   : > { %v6231_v62 = vpop.f32.mrb[45].mxu1  ;;  %v6191_v63 = vadd.f32 %v6190_v21, %v6150_v55  ;;  %v6192_v25 = vpop.f32.mrb[46].mxu0  ;;  %v6316_v55 = vlaneseq (!%p10162_p7)  ;;  %8335 = vmatpush1.bf16.msra.mxu0 (!%p10162_p7), %v11903_v39  ;;  %v11916_v21 = vld [vmem:[%s14697_s3 + $0x148] ss:$16 sps:$4 sm:$0xff] (!%p10162_p7)  }
 0x3ef   : > { %v6233_v2 = vpop.f32.mrb[46].mxu1  ;;  %v6230_v4 = vadd.f32 %v6229_v61, %v6189_v18  ;;  %v6193_v5 = vpop.f32.mrb[47].mxu0  ;;  %8336 = vmatprep.subr.bf16.mxu0 (!%p10162_p7), %v11905_v54  ;;  %v11913_v61 = vld [vmem:[%s14697_s3 + $0x14c] ss:$16 sps:$4 sm:$0xff] (!%p10162_p7)   ;;  %v11915_v18 = vld [vmem:[%s14697_s3 + $0x140] ss:$16 sps:$4 sm:$0xff] (!%p10162_p7)  }
 0x3f0   : > { %v6234_v6 = vpop.f32.mrb[47].mxu1  ;;  %v6232_v7 = vadd.f32 %v6231_v62, %v6191_v63  ;;  %v13578_v60 = vshrl.u32 (!%p10162_p7), %v6316_v55, 7  ;;  %v11917_v62 = vld [vmem:[%s14697_s3 + $0x164] ss:$16 sps:$4 sm:$0xff] (!%p10162_p7)   ;;  %8543 = vmatprep.subr.bf16.mxu1 (!%p10162_p7), %v11913_v61  ;;  %v11919_v25 = vld [vmem:[%s14697_s3 + $0x16c] ss:$16 sps:$4 sm:$0xff] (!%p10162_p7)  }
 0x3f1   : > { %v6303_v2 = vld [vmem:[#allocation2 + $0x8] sm:$0xff] (!%p10162_p7)  ;;  %8544 = vmatpush1.bf16.msra.mxu1 (!%p10162_p7), %v11916_v21  ;;  %v11921_v5 = vld [vmem:[%s14697_s3 + $0x160] ss:$16 sps:$4 sm:$0xff] (!%p10162_p7)   ;;  %v11979_v54 = vld [vmem:[%s14697_s3 + $0x2a4] ss:$16 sps:$4 sm:$0xff] (!%p10162_p7)  }
 0x3f2   : > { %8337 = vmatpush1.bf16.msra.mxu0 (!%p10162_p7), %v11909_v22  ;;  %v13593_v63 = vsub.s32 (!%p10162_p7), 1, %v13578_v60  ;;  %v11922_v6 = vld [vmem:[%s14697_s3 + $0x168] ss:$16 sps:$4 sm:$0xff] (!%p10162_p7)   ;;  %8545 = vmatprep.subr.bf16.mxu1 (!%p10162_p7), %v11919_v25  ;;  %v6330_v39 = vsub.s32 (!%p10162_p7), 3, %v13578_v60  ;;  %v11982_v55 = vld [vmem:[%s14697_s3 + $0x2ac] ss:$16 sps:$4 sm:$0xff] (!%p10162_p7)  }
 0x3f3   : > { %8338 = vmatprep.subr.bf16.mxu0 (!%p10162_p7), %v11911_v27  ;;  %v11985_v27 = vld [vmem:[%s14697_s3 + $0x2c4] ss:$16 sps:$4 sm:$0xff] (!%p10162_p7)   ;;  %v11988_v61 = vld [vmem:[%s14697_s3 + $0x2cc] ss:$16 sps:$4 sm:$0xff] (!%p10162_p7)   ;;  %v11983_v21 = vld [vmem:[%s14697_s3 + $0x2c0] ss:$16 sps:$4 sm:$0xff] (!%p10162_p7)  }
 0x3f4   : > { %v11986_v25 = vld [vmem:[%s14697_s3 + $0x2c8] ss:$16 sps:$4 sm:$0xff] (!%p10162_p7)  }
 0x3f5   : > { %8546 = vmatpush1.bf16.msra.mxu1 (!%p10162_p7), %v11922_v6 }
 0x3f6   : > { %8339 = vmatpush1.bf16.msra.mxu0 (!%p10162_p7), %v11915_v18  ;;  %v6305_v18 = vld [vmem:[#allocation2 + $0x18] sm:$0xff] (!%p10162_p7) }
 0x3f7   : > { %8340 = vmatprep.subr.bf16.mxu0 (!%p10162_p7), %v11917_v62 }
 0x3fa   : > { %8341 = vmatpush1.bf16.msra.mxu0 (!%p10162_p7), %v11921_v5  ;;  %v11994_v5 = vld [vmem:[%s14697_s3 + $0x2ec] ss:$16 sps:$4 sm:$0xff] (!%p10162_p7)  }
 0x42c   : > { %v6270_v10 = vpop.f32.mrb[48].mxu0  ;;  %6301 = sbr.rel (%p10162_p7) target bundleno = 1995 (0x7cb), region = 64 }
 0x42d   : > { %v6271_v11 = vadd.f32 %v6270_v10, %v6230_v4  ;;  %v6272_v46 = vpop.f32.mrb[49].mxu0  ;;  %v13601_v4 = vld [vmem:[%s14696_s2] sm:$0xff] (!%p10162_p7)  ;;  %v11925_v10 = vld [vmem:[%s14697_s3 + $0x18c] ss:$16 sps:$4 sm:$0xff] (!%p10162_p7)  }
 0x42e   : > { %v6273_v56 = vadd.f32 %v6272_v46, %v6232_v7  ;;  %v6274_v14 = vpop.f32.mrb[50].mxu0  ;;  %v6323_v7 = vrot.slane (!%p10162_p7), %v13601_v4, %v13593_v63  ;;  %v13621_v46 = vsub.s32 (!%p10162_p7), 0, %v13578_v60  ;;  %8547 = vmatprep.subr.bf16.mxu1 (!%p10162_p7), %v11925_v10  ;;  %v6331_v22 = vrot.slane (!%p10162_p7), %v13601_v4, %v6330_v39  ;;  %v11992_v10 = vld [vmem:[%s14697_s3 + $0x2e8] ss:$16 sps:$4 sm:$0xff] (!%p10162_p7)  }
 0x42f   : > { %v6285_v15 = vadd.f32 %v6271_v11, %v410_v43  ;;  %v6275_v1 = vpop.f32.mrb[51].mxu0  ;;  %v11923_v43 = vld [vmem:[%s14697_s3 + $0x184] ss:$16 sps:$4 sm:$0xff] (!%p10162_p7)  }
 0x430   : > { %v6286_v59 = vadd.f32 %v6273_v56, %v411_v13  ;;  %v6367_v11 = vadd.f32 (!%p10162_p7), %v6323_v7, %v6303_v2  ;;  %v11927_v13 = vld [vmem:[%s14697_s3 + $0x180] ss:$16 sps:$4 sm:$0xff] (!%p10162_p7)   ;;  %v11928_v56 = vld [vmem:[%s14697_s3 + $0x188] ss:$16 sps:$4 sm:$0xff] (!%p10162_p7)   ;;  %v11929_v14 = vld [vmem:[%s14697_s3 + $0x1a4] ss:$16 sps:$4 sm:$0xff] (!%p10162_p7)   ;;  %8342 = vmatprep.subr.bf16.mxu0 (!%p10162_p7), %v11923_v43  ;;  %v6319_v51 = vrot.slane (!%p10162_p7), %v13601_v4, %v13621_v46  ;;  %v6369_v62 = vadd.f32 (!%p10162_p7), %v6331_v22, %v6305_v18 }
 0x431   : > { %6295 = vst [vmem:[#allocation2 + $0x40] sm:$0xff] %v6285_v15  ;;  %v11931_v1 = vld [vmem:[%s14697_s3 + $0x1ac] ss:$16 sps:$4 sm:$0xff] (!%p10162_p7)   ;;  %8343 = vmatpush1.bf16.msra.mxu0 (!%p10162_p7), %v11927_v13  ;;  %8548 = vmatpush1.bf16.msra.mxu1 (!%p10162_p7), %v11928_v56  ;;  %v11991_v2 = vld [vmem:[%s14697_s3 + $0x2e4] ss:$16 sps:$4 sm:$0xff] (!%p10162_p7)  }
 0x432   : > { %6297 = vst.msk [vmem:[#allocation2 + $0x48] sm:$0xff] %vm6296_vm1, %v6286_v59  ;;  %v6377_v15 = vmax.f32 (!%p10162_p7), %v6367_v11, 0.0  ;;  %8344 = vmatprep.subr.bf16.mxu0 (!%p10162_p7), %v11929_v14  ;;  %8549 = vmatprep.subr.bf16.mxu1 (!%p10162_p7), %v11931_v1  ;;  %v6366_v28 = vadd.f32 (!%p10162_p7), %v6319_v51, %v6302_v20  ;;  %v6379_v6 = vmax.f32 (!%p10162_p7), %v6369_v62, 0.0  ;;  %v11989_v7 = vld [vmem:[%s14697_s3 + $0x2e0] ss:$16 sps:$4 sm:$0xff] (!%p10162_p7)   ;;  %v6307_v22 = vld [vmem:[#allocation2 + $0x28] sm:$0xff] (!%p10162_p7) }
 0x433   : > { %v11997_v11 = vld [vmem:[%s14697_s3 + $0x304] ss:$16 sps:$4 sm:$0xff]   ;;  %v12000_v13 = vld [vmem:[%s14697_s3 + $0x30c] ss:$16 sps:$4 sm:$0xff]   ;;  %v11995_v56 = vld [vmem:[%s14697_s3 + $0x300] ss:$16 sps:$4 sm:$0xff]  }
 0x434   : > { %v6387_v59 = vpack.c.bf16 %v6377_v15, %v6377_v15  ;;  %v6376_v49 = vmax.f32 %v6366_v28, 0.0  ;;  %v6389_v43 = vpack.c.bf16 %v6379_v6, %v6379_v6  ;;  %v11998_v14 = vld [vmem:[%s14697_s3 + $0x308] ss:$16 sps:$4 sm:$0xff]   ;;  %v12003_v15 = vld [vmem:[%s14697_s3 + $0x324] ss:$16 sps:$4 sm:$0xff]  }
 0x435   : > { %8345 = vmatpush1.bf16.msra.mxu0 %v11933_v40  ;;  %8550 = vmatpush1.bf16.msra.mxu1 %v11934_v17  ;;  %v12006_v1 = vld [vmem:[%s14697_s3 + $0x32c] ss:$16 sps:$4 sm:$0xff]   ;;  %v12004_v40 = vld [vmem:[%s14697_s3 + $0x328] ss:$16 sps:$4 sm:$0xff]   ;;  %v12009_v17 = vld [vmem:[%s14697_s3 + $0x344] ss:$16 sps:$4 sm:$0xff]  }
 0x436   : > { %8350 = vmatprep.mubr.bf16.mxu0 %v6387_v59  ;;  %8555 = vmatprep.mubr.bf16.mxu1 %v6387_v59  ;;  %v6386_v37 = vpack.c.bf16 %v6376_v49, %v6376_v49  ;;  %v12001_v59 = vld [vmem:[%s14697_s3 + $0x320] ss:$16 sps:$4 sm:$0xff]   ;;  %v12012_v51 = vld [vmem:[%s14697_s3 + $0x34c] ss:$16 sps:$4 sm:$0xff]   ;;  %v12010_v20 = vld [vmem:[%s14697_s3 + $0x348] ss:$16 sps:$4 sm:$0xff]  }
 0x437   : > { %8346 = vmatprep.subr.bf16.mxu0 %v11935_v19  ;;  %8551 = vmatprep.subr.bf16.mxu1 %v11937_v23  ;;  %v12007_v19 = vld [vmem:[%s14697_s3 + $0x340] ss:$16 sps:$4 sm:$0xff]   ;;  %v12015_v23 = vld [vmem:[%s14697_s3 + $0x364] ss:$16 sps:$4 sm:$0xff]   ;;  %v6326_v49 = vsub.s32 2, %v13578_v60 }
 0x438   : > { %v12013_v28 = vld [vmem:[%s14697_s3 + $0x360] ss:$16 sps:$4 sm:$0xff]   ;;  %v12057_v18 = vld [vmem:[%s14697_s3 + $0x444] ss:$16 sps:$4 sm:$0xff]   ;;  %v12060_v62 = vld [vmem:[%s14697_s3 + $0x44c] ss:$16 sps:$4 sm:$0xff]  }
 0x439   : > { %8347 = vmatpush1.bf16.msra.mxu0 %v11939_v26  ;;  %8552 = vmatpush1.bf16.msra.mxu1 %v11940_v29  ;;  %v12018_v26 = vld [vmem:[%s14697_s3 + $0x36c] ss:$16 sps:$4 sm:$0xff]   ;;  %v12016_v29 = vld [vmem:[%s14697_s3 + $0x368] ss:$16 sps:$4 sm:$0xff]   ;;  %v12063_v6 = vld [vmem:[%s14697_s3 + $0x464] ss:$16 sps:$4 sm:$0xff]  }
 0x43a   : > { %8348 = vmatprep.subr.bf16.mxu0 %v11941_v30  ;;  %8553 = vmatprep.subr.bf16.mxu1 %v11943_v31  ;;  %v12021_v30 = vld [vmem:[%s14697_s3 + $0x384] ss:$16 sps:$4 sm:$0xff]   ;;  %v12024_v31 = vld [vmem:[%s14697_s3 + $0x38c] ss:$16 sps:$4 sm:$0xff]  }
 0x43d   : > { %8349 = vmatpush1.bf16.msra.mxu0 %v11945_v33  ;;  %8554 = vmatpush1.bf16.msra.mxu1 %v11946_v53  ;;  %v12019_v33 = vld [vmem:[%s14697_s3 + $0x380] ss:$16 sps:$4 sm:$0xff]   ;;  %v12022_v53 = vld [vmem:[%s14697_s3 + $0x388] ss:$16 sps:$4 sm:$0xff]  }
 0x43e   : > { %8359 = vmatprep.subr.bf16.mxu0 %v11949_v34  ;;  %8564 = vmatprep.subr.bf16.mxu1 %v11952_v35  ;;  %v12027_v34 = vld [vmem:[%s14697_s3 + $0x3a4] ss:$16 sps:$4 sm:$0xff]   ;;  %v12030_v35 = vld [vmem:[%s14697_s3 + $0x3ac] ss:$16 sps:$4 sm:$0xff]  }
 0x440   : > { %8351 = vmatmul.mubr.bf16.vlgmr.msra.gmra.mrb[0].mxu0 %v6386_v37  ;;  %8556 = vmatmul.mubr.bf16.vlgmr.msra.gmra.mrb[0].mxu1 %v6386_v37  ;;  %v12028_v37 = vld [vmem:[%s14697_s3 + $0x3a8] ss:$16 sps:$4 sm:$0xff]  }
 0x441   : > { %8360 = vmatpush1.bf16.msra.mxu0 %v11947_v36  ;;  %8565 = vmatpush1.bf16.msra.mxu1 %v11950_v24  ;;  %v12025_v36 = vld [vmem:[%s14697_s3 + $0x3a0] ss:$16 sps:$4 sm:$0xff]   ;;  %v6327_v24 = vrot.slane %v13601_v4, %v6326_v49 }
 0x442   : > { %8361 = vmatprep.subr.bf16.mxu0 %v11955_v41  ;;  %8566 = vmatprep.subr.bf16.mxu1 %v11958_v0  ;;  %v6304_v41 = vld [vmem:[#allocation2 + $0x10] sm:$0xff] }
 0x443   : > { %8391 = vmatprep.mubr.bf16.mxu0 %v6389_v43  ;;  %8596 = vmatprep.mubr.bf16.mxu1 %v6389_v43  ;;  %v12033_v0 = vld [vmem:[%s14697_s3 + $0x3c4] ss:$16 sps:$4 sm:$0xff]   ;;  %v12061_v43 = vld [vmem:[%s14697_s3 + $0x460] ss:$16 sps:$4 sm:$0xff]  }
 0x445   : > { %8362 = vmatpush1.bf16.msra.mxu0 %v11953_v42  ;;  %8567 = vmatpush1.bf16.msra.mxu1 %v11956_v3  ;;  %v12036_v42 = vld [vmem:[%s14697_s3 + $0x3cc] ss:$16 sps:$4 sm:$0xff]   ;;  %v12031_v3 = vld [vmem:[%s14697_s3 + $0x3c0] ss:$16 sps:$4 sm:$0xff]  }
 0x446   : > { %8363 = vmatprep.subr.bf16.mxu0 %v11961_v44  ;;  %8568 = vmatprep.subr.bf16.mxu1 %v11964_v45  ;;  %v6368_v44 = vadd.f32 %v6327_v24, %v6304_v41  ;;  %v12034_v45 = vld [vmem:[%s14697_s3 + $0x3c8] ss:$16 sps:$4 sm:$0xff]   ;;  %v12105_v24 = vld [vmem:[%s14697_s3 + $0x544] ss:$16 sps:$4 sm:$0xff]   ;;  %v12108_v41 = vld [vmem:[%s14697_s3 + $0x54c] ss:$16 sps:$4 sm:$0xff]  }
 0x449   : > { %8364 = vmatpush1.bf16.msra.mxu0 %v11959_v47  ;;  %8569 = vmatpush1.bf16.msra.mxu1 %v11962_v12  ;;  %v12039_v47 = vld [vmem:[%s14697_s3 + $0x3e4] ss:$16 sps:$4 sm:$0xff]   ;;  %v12042_v12 = vld [vmem:[%s14697_s3 + $0x3ec] ss:$16 sps:$4 sm:$0xff]  }
 0x44a   : > { %8365 = vmatprep.subr.bf16.mxu0 %v11967_v8  ;;  %8570 = vmatprep.subr.bf16.mxu1 %v11970_v9  ;;  %v6338_v8 = vsub.s32 5, %v13578_v60  ;;  %v12037_v9 = vld [vmem:[%s14697_s3 + $0x3e0] ss:$16 sps:$4 sm:$0xff]  }
 0x44d   : > { %8366 = vmatpush1.bf16.msra.mxu0 %v11965_v48  ;;  %8571 = vmatpush1.bf16.msra.mxu1 %v11968_v50  ;;  %v6378_v48 = vmax.f32 %v6368_v44, 0.0  ;;  %v12040_v50 = vld [vmem:[%s14697_s3 + $0x3e8] ss:$16 sps:$4 sm:$0xff]   ;;  %v12114_v44 = vld [vmem:[%s14697_s3 + $0x56c] ss:$16 sps:$4 sm:$0xff]  }
 0x44e   : > { %8367 = vmatprep.subr.bf16.mxu0 %v11973_v16  ;;  %8572 = vmatprep.subr.bf16.mxu1 %v11976_v38  ;;  %v12045_v16 = vld [vmem:[%s14697_s3 + $0x404] ss:$16 sps:$4 sm:$0xff]   ;;  %v12048_v38 = vld [vmem:[%s14697_s3 + $0x40c] ss:$16 sps:$4 sm:$0xff]  }
 0x451   : > { %8368 = vmatpush1.bf16.msra.mxu0 %v11971_v32  ;;  %8573 = vmatpush1.bf16.msra.mxu1 %v11974_v52  ;;  %v6339_v32 = vrot.slane %v13601_v4, %v6338_v8  ;;  %v12043_v52 = vld [vmem:[%s14697_s3 + $0x400] ss:$16 sps:$4 sm:$0xff]   ;;  %v12054_v4 = vld [vmem:[%s14697_s3 + $0x42c] ss:$16 sps:$4 sm:$0xff]  }
 0x452   : > { %8369 = vmatprep.subr.bf16.mxu0 %v11979_v54  ;;  %8574 = vmatprep.subr.bf16.mxu1 %v11982_v55  ;;  %v6388_v54 = vpack.c.bf16 %v6378_v48, %v6378_v48  ;;  %v12046_v55 = vld [vmem:[%s14697_s3 + $0x408] ss:$16 sps:$4 sm:$0xff]   ;;  %v12120_v8 = vld [vmem:[%s14697_s3 + $0x58c] ss:$16 sps:$4 sm:$0xff]   ;;  %v6334_v48 = vsub.s32 4, %v13578_v60 }
 0x455   : > { %8370 = vmatpush1.bf16.msra.mxu0 %v11977_v57  ;;  %8575 = vmatpush1.bf16.msra.mxu1 %v11980_v58  ;;  %v12051_v57 = vld [vmem:[%s14697_s3 + $0x424] ss:$16 sps:$4 sm:$0xff]   ;;  %v6371_v58 = vadd.f32 %v6339_v32, %v6307_v22  ;;  %v12121_v32 = vld [vmem:[%s14697_s3 + $0x5a0] ss:$16 sps:$4 sm:$0xff]  }
 0x456   : > { %8371 = vmatprep.subr.bf16.mxu0 %v11985_v27  ;;  %8576 = vmatprep.subr.bf16.mxu1 %v11988_v61  ;;  %v12049_v27 = vld [vmem:[%s14697_s3 + $0x420] ss:$16 sps:$4 sm:$0xff]   ;;  %v12052_v61 = vld [vmem:[%s14697_s3 + $0x428] ss:$16 sps:$4 sm:$0xff]   ;;  %v12129_v22 = vld [vmem:[%s14697_s3 + $0x5c4] ss:$16 sps:$4 sm:$0xff]  }
 0x459   : > { %8372 = vmatpush1.bf16.msra.mxu0 %v11983_v21  ;;  %8577 = vmatpush1.bf16.msra.mxu1 %v11986_v25  ;;  %v6381_v21 = vmax.f32 %v6371_v58, 0.0  ;;  %v12132_v58 = vld [vmem:[%s14697_s3 + $0x5cc] ss:$16 sps:$4 sm:$0xff]  }
 0x45a   : > { %8373 = vmatprep.subr.bf16.mxu0 %v11991_v2  ;;  %8578 = vmatprep.subr.bf16.mxu1 %v11994_v5  ;;  %v12055_v2 = vld [vmem:[%s14697_s3 + $0x440] ss:$16 sps:$4 sm:$0xff]   ;;  %v12058_v5 = vld [vmem:[%s14697_s3 + $0x448] ss:$16 sps:$4 sm:$0xff]  }
 0x45b   : > { %v6391_v25 = vpack.c.bf16 %v6381_v21, %v6381_v21  ;;  %v6309_v21 = vld [vmem:[#allocation2 + $0x38] sm:$0xff] }
 0x45d   : > { %8374 = vmatpush1.bf16.msra.mxu0 %v11989_v7  ;;  %8579 = vmatpush1.bf16.msra.mxu1 %v11992_v10  ;;  %v12066_v7 = vld [vmem:[%s14697_s3 + $0x46c] ss:$16 sps:$4 sm:$0xff]   ;;  %v12064_v10 = vld [vmem:[%s14697_s3 + $0x468] ss:$16 sps:$4 sm:$0xff]  }
 0x45e   : > { %8375 = vmatprep.subr.bf16.mxu0 %v11997_v11  ;;  %8580 = vmatprep.subr.bf16.mxu1 %v12000_v13  ;;  %v12069_v11 = vld [vmem:[%s14697_s3 + $0x484] ss:$16 sps:$4 sm:$0xff]   ;;  %v12072_v13 = vld [vmem:[%s14697_s3 + $0x48c] ss:$16 sps:$4 sm:$0xff]  }
 0x461   : > { %8376 = vmatpush1.bf16.msra.mxu0 %v11995_v56  ;;  %8581 = vmatpush1.bf16.msra.mxu1 %v11998_v14  ;;  %v12067_v56 = vld [vmem:[%s14697_s3 + $0x480] ss:$16 sps:$4 sm:$0xff]   ;;  %v12070_v14 = vld [vmem:[%s14697_s3 + $0x488] ss:$16 sps:$4 sm:$0xff]  }
 0x462   : > { %8377 = vmatprep.subr.bf16.mxu0 %v12003_v15  ;;  %8582 = vmatprep.subr.bf16.mxu1 %v12006_v1  ;;  %v12075_v15 = vld [vmem:[%s14697_s3 + $0x4a4] ss:$16 sps:$4 sm:$0xff]   ;;  %v12078_v1 = vld [vmem:[%s14697_s3 + $0x4ac] ss:$16 sps:$4 sm:$0xff]  }
 0x465   : > { %8378 = vmatpush1.bf16.msra.mxu0 %v12001_v59  ;;  %8583 = vmatpush1.bf16.msra.mxu1 %v12004_v40  ;;  %v12073_v59 = vld [vmem:[%s14697_s3 + $0x4a0] ss:$16 sps:$4 sm:$0xff]   ;;  %v12076_v40 = vld [vmem:[%s14697_s3 + $0x4a8] ss:$16 sps:$4 sm:$0xff]  }
 0x466   : > { %8379 = vmatprep.subr.bf16.mxu0 %v12009_v17  ;;  %8584 = vmatprep.subr.bf16.mxu1 %v12012_v51  ;;  %v12081_v17 = vld [vmem:[%s14697_s3 + $0x4c4] ss:$16 sps:$4 sm:$0xff]   ;;  %v12084_v51 = vld [vmem:[%s14697_s3 + $0x4cc] ss:$16 sps:$4 sm:$0xff]  }
 0x469   : > { %8380 = vmatpush1.bf16.msra.mxu0 %v12007_v19  ;;  %8585 = vmatpush1.bf16.msra.mxu1 %v12010_v20  ;;  %v12079_v19 = vld [vmem:[%s14697_s3 + $0x4c0] ss:$16 sps:$4 sm:$0xff]   ;;  %v12082_v20 = vld [vmem:[%s14697_s3 + $0x4c8] ss:$16 sps:$4 sm:$0xff]  }
 0x46a   : > { %8381 = vmatprep.subr.bf16.mxu0 %v12015_v23  ;;  %8586 = vmatprep.subr.bf16.mxu1 %v12018_v26  ;;  %v12087_v23 = vld [vmem:[%s14697_s3 + $0x4e4] ss:$16 sps:$4 sm:$0xff]   ;;  %v12090_v26 = vld [vmem:[%s14697_s3 + $0x4ec] ss:$16 sps:$4 sm:$0xff]  }
 0x46d   : > { %8382 = vmatpush1.bf16.msra.mxu0 %v12013_v28  ;;  %8587 = vmatpush1.bf16.msra.mxu1 %v12016_v29  ;;  %v12085_v28 = vld [vmem:[%s14697_s3 + $0x4e0] ss:$16 sps:$4 sm:$0xff]   ;;  %v12088_v29 = vld [vmem:[%s14697_s3 + $0x4e8] ss:$16 sps:$4 sm:$0xff]  }
 0x46e   : > { %8383 = vmatprep.subr.bf16.mxu0 %v12021_v30  ;;  %8588 = vmatprep.subr.bf16.mxu1 %v12024_v31  ;;  %v12093_v30 = vld [vmem:[%s14697_s3 + $0x504] ss:$16 sps:$4 sm:$0xff]   ;;  %v12096_v31 = vld [vmem:[%s14697_s3 + $0x50c] ss:$16 sps:$4 sm:$0xff]  }
 0x471   : > { %8384 = vmatpush1.bf16.msra.mxu0 %v12019_v33  ;;  %8589 = vmatpush1.bf16.msra.mxu1 %v12022_v53  ;;  %v12091_v33 = vld [vmem:[%s14697_s3 + $0x500] ss:$16 sps:$4 sm:$0xff]   ;;  %v12094_v53 = vld [vmem:[%s14697_s3 + $0x508] ss:$16 sps:$4 sm:$0xff]  }
 0x472   : > { %8385 = vmatprep.subr.bf16.mxu0 %v12027_v34  ;;  %8590 = vmatprep.subr.bf16.mxu1 %v12030_v35  ;;  %v12099_v34 = vld [vmem:[%s14697_s3 + $0x524] ss:$16 sps:$4 sm:$0xff]   ;;  %v12102_v35 = vld [vmem:[%s14697_s3 + $0x52c] ss:$16 sps:$4 sm:$0xff]  }
 0x475   : > { %8386 = vmatpush1.bf16.msra.mxu0 %v12025_v36  ;;  %8591 = vmatpush1.bf16.msra.mxu1 %v12028_v37  ;;  %v12097_v36 = vld [vmem:[%s14697_s3 + $0x520] ss:$16 sps:$4 sm:$0xff]   ;;  %v12100_v37 = vld [vmem:[%s14697_s3 + $0x528] ss:$16 sps:$4 sm:$0xff]  }
 0x476   : > { %8387 = vmatprep.subr.bf16.mxu0 %v12033_v0  ;;  %8592 = vmatprep.subr.bf16.mxu1 %v12036_v42  ;;  %v12103_v0 = vld [vmem:[%s14697_s3 + $0x540] ss:$16 sps:$4 sm:$0xff]   ;;  %v12106_v42 = vld [vmem:[%s14697_s3 + $0x548] ss:$16 sps:$4 sm:$0xff]  }
 0x479   : > { %8388 = vmatpush1.bf16.msra.mxu0 %v12031_v3  ;;  %8593 = vmatpush1.bf16.msra.mxu1 %v12034_v45  ;;  %v12111_v3 = vld [vmem:[%s14697_s3 + $0x564] ss:$16 sps:$4 sm:$0xff]   ;;  %v12109_v45 = vld [vmem:[%s14697_s3 + $0x560] ss:$16 sps:$4 sm:$0xff]  }
 0x47a   : > { %8389 = vmatprep.subr.bf16.mxu0 %v12039_v47  ;;  %8594 = vmatprep.subr.bf16.mxu1 %v12042_v12  ;;  %v12112_v47 = vld [vmem:[%s14697_s3 + $0x568] ss:$16 sps:$4 sm:$0xff]   ;;  %v12117_v12 = vld [vmem:[%s14697_s3 + $0x584] ss:$16 sps:$4 sm:$0xff]  }
 0x47d   : > { %8390 = vmatpush1.bf16.msra.mxu0 %v12037_v9  ;;  %8595 = vmatpush1.bf16.msra.mxu1 %v12040_v50  ;;  %v12115_v9 = vld [vmem:[%s14697_s3 + $0x580] ss:$16 sps:$4 sm:$0xff]   ;;  %v12118_v50 = vld [vmem:[%s14697_s3 + $0x588] ss:$16 sps:$4 sm:$0xff]  }
 0x47e   : > { %8400 = vmatprep.subr.bf16.mxu0 %v12045_v16  ;;  %8605 = vmatprep.subr.bf16.mxu1 %v12048_v38  ;;  %v12123_v16 = vld [vmem:[%s14697_s3 + $0x5a4] ss:$16 sps:$4 sm:$0xff]   ;;  %v12126_v38 = vld [vmem:[%s14697_s3 + $0x5ac] ss:$16 sps:$4 sm:$0xff]  }
 0x480   : > { %8392 = vmatmul.mubr.bf16.vlgmr.msra.gmra.mrb[0].mxu0 %v6388_v54  ;;  %8597 = vmatmul.mubr.bf16.vlgmr.msra.gmra.mrb[0].mxu1 %v6388_v54  ;;  %v12124_v54 = vld [vmem:[%s14697_s3 + $0x5a8] ss:$16 sps:$4 sm:$0xff]  }
 0x481   : > { %8401 = vmatpush1.bf16.msra.mxu0 %v12043_v52  ;;  %8606 = vmatpush1.bf16.msra.mxu1 %v12046_v55  ;;  %v6346_v52 = vsub.s32 7, %v13578_v60  ;;  %v14039_v55 = vld [vmem:[%s14696_s2] sm:$0xff] }
 0x482   : > { %8402 = vmatprep.subr.bf16.mxu0 %v12051_v57  ;;  %8607 = vmatprep.subr.bf16.mxu1 %v12054_v4  ;;  %v6335_v57 = vrot.slane %v14039_v55, %v6334_v48  ;;  %v6306_v4 = vld [vmem:[#allocation2 + $0x20] sm:$0xff]  ;;  %v12192_v48 = vld [vmem:[%s14697_s3 + $0x70c] ss:$16 sps:$4 sm:$0xff]  }
 0x483   : > { %8432 = vmatprep.mubr.bf16.mxu0 %v6391_v25  ;;  %8637 = vmatprep.mubr.bf16.mxu1 %v6391_v25  ;;  %v12135_v25 = vld [vmem:[%s14697_s3 + $0x5e4] ss:$16 sps:$4 sm:$0xff]  }
 0x485   : > { %8403 = vmatpush1.bf16.msra.mxu0 %v12049_v27  ;;  %8608 = vmatpush1.bf16.msra.mxu1 %v12052_v61  ;;  %v12127_v27 = vld [vmem:[%s14697_s3 + $0x5c0] ss:$16 sps:$4 sm:$0xff]   ;;  %v6347_v61 = vrot.slane %v14039_v55, %v6346_v52 }
 0x486   : > { %8404 = vmatprep.subr.bf16.mxu0 %v12057_v18  ;;  %8609 = vmatprep.subr.bf16.mxu1 %v12060_v62  ;;  %v6370_v18 = vadd.f32 %v6335_v57, %v6306_v4  ;;  %v12130_v62 = vld [vmem:[%s14697_s3 + $0x5c8] ss:$16 sps:$4 sm:$0xff]   ;;  %v12193_v52 = vld [vmem:[%s14697_s3 + $0x720] ss:$16 sps:$4 sm:$0xff]   ;;  %v12201_v57 = vld [vmem:[%s14697_s3 + $0x744] ss:$16 sps:$4 sm:$0xff]  }
 0x487   : > { %v12204_v4 = vld [vmem:[%s14697_s3 + $0x74c] ss:$16 sps:$4 sm:$0xff]  }
 0x489   : > { %8405 = vmatpush1.bf16.msra.mxu0 %v12055_v2  ;;  %8610 = vmatpush1.bf16.msra.mxu1 %v12058_v5  ;;  %v12138_v2 = vld [vmem:[%s14697_s3 + $0x5ec] ss:$16 sps:$4 sm:$0xff]   ;;  %v6373_v5 = vadd.f32 %v6347_v61, %v6309_v21  ;;  %v12208_v21 = vld [vmem:[%s14697_s3 + $0x768] ss:$16 sps:$4 sm:$0xff]  }
 0x48a   : > { %8406 = vmatprep.subr.bf16.mxu0 %v12063_v6  ;;  %8611 = vmatprep.subr.bf16.mxu1 %v12066_v7  ;;  %v12133_v6 = vld [vmem:[%s14697_s3 + $0x5e0] ss:$16 sps:$4 sm:$0xff]   ;;  %v6380_v7 = vmax.f32 %v6370_v18, 0.0  ;;  %v12210_v61 = vld [vmem:[%s14697_s3 + $0x76c] ss:$16 sps:$4 sm:$0xff]  }
 0x48b   : > { %v12205_v18 = vld [vmem:[%s14697_s3 + $0x760] ss:$16 sps:$4 sm:$0xff]  }
 0x48d   : > { %8407 = vmatpush1.bf16.msra.mxu0 %v12061_v43  ;;  %8612 = vmatpush1.bf16.msra.mxu1 %v12064_v10  ;;  %v12136_v43 = vld [vmem:[%s14697_s3 + $0x5e8] ss:$16 sps:$4 sm:$0xff]   ;;  %v12141_v10 = vld [vmem:[%s14697_s3 + $0x604] ss:$16 sps:$4 sm:$0xff]  }
 0x48e   : > { %8408 = vmatprep.subr.bf16.mxu0 %v12069_v11  ;;  %8613 = vmatprep.subr.bf16.mxu1 %v12072_v13  ;;  %v12144_v11 = vld [vmem:[%s14697_s3 + $0x60c] ss:$16 sps:$4 sm:$0xff]   ;;  %v6383_v13 = vmax.f32 %v6373_v5, 0.0  ;;  %v12211_v5 = vld [vmem:[%s14697_s3 + $0x780] ss:$16 sps:$4 sm:$0xff]  }
 0x491   : > { %8409 = vmatpush1.bf16.msra.mxu0 %v12067_v56  ;;  %8614 = vmatpush1.bf16.msra.mxu1 %v12070_v14  ;;  %v12139_v56 = vld [vmem:[%s14697_s3 + $0x600] ss:$16 sps:$4 sm:$0xff]   ;;  %v6390_v14 = vpack.c.bf16 %v6380_v7, %v6380_v7  ;;  %v12219_v7 = vld [vmem:[%s14697_s3 + $0x7a4] ss:$16 sps:$4 sm:$0xff]  }
 0x492   : > { %8410 = vmatprep.subr.bf16.mxu0 %v12075_v15  ;;  %8615 = vmatprep.subr.bf16.mxu1 %v12078_v1  ;;  %v12142_v15 = vld [vmem:[%s14697_s3 + $0x608] ss:$16 sps:$4 sm:$0xff]   ;;  %v12147_v1 = vld [vmem:[%s14697_s3 + $0x624] ss:$16 sps:$4 sm:$0xff]  }
 0x495   : > { %8411 = vmatpush1.bf16.msra.mxu0 %v12073_v59  ;;  %8616 = vmatpush1.bf16.msra.mxu1 %v12076_v40  ;;  %v12150_v59 = vld [vmem:[%s14697_s3 + $0x62c] ss:$16 sps:$4 sm:$0xff]   ;;  %v6393_v40 = vpack.c.bf16 %v6383_v13, %v6383_v13  ;;  %v12225_v13 = vld [vmem:[%s14697_s3 + $0x7c4] ss:$16 sps:$4 sm:$0xff]  }
 0x496   : > { %8412 = vmatprep.subr.bf16.mxu0 %v12081_v17  ;;  %8617 = vmatprep.subr.bf16.mxu1 %v12084_v51  ;;  %v12145_v17 = vld [vmem:[%s14697_s3 + $0x620] ss:$16 sps:$4 sm:$0xff]   ;;  %v12148_v51 = vld [vmem:[%s14697_s3 + $0x628] ss:$16 sps:$4 sm:$0xff]  }
 0x499   : > { %8413 = vmatpush1.bf16.msra.mxu0 %v12079_v19  ;;  %8618 = vmatpush1.bf16.msra.mxu1 %v12082_v20  ;;  %v12153_v19 = vld [vmem:[%s14697_s3 + $0x644] ss:$16 sps:$4 sm:$0xff]   ;;  %v12156_v20 = vld [vmem:[%s14697_s3 + $0x64c] ss:$16 sps:$4 sm:$0xff]  }
 0x49a   : > { %8414 = vmatprep.subr.bf16.mxu0 %v12087_v23  ;;  %8619 = vmatprep.subr.bf16.mxu1 %v12090_v26  ;;  %v12151_v23 = vld [vmem:[%s14697_s3 + $0x640] ss:$16 sps:$4 sm:$0xff]   ;;  %v12154_v26 = vld [vmem:[%s14697_s3 + $0x648] ss:$16 sps:$4 sm:$0xff]  }
 0x49d   : > { %8415 = vmatpush1.bf16.msra.mxu0 %v12085_v28  ;;  %8620 = vmatpush1.bf16.msra.mxu1 %v12088_v29  ;;  %v12159_v28 = vld [vmem:[%s14697_s3 + $0x664] ss:$16 sps:$4 sm:$0xff]   ;;  %v12162_v29 = vld [vmem:[%s14697_s3 + $0x66c] ss:$16 sps:$4 sm:$0xff]  }
 0x49e   : > { %8416 = vmatprep.subr.bf16.mxu0 %v12093_v30  ;;  %8621 = vmatprep.subr.bf16.mxu1 %v12096_v31  ;;  %v12157_v30 = vld [vmem:[%s14697_s3 + $0x660] ss:$16 sps:$4 sm:$0xff]   ;;  %v12160_v31 = vld [vmem:[%s14697_s3 + $0x668] ss:$16 sps:$4 sm:$0xff]  }
 0x4a1   : > { %8417 = vmatpush1.bf16.msra.mxu0 %v12091_v33  ;;  %8622 = vmatpush1.bf16.msra.mxu1 %v12094_v53  ;;  %v12165_v33 = vld [vmem:[%s14697_s3 + $0x684] ss:$16 sps:$4 sm:$0xff]   ;;  %v12168_v53 = vld [vmem:[%s14697_s3 + $0x68c] ss:$16 sps:$4 sm:$0xff]  }
 0x4a2   : > { %8418 = vmatprep.subr.bf16.mxu0 %v12099_v34  ;;  %8623 = vmatprep.subr.bf16.mxu1 %v12102_v35  ;;  %v12163_v34 = vld [vmem:[%s14697_s3 + $0x680] ss:$16 sps:$4 sm:$0xff]   ;;  %v12166_v35 = vld [vmem:[%s14697_s3 + $0x688] ss:$16 sps:$4 sm:$0xff]  }
 0x4a5   : > { %8419 = vmatpush1.bf16.msra.mxu0 %v12097_v36  ;;  %8624 = vmatpush1.bf16.msra.mxu1 %v12100_v37  ;;  %v12171_v36 = vld [vmem:[%s14697_s3 + $0x6a4] ss:$16 sps:$4 sm:$0xff]   ;;  %v12174_v37 = vld [vmem:[%s14697_s3 + $0x6ac] ss:$16 sps:$4 sm:$0xff]  }
 0x4a6   : > { %8420 = vmatprep.subr.bf16.mxu0 %v12105_v24  ;;  %8625 = vmatprep.subr.bf16.mxu1 %v12108_v41  ;;  %v12169_v24 = vld [vmem:[%s14697_s3 + $0x6a0] ss:$16 sps:$4 sm:$0xff]   ;;  %v12172_v41 = vld [vmem:[%s14697_s3 + $0x6a8] ss:$16 sps:$4 sm:$0xff]  }
 0x4a9   : > { %8421 = vmatpush1.bf16.msra.mxu0 %v12103_v0  ;;  %8626 = vmatpush1.bf16.msra.mxu1 %v12106_v42  ;;  %v12177_v0 = vld [vmem:[%s14697_s3 + $0x6c4] ss:$16 sps:$4 sm:$0xff]   ;;  %v12180_v42 = vld [vmem:[%s14697_s3 + $0x6cc] ss:$16 sps:$4 sm:$0xff]  }
 0x4aa   : > { %8422 = vmatprep.subr.bf16.mxu0 %v12111_v3  ;;  %8627 = vmatprep.subr.bf16.mxu1 %v12114_v44  ;;  %v12175_v3 = vld [vmem:[%s14697_s3 + $0x6c0] ss:$16 sps:$4 sm:$0xff]   ;;  %v12178_v44 = vld [vmem:[%s14697_s3 + $0x6c8] ss:$16 sps:$4 sm:$0xff]  }
 0x4ad   : > { %8423 = vmatpush1.bf16.msra.mxu0 %v12109_v45  ;;  %8628 = vmatpush1.bf16.msra.mxu1 %v12112_v47  ;;  %v12183_v45 = vld [vmem:[%s14697_s3 + $0x6e4] ss:$16 sps:$4 sm:$0xff]   ;;  %v12186_v47 = vld [vmem:[%s14697_s3 + $0x6ec] ss:$16 sps:$4 sm:$0xff]  }
 0x4ae   : > { %8424 = vmatprep.subr.bf16.mxu0 %v12117_v12  ;;  %8629 = vmatprep.subr.bf16.mxu1 %v12120_v8  ;;  %v12181_v12 = vld [vmem:[%s14697_s3 + $0x6e0] ss:$16 sps:$4 sm:$0xff]   ;;  %v12184_v8 = vld [vmem:[%s14697_s3 + $0x6e8] ss:$16 sps:$4 sm:$0xff]  }
 0x4b1   : > { %8425 = vmatpush1.bf16.msra.mxu0 %v12115_v9  ;;  %8630 = vmatpush1.bf16.msra.mxu1 %v12118_v50  ;;  %v12189_v9 = vld [vmem:[%s14697_s3 + $0x704] ss:$16 sps:$4 sm:$0xff]   ;;  %v12187_v50 = vld [vmem:[%s14697_s3 + $0x700] ss:$16 sps:$4 sm:$0xff]  }
 0x4b2   : > { %8426 = vmatprep.subr.bf16.mxu0 %v12123_v16  ;;  %8631 = vmatprep.subr.bf16.mxu1 %v12126_v38  ;;  %v12190_v16 = vld [vmem:[%s14697_s3 + $0x708] ss:$16 sps:$4 sm:$0xff]   ;;  %v12195_v38 = vld [vmem:[%s14697_s3 + $0x724] ss:$16 sps:$4 sm:$0xff]  }
 0x4b5   : > { %8427 = vmatpush1.bf16.msra.mxu0 %v12121_v32  ;;  %8632 = vmatpush1.bf16.msra.mxu1 %v12124_v54  ;;  %v12198_v32 = vld [vmem:[%s14697_s3 + $0x72c] ss:$16 sps:$4 sm:$0xff]   ;;  %v12196_v54 = vld [vmem:[%s14697_s3 + $0x728] ss:$16 sps:$4 sm:$0xff]  }
 0x4b6   : > { %8428 = vmatprep.subr.bf16.mxu0 %v12129_v22  ;;  %8633 = vmatprep.subr.bf16.mxu1 %v12132_v58  ;;  %v12199_v22 = vld [vmem:[%s14697_s3 + $0x740] ss:$16 sps:$4 sm:$0xff]   ;;  %v12202_v58 = vld [vmem:[%s14697_s3 + $0x748] ss:$16 sps:$4 sm:$0xff]  }
 0x4b9   : > { %8429 = vmatpush1.bf16.msra.mxu0 %v12127_v27  ;;  %8634 = vmatpush1.bf16.msra.mxu1 %v12130_v62  ;;  %v12207_v27 = vld [vmem:[%s14697_s3 + $0x764] ss:$16 sps:$4 sm:$0xff]  }
 0x4ba   : > { %8430 = vmatprep.subr.bf16.mxu0 %v12135_v25  ;;  %8635 = vmatprep.subr.bf16.mxu1 %v12138_v2  ;;  %v12213_v62 = vld [vmem:[%s14697_s3 + $0x784] ss:$16 sps:$4 sm:$0xff]   ;;  %v12216_v25 = vld [vmem:[%s14697_s3 + $0x78c] ss:$16 sps:$4 sm:$0xff]   ;;  %v6342_v2 = vsub.s32 6, %v13578_v60 }
 0x4bb   : > { %v9164_v60 = vld [vmem:[%s14701_s7 + $0x8] sm:$0xff] }
 0x4bd   : > { %8431 = vmatpush1.bf16.msra.mxu0 %v12133_v6  ;;  %8636 = vmatpush1.bf16.msra.mxu1 %v12136_v43  ;;  %v12214_v6 = vld [vmem:[%s14697_s3 + $0x788] ss:$16 sps:$4 sm:$0xff]   ;;  %v12222_v43 = vld [vmem:[%s14697_s3 + $0x7ac] ss:$16 sps:$4 sm:$0xff]  }
 0x4be   : > { %8441 = vmatprep.subr.bf16.mxu0 %v12141_v10  ;;  %8646 = vmatprep.subr.bf16.mxu1 %v12144_v11  ;;  %v12217_v10 = vld [vmem:[%s14697_s3 + $0x7a0] ss:$16 sps:$4 sm:$0xff]   ;;  %v12220_v11 = vld [vmem:[%s14697_s3 + $0x7a8] ss:$16 sps:$4 sm:$0xff]  }
 0x4c0   : > { %8433 = vmatmul.mubr.bf16.vlgmr.msra.gmra.mrb[0].mxu0 %v6390_v14  ;;  %8638 = vmatmul.mubr.bf16.vlgmr.msra.gmra.mrb[0].mxu1 %v6390_v14  ;;  %v14243_v14 = vld [vmem:[%s14696_s2 + $0x8] sm:$0x3] }
 0x4c1   : > { %8442 = vmatpush1.bf16.msra.mxu0 %v12139_v56  ;;  %8647 = vmatpush1.bf16.msra.mxu1 %v12142_v15  ;;  %v6343_v56 = vrot.slane %v14039_v55, %v6342_v2  ;;  %v6308_v15 = vld [vmem:[#allocation2 + $0x30] sm:$0xff]  ;;  %v12288_v2 = vld [vmem:[%s14697_s3 + $0x90c] ss:$16 sps:$4 sm:$0xff]  }
 0x4c2   : > { %8443 = vmatprep.subr.bf16.mxu0 %v12147_v1  ;;  %8648 = vmatprep.subr.bf16.mxu1 %v12150_v59  ;;  %v12228_v1 = vld [vmem:[%s14697_s3 + $0x7cc] ss:$16 sps:$4 sm:$0xff]   ;;  %v6355_v59 = vrot.slane %v14243_v14, %v13593_v63  ;;  %v12223_v55 = vld [vmem:[%s14697_s3 + $0x7c0] ss:$16 sps:$4 sm:$0xff]  }
 0x4c3   : > { %8473 = vmatprep.mubr.bf16.mxu0 %v6393_v40  ;;  %8678 = vmatprep.mubr.bf16.mxu1 %v6393_v40  ;;  %v6372_v40 = vadd.f32 %v6343_v56, %v6308_v15  ;;  %v12300_v56 = vld [vmem:[%s14697_s3 + $0x94c] ss:$16 sps:$4 sm:$0xff]   ;;  %v12295_v15 = vld [vmem:[%s14697_s3 + $0x940] ss:$16 sps:$4 sm:$0xff]  }
 0x4c5   : > { %8444 = vmatpush1.bf16.msra.mxu0 %v12145_v17  ;;  %8649 = vmatpush1.bf16.msra.mxu1 %v12148_v51  ;;  %v6311_v17 = vld [vmem:[#allocation2 + $0x48] sm:$0xff] }
 0x4c6   : > { %8445 = vmatprep.subr.bf16.mxu0 %v12153_v19  ;;  %8650 = vmatprep.subr.bf16.mxu1 %v12156_v20  ;;  %v12226_v51 = vld [vmem:[%s14697_s3 + $0x7c8] ss:$16 sps:$4 sm:$0xff]   ;;  %v12231_v19 = vld [vmem:[%s14697_s3 + $0x7e4] ss:$16 sps:$4 sm:$0xff]   ;;  %v12234_v20 = vld [vmem:[%s14697_s3 + $0x7ec] ss:$16 sps:$4 sm:$0xff]  }
 0x4c9   : > { %8446 = vmatpush1.bf16.msra.mxu0 %v12151_v23  ;;  %8651 = vmatpush1.bf16.msra.mxu1 %v12154_v26  ;;  %v6375_v23 = vadd.f32 %v6355_v59, %v6311_v17  ;;  %v6382_v26 = vmax.f32 %v6372_v40, 0.0  ;;  %v12303_v59 = vld [vmem:[%s14697_s3 + $0x964] ss:$16 sps:$4 sm:$0xff]   ;;  %v12306_v40 = vld [vmem:[%s14697_s3 + $0x96c] ss:$16 sps:$4 sm:$0xff]  }
 0x4ca   : > { %8447 = vmatprep.subr.bf16.mxu0 %v12159_v28  ;;  %8652 = vmatprep.subr.bf16.mxu1 %v12162_v29  ;;  %v12229_v28 = vld [vmem:[%s14697_s3 + $0x7e0] ss:$16 sps:$4 sm:$0xff]   ;;  %v12232_v29 = vld [vmem:[%s14697_s3 + $0x7e8] ss:$16 sps:$4 sm:$0xff]  }
 0x4cb   : > { %v12301_v17 = vld [vmem:[%s14697_s3 + $0x960] ss:$16 sps:$4 sm:$0xff]  }
 0x4cd   : > { %8448 = vmatpush1.bf16.msra.mxu0 %v12157_v30  ;;  %8653 = vmatpush1.bf16.msra.mxu1 %v12160_v31  ;;  %v12237_v30 = vld [vmem:[%s14697_s3 + $0x804] ss:$16 sps:$4 sm:$0xff]   ;;  %v12240_v31 = vld [vmem:[%s14697_s3 + $0x80c] ss:$16 sps:$4 sm:$0xff]  }
 0x4ce   : > { %8449 = vmatprep.subr.bf16.mxu0 %v12165_v33  ;;  %8654 = vmatprep.subr.bf16.mxu1 %v12168_v53  ;;  %v6385_v33 = vmax.f32 %v6375_v23, 0.0  ;;  %v6392_v53 = vpack.c.bf16 %v6382_v26, %v6382_v26  ;;  %v12307_v23 = vld [vmem:[%s14697_s3 + $0x980] ss:$16 sps:$4 sm:$0xff]   ;;  %v12310_v26 = vld [vmem:[%s14697_s3 + $0x988] ss:$16 sps:$4 sm:$0xff]  }
 0x4d1   : > { %8450 = vmatpush1.bf16.msra.mxu0 %v12163_v34  ;;  %8655 = vmatpush1.bf16.msra.mxu1 %v12166_v35  ;;  %v12235_v34 = vld [vmem:[%s14697_s3 + $0x800] ss:$16 sps:$4 sm:$0xff]   ;;  %v12238_v35 = vld [vmem:[%s14697_s3 + $0x808] ss:$16 sps:$4 sm:$0xff]  }
 0x4d2   : > { %8451 = vmatprep.subr.bf16.mxu0 %v12171_v36  ;;  %8656 = vmatprep.subr.bf16.mxu1 %v12174_v37  ;;  %v12243_v36 = vld [vmem:[%s14697_s3 + $0x824] ss:$16 sps:$4 sm:$0xff]   ;;  %v12246_v37 = vld [vmem:[%s14697_s3 + $0x82c] ss:$16 sps:$4 sm:$0xff]  }
 0x4d5   : > { %8452 = vmatpush1.bf16.msra.mxu0 %v12169_v24  ;;  %8657 = vmatpush1.bf16.msra.mxu1 %v12172_v41  ;;  %v6395_v24 = vpack.c.bf16 %v6385_v33, %v6385_v33  ;;  %v12241_v41 = vld [vmem:[%s14697_s3 + $0x820] ss:$16 sps:$4 sm:$0xff]  }
 0x4d6   : > { %8453 = vmatprep.subr.bf16.mxu0 %v12177_v0  ;;  %8658 = vmatprep.subr.bf16.mxu1 %v12180_v42  ;;  %v12244_v0 = vld [vmem:[%s14697_s3 + $0x828] ss:$16 sps:$4 sm:$0xff]   ;;  %v12249_v42 = vld [vmem:[%s14697_s3 + $0x844] ss:$16 sps:$4 sm:$0xff]  }
 0x4d9   : > { %8454 = vmatpush1.bf16.msra.mxu0 %v12175_v3  ;;  %8659 = vmatpush1.bf16.msra.mxu1 %v12178_v44  ;;  %v12252_v3 = vld [vmem:[%s14697_s3 + $0x84c] ss:$16 sps:$4 sm:$0xff]   ;;  %v12247_v44 = vld [vmem:[%s14697_s3 + $0x840] ss:$16 sps:$4 sm:$0xff]  }
 0x4da   : > { %8455 = vmatprep.subr.bf16.mxu0 %v12183_v45  ;;  %8660 = vmatprep.subr.bf16.mxu1 %v12186_v47  ;;  %v12250_v45 = vld [vmem:[%s14697_s3 + $0x848] ss:$16 sps:$4 sm:$0xff]   ;;  %v12255_v47 = vld [vmem:[%s14697_s3 + $0x864] ss:$16 sps:$4 sm:$0xff]  }
 0x4dd   : > { %8456 = vmatpush1.bf16.msra.mxu0 %v12181_v12  ;;  %8661 = vmatpush1.bf16.msra.mxu1 %v12184_v8  ;;  %v12258_v12 = vld [vmem:[%s14697_s3 + $0x86c] ss:$16 sps:$4 sm:$0xff]   ;;  %v12253_v8 = vld [vmem:[%s14697_s3 + $0x860] ss:$16 sps:$4 sm:$0xff]  }
 0x4de   : > { %8457 = vmatprep.subr.bf16.mxu0 %v12189_v9  ;;  %8662 = vmatprep.subr.bf16.mxu1 %v12192_v48  ;;  %v12256_v9 = vld [vmem:[%s14697_s3 + $0x868] ss:$16 sps:$4 sm:$0xff]   ;;  %v12261_v48 = vld [vmem:[%s14697_s3 + $0x884] ss:$16 sps:$4 sm:$0xff]  }
 0x4e1   : > { %8458 = vmatpush1.bf16.msra.mxu0 %v12187_v50  ;;  %8663 = vmatpush1.bf16.msra.mxu1 %v12190_v16  ;;  %v12264_v50 = vld [vmem:[%s14697_s3 + $0x88c] ss:$16 sps:$4 sm:$0xff]   ;;  %v12259_v16 = vld [vmem:[%s14697_s3 + $0x880] ss:$16 sps:$4 sm:$0xff]  }
 0x4e2   : > { %8459 = vmatprep.subr.bf16.mxu0 %v12195_v38  ;;  %8664 = vmatprep.subr.bf16.mxu1 %v12198_v32  ;;  %v12262_v38 = vld [vmem:[%s14697_s3 + $0x888] ss:$16 sps:$4 sm:$0xff]   ;;  %v12267_v32 = vld [vmem:[%s14697_s3 + $0x8a4] ss:$16 sps:$4 sm:$0xff]  }
 0x4e5   : > { %8460 = vmatpush1.bf16.msra.mxu0 %v12193_v52  ;;  %8665 = vmatpush1.bf16.msra.mxu1 %v12196_v54  ;;  %v12270_v52 = vld [vmem:[%s14697_s3 + $0x8ac] ss:$16 sps:$4 sm:$0xff]   ;;  %v12265_v54 = vld [vmem:[%s14697_s3 + $0x8a0] ss:$16 sps:$4 sm:$0xff]  }
 0x4e6   : > { %8461 = vmatprep.subr.bf16.mxu0 %v12201_v57  ;;  %8666 = vmatprep.subr.bf16.mxu1 %v12204_v4  ;;  %v12268_v57 = vld [vmem:[%s14697_s3 + $0x8a8] ss:$16 sps:$4 sm:$0xff]   ;;  %v12273_v4 = vld [vmem:[%s14697_s3 + $0x8c4] ss:$16 sps:$4 sm:$0xff]  }
 0x4e9   : > { %8462 = vmatpush1.bf16.msra.mxu0 %v12199_v22  ;;  %8667 = vmatpush1.bf16.msra.mxu1 %v12202_v58  ;;  %v12276_v22 = vld [vmem:[%s14697_s3 + $0x8cc] ss:$16 sps:$4 sm:$0xff]   ;;  %v12271_v58 = vld [vmem:[%s14697_s3 + $0x8c0] ss:$16 sps:$4 sm:$0xff]  }
 0x4ea   : > { %8463 = vmatprep.subr.bf16.mxu0 %v12207_v27  ;;  %8668 = vmatprep.subr.bf16.mxu1 %v12210_v61  ;;  %v12274_v27 = vld [vmem:[%s14697_s3 + $0x8c8] ss:$16 sps:$4 sm:$0xff]   ;;  %v12279_v61 = vld [vmem:[%s14697_s3 + $0x8e4] ss:$16 sps:$4 sm:$0xff]  }
 0x4ed   : > { %8464 = vmatpush1.bf16.msra.mxu0 %v12205_v18  ;;  %8669 = vmatpush1.bf16.msra.mxu1 %v12208_v21  ;;  %v12282_v18 = vld [vmem:[%s14697_s3 + $0x8ec] ss:$16 sps:$4 sm:$0xff]   ;;  %v12277_v21 = vld [vmem:[%s14697_s3 + $0x8e0] ss:$16 sps:$4 sm:$0xff]  }
 0x4ee   : > { %8465 = vmatprep.subr.bf16.mxu0 %v12213_v62  ;;  %8670 = vmatprep.subr.bf16.mxu1 %v12216_v25  ;;  %v12280_v62 = vld [vmem:[%s14697_s3 + $0x8e8] ss:$16 sps:$4 sm:$0xff]   ;;  %v12285_v25 = vld [vmem:[%s14697_s3 + $0x904] ss:$16 sps:$4 sm:$0xff]  }
 0x4f1   : > { %8466 = vmatpush1.bf16.msra.mxu0 %v12211_v5  ;;  %8671 = vmatpush1.bf16.msra.mxu1 %v12214_v6  ;;  %v12283_v5 = vld [vmem:[%s14697_s3 + $0x900] ss:$16 sps:$4 sm:$0xff]   ;;  %v12286_v6 = vld [vmem:[%s14697_s3 + $0x908] ss:$16 sps:$4 sm:$0xff]  }
 0x4f2   : > { %8467 = vmatprep.subr.bf16.mxu0 %v12219_v7  ;;  %8672 = vmatprep.subr.bf16.mxu1 %v12222_v43  ;;  %v12291_v7 = vld [vmem:[%s14697_s3 + $0x924] ss:$16 sps:$4 sm:$0xff]   ;;  %v12294_v43 = vld [vmem:[%s14697_s3 + $0x92c] ss:$16 sps:$4 sm:$0xff]  }
 0x4f5   : > { %8468 = vmatpush1.bf16.msra.mxu0 %v12217_v10  ;;  %8673 = vmatpush1.bf16.msra.mxu1 %v12220_v11  ;;  %v12289_v10 = vld [vmem:[%s14697_s3 + $0x920] ss:$16 sps:$4 sm:$0xff]   ;;  %v12292_v11 = vld [vmem:[%s14697_s3 + $0x928] ss:$16 sps:$4 sm:$0xff]  }
 0x4f6   : > { %8469 = vmatprep.subr.bf16.mxu0 %v12225_v13  ;;  %8674 = vmatprep.subr.bf16.mxu1 %v12228_v1  ;;  %v12297_v13 = vld [vmem:[%s14697_s3 + $0x944] ss:$16 sps:$4 sm:$0xff]   ;;  %v12298_v1 = vld [vmem:[%s14697_s3 + $0x948] ss:$16 sps:$4 sm:$0xff]  }
 0x4f9   : > { %8470 = vmatpush1.bf16.msra.mxu0 %v12223_v55  ;;  %8675 = vmatpush1.bf16.msra.mxu1 %v12226_v51  ;;  %v12304_v55 = vld [vmem:[%s14697_s3 + $0x968] ss:$16 sps:$4 sm:$0xff]   ;;  %v12309_v51 = vld [vmem:[%s14697_s3 + $0x984] ss:$16 sps:$4 sm:$0xff]  }
 0x4fa   : > { %8471 = vmatprep.subr.bf16.mxu0 %v12231_v19  ;;  %8676 = vmatprep.subr.bf16.mxu1 %v12234_v20  ;;  %v12312_v19 = vld [vmem:[%s14697_s3 + $0x98c] ss:$16 sps:$4 sm:$0xff]   ;;  %v6351_v20 = vrot.slane %v14243_v14, %v13621_v46 }
 0x4fb   : > { %v12318_v14 = vld [vmem:[%s14697_s3 + $0x9ac] ss:$16 sps:$4 sm:$0xff]  }
 0x4fd   : > { %8472 = vmatpush1.bf16.msra.mxu0 %v12229_v28  ;;  %8677 = vmatpush1.bf16.msra.mxu1 %v12232_v29  ;;  %v6310_v28 = vld [vmem:[#allocation2 + $0x40] sm:$0xff] }
 0x4fe   : > { %8482 = vmatprep.subr.bf16.mxu0 %v12237_v30  ;;  %8687 = vmatprep.subr.bf16.mxu1 %v12240_v31  ;;  %v12315_v29 = vld [vmem:[%s14697_s3 + $0x9a4] ss:$16 sps:$4 sm:$0xff]   ;;  %v6709_v31 = vld [vmem:[%s14697_s3 + $0x9c8] sm:$0x33]  ;;  %v6374_v33 = vadd.f32 %v6351_v20, %v6310_v28 }
 0x4ff   : > { %v6708_v30 = vld [vmem:[%s14697_s3 + $0x9c0] sm:$0x33]  ;;  %v12376_v20 = vld [vmem:[%s14699_s5 + $0xb4] ss:$8 sps:$4 sm:$0xff]  }
 0x500   : > { %8474 = vmatmul.mubr.bf16.vlgmr.msra.gmra.mrb[0].mxu0 %v6392_v53  ;;  %8679 = vmatmul.mubr.bf16.vlgmr.msra.gmra.mrb[0].mxu1 %v6392_v53  ;;  %v12313_v53 = vld [vmem:[%s14697_s3 + $0x9a0] ss:$16 sps:$4 sm:$0xff]  }
 0x501   : > { %8483 = vmatpush1.bf16.msra.mxu0 %v12235_v34  ;;  %8688 = vmatpush1.bf16.msra.mxu1 %v12238_v35  ;;  %v12316_v34 = vld [vmem:[%s14697_s3 + $0x9a8] ss:$16 sps:$4 sm:$0xff]   ;;  %v10476_v35 = vcombine.high %v6708_v30, %v6708_v30 }
 0x502   : > { %8484 = vmatprep.subr.bf16.mxu0 %v12243_v36  ;;  %8689 = vmatprep.subr.bf16.mxu1 %v12246_v37  ;;  %v10478_v36 = vcombine.high %v6709_v31, %v6709_v31  ;;  %v10475_v37 = vcombine.low %v6708_v30, %v6708_v30  ;;  %v12380_v28 = vld [vmem:[%s14699_s5 + $0xc0] ss:$8 sps:$4 sm:$0xff]   ;;  %v12394_v30 = vld [vmem:[%s14699_s5 + $0xe4] ss:$8 sps:$4 sm:$0xff]  }
 0x503   : > { %10480 = vmatprep.mubr.msk.bf16.mxu0 %vm6296_vm1, %v6395_v24  ;;  %10482 = vmatprep.mubr.msk.bf16.mxu1 %vm6296_vm1, %v6395_v24  ;;  %v10477_v24 = vcombine.low %v6709_v31, %v6709_v31  ;;  %v12397_v31 = vld [vmem:[%s14699_s5 + $0x194] ss:$8 sps:$4 sm:$0xff]  }
 0x505   : > { %8485 = vmatpush1.bf16.msra.mxu0 %v12241_v41  ;;  %8690 = vmatpush1.bf16.msra.mxu1 %v12244_v0  ;;  %v6384_v41 = vmax.f32 %v6374_v33, 0.0  ;;  %v8307_v0 = vsel %vm8305_vm2, %v10475_v37, 0  ;;  %v12392_v33 = vld [vmem:[%s14699_s5 + $0xe0] ss:$8 sps:$4 sm:$0xff]   ;;  %v12429_v37 = vmov 0  }
 0x506   : > { %8486 = vmatprep.subr.bf16.mxu0 %v12249_v42  ;;  %8691 = vmatprep.subr.bf16.mxu1 %v12252_v3  ;;  %v8313_v42 = vsel %vm8305_vm2, %v10477_v24, 0  ;;  %v12325_v3 = vld [vmem:[%s14699_s5 + $0x4] ss:$8 sps:$4 sm:$0xff]   ;;  %v9072_v24 = vsel %vm9070_vm3, 65535, %v12429_v37 }
 0x509   : > { %8487 = vmatpush1.bf16.msra.mxu0 %v12247_v44  ;;  %8692 = vmatpush1.bf16.msra.mxu1 %v12250_v45  ;;  %v12343_v44 = vld [vmem:[%s14699_s5 + $0x104] ss:$8 sps:$4 sm:$0xff]   ;;  %v6394_v45 = vpack.c.bf16 %v6384_v41, %v6384_v41  ;;  %v12400_v41 = vld [vmem:[%s14699_s5 + $0xf4] ss:$8 sps:$4 sm:$0xff]  }
 0x50a   : > { %8488 = vmatprep.subr.bf16.mxu0 %v12255_v47  ;;  %8693 = vmatprep.subr.bf16.mxu1 %v12258_v12  ;;  %v12323_v47 = vld [vmem:[%s14699_s5] ss:$8 sps:$4 sm:$0xff]  }
 0x50b   : > { %v12341_v12 = vld [vmem:[%s14699_s5 + $0x100] ss:$8 sps:$4 sm:$0xff]  }
 0x50d   : > { %8489 = vmatpush1.bf16.msra.mxu0 %v12253_v8  ;;  %8694 = vmatpush1.bf16.msra.mxu1 %v12256_v9  ;;  %v12328_v8 = vld [vmem:[%s14699_s5 + $0x14] ss:$8 sps:$4 sm:$0xff]  }
 0x50e   : > { %8490 = vmatprep.subr.bf16.mxu0 %v12261_v48  ;;  %8695 = vmatprep.subr.bf16.mxu1 %v12264_v50  ;;  %v12349_v9 = vld [vmem:[%s14699_s5 + $0x114] ss:$8 sps:$4 sm:$0xff]   ;;  %v12326_v48 = vld [vmem:[%s14699_s5 + $0x10] ss:$8 sps:$4 sm:$0xff]  }
 0x50f   : > { %v12347_v50 = vld [vmem:[%s14699_s5 + $0x110] ss:$8 sps:$4 sm:$0xff]  }
 0x511   : > { %8491 = vmatpush1.bf16.msra.mxu0 %v12259_v16  ;;  %8696 = vmatpush1.bf16.msra.mxu1 %v12262_v38  ;;  %v12331_v16 = vld [vmem:[%s14699_s5 + $0x24] ss:$8 sps:$4 sm:$0xff]  }
 0x512   : > { %8492 = vmatprep.subr.bf16.mxu0 %v12267_v32  ;;  %8697 = vmatprep.subr.bf16.mxu1 %v12270_v52  ;;  %v12355_v38 = vld [vmem:[%s14699_s5 + $0x124] ss:$8 sps:$4 sm:$0xff]   ;;  %v12329_v32 = vld [vmem:[%s14699_s5 + $0x20] ss:$8 sps:$4 sm:$0xff]  }
 0x513   : > { %v12353_v52 = vld [vmem:[%s14699_s5 + $0x120] ss:$8 sps:$4 sm:$0xff]  }
 0x515   : > { %8493 = vmatpush1.bf16.msra.mxu0 %v12265_v54  ;;  %8698 = vmatpush1.bf16.msra.mxu1 %v12268_v57  ;;  %v12334_v54 = vld [vmem:[%s14699_s5 + $0x34] ss:$8 sps:$4 sm:$0xff]  }
 0x516   : > { %8494 = vmatprep.subr.bf16.mxu0 %v12273_v4  ;;  %8699 = vmatprep.subr.bf16.mxu1 %v12276_v22  ;;  %v12361_v57 = vld [vmem:[%s14699_s5 + $0x134] ss:$8 sps:$4 sm:$0xff]   ;;  %v12332_v4 = vld [vmem:[%s14699_s5 + $0x30] ss:$8 sps:$4 sm:$0xff]  }
 0x517   : > { %v12359_v22 = vld [vmem:[%s14699_s5 + $0x130] ss:$8 sps:$4 sm:$0xff]  }
 0x519   : > { %8495 = vmatpush1.bf16.msra.mxu0 %v12271_v58  ;;  %8700 = vmatpush1.bf16.msra.mxu1 %v12274_v27  ;;  %v12337_v58 = vld [vmem:[%s14699_s5 + $0x44] ss:$8 sps:$4 sm:$0xff]  }
 0x51a   : > { %8496 = vmatprep.subr.bf16.mxu0 %v12279_v61  ;;  %8701 = vmatprep.subr.bf16.mxu1 %v12282_v18  ;;  %v12367_v27 = vld [vmem:[%s14699_s5 + $0x144] ss:$8 sps:$4 sm:$0xff]   ;;  %v12335_v61 = vld [vmem:[%s14699_s5 + $0x40] ss:$8 sps:$4 sm:$0xff]  }
 0x51b   : > { %v12365_v18 = vld [vmem:[%s14699_s5 + $0x140] ss:$8 sps:$4 sm:$0xff]  }
 0x51d   : > { %8497 = vmatpush1.bf16.msra.mxu0 %v12277_v21  ;;  %8702 = vmatpush1.bf16.msra.mxu1 %v12280_v62  ;;  %v12340_v21 = vld [vmem:[%s14699_s5 + $0x54] ss:$8 sps:$4 sm:$0xff]  }
 0x51e   : > { %8498 = vmatprep.subr.bf16.mxu0 %v12285_v25  ;;  %8703 = vmatprep.subr.bf16.mxu1 %v12288_v2  ;;  %v12373_v62 = vld [vmem:[%s14699_s5 + $0x154] ss:$8 sps:$4 sm:$0xff]   ;;  %v12338_v25 = vld [vmem:[%s14699_s5 + $0x50] ss:$8 sps:$4 sm:$0xff]  }
 0x51f   : > { %v12371_v2 = vld [vmem:[%s14699_s5 + $0x150] ss:$8 sps:$4 sm:$0xff]  }
 0x521   : > { %8499 = vmatpush1.bf16.msra.mxu0 %v12283_v5  ;;  %8704 = vmatpush1.bf16.msra.mxu1 %v12286_v6  ;;  %v12346_v5 = vld [vmem:[%s14699_s5 + $0x64] ss:$8 sps:$4 sm:$0xff]  }
 0x522   : > { %8500 = vmatprep.subr.bf16.mxu0 %v12291_v7  ;;  %8705 = vmatprep.subr.bf16.mxu1 %v12294_v43  ;;  %v12379_v6 = vld [vmem:[%s14699_s5 + $0x164] ss:$8 sps:$4 sm:$0xff]   ;;  %v12344_v7 = vld [vmem:[%s14699_s5 + $0x60] ss:$8 sps:$4 sm:$0xff]  }
 0x523   : > { %v12377_v43 = vld [vmem:[%s14699_s5 + $0x160] ss:$8 sps:$4 sm:$0xff]  }
 0x525   : > { %8501 = vmatpush1.bf16.msra.mxu0 %v12289_v10  ;;  %8706 = vmatpush1.bf16.msra.mxu1 %v12292_v11  ;;  %v12352_v10 = vld [vmem:[%s14699_s5 + $0x74] ss:$8 sps:$4 sm:$0xff]  }
 0x526   : > { %8502 = vmatprep.subr.bf16.mxu0 %v12297_v13  ;;  %8707 = vmatprep.subr.bf16.mxu1 %v12300_v56  ;;  %v12385_v11 = vld [vmem:[%s14699_s5 + $0x174] ss:$8 sps:$4 sm:$0xff]   ;;  %v12350_v13 = vld [vmem:[%s14699_s5 + $0x70] ss:$8 sps:$4 sm:$0xff]  }
 0x527   : > { %v12383_v56 = vld [vmem:[%s14699_s5 + $0x170] ss:$8 sps:$4 sm:$0xff]  }
 0x529   : > { %8503 = vmatpush1.bf16.msra.mxu0 %v12295_v15  ;;  %8708 = vmatpush1.bf16.msra.mxu1 %v12298_v1  ;;  %v12358_v15 = vld [vmem:[%s14699_s5 + $0x84] ss:$8 sps:$4 sm:$0xff]  }
 0x52a   : > { %8504 = vmatprep.subr.bf16.mxu0 %v12303_v59  ;;  %8709 = vmatprep.subr.bf16.mxu1 %v12306_v40  ;;  %v12391_v1 = vld [vmem:[%s14699_s5 + $0x184] ss:$8 sps:$4 sm:$0xff]   ;;  %v12356_v59 = vld [vmem:[%s14699_s5 + $0x80] ss:$8 sps:$4 sm:$0xff]  }
 0x52b   : > { %v12389_v40 = vld [vmem:[%s14699_s5 + $0x180] ss:$8 sps:$4 sm:$0xff]  }
 0x52d   : > { %8505 = vmatpush1.bf16.msra.mxu0 %v12301_v17  ;;  %8710 = vmatpush1.bf16.msra.mxu1 %v12304_v55  ;;  %v12364_v17 = vld [vmem:[%s14699_s5 + $0x94] ss:$8 sps:$4 sm:$0xff]   ;;  %v12362_v55 = vld [vmem:[%s14699_s5 + $0x90] ss:$8 sps:$4 sm:$0xff]  }
 0x52e   : > { %8506 = vmatprep.subr.bf16.mxu0 %v12309_v51  ;;  %8711 = vmatprep.subr.bf16.mxu1 %v12312_v19  ;;  %v12370_v51 = vld [vmem:[%s14699_s5 + $0xa4] ss:$8 sps:$4 sm:$0xff]   ;;  %v12368_v19 = vld [vmem:[%s14699_s5 + $0xa0] ss:$8 sps:$4 sm:$0xff]  }
 0x531   : > { %8507 = vmatpush1.bf16.msra.mxu0 %v12307_v23  ;;  %8712 = vmatpush1.bf16.msra.mxu1 %v12310_v26  ;;  %v12374_v23 = vld [vmem:[%s14699_s5 + $0xb0] ss:$8 sps:$4 sm:$0xff]   ;;  %v12382_v26 = vld [vmem:[%s14699_s5 + $0xc4] ss:$8 sps:$4 sm:$0xff]  }
 0x532   : > { %8508 = vmatprep.subr.bf16.mxu0 %v12315_v29  ;;  %8713 = vmatprep.subr.bf16.mxu1 %v12318_v14  ;;  %v12388_v29 = vld [vmem:[%s14699_s5 + $0xd4] ss:$8 sps:$4 sm:$0xff]   ;;  %v12386_v14 = vld [vmem:[%s14699_s5 + $0xd0] ss:$8 sps:$4 sm:$0xff]  }
 0x535   : > { %8509 = vmatpush1.bf16.msra.mxu0 %v12313_v53  ;;  %8714 = vmatpush1.bf16.msra.mxu1 %v12316_v34  ;;  %v12395_v53 = vld [vmem:[%s14699_s5 + $0x190] ss:$8 sps:$4 sm:$0xff]   ;;  %v8788_v34 = vld [vmem:[%s14699_s5 + $0x1a0] sm:$0x11] }
 0x536   : > { %10479 = vmatprep.subr.msk.bf16.mxu0 %vm8305_vm2, %v10476_v35  ;;  %10481 = vmatprep.subr.msk.bf16.mxu1 %vm8305_vm2, %v10478_v36  ;;  %v10536_v35 = vcombine.high %v8788_v34, %v8788_v34  ;;  %v10535_v36 = vcombine.low %v8788_v34, %v8788_v34  ;;  %v8789_v34 = vld [vmem:[%s14700_s6] sm:$0x3] }
 0x539   : > { %8511 = vmatpush1.bf16.msra.mxu0 %v8307_v0  ;;  %8716 = vmatpush1.bf16.msra.mxu1 %v8313_v42  ;;  %v9077_v0 = vand.u32 %v10536_v35, %v9072_v24  ;;  %v12398_v42 = vld [vmem:[%s14699_s5 + $0xf0] ss:$8 sps:$4 sm:$0xff]   ;;  %v8794_v35 = vrot.slane %v8789_v34, %v13621_v46 }
 0x53a   : > { %9079 = vmatprep.subr.bf16.mxu0 %v12325_v3  ;;  %9120 = vmatprep.subr.bf16.mxu1 %v12343_v44  ;;  %v9074_v3 = vand.u32 %v10535_v36, %v9072_v24  ;;  %v12430_v44 = vmov 0.0|0.0   ;;  %v8798_v36 = vrot.slane %v8789_v34, %v13593_v63 }
 0x53c   : > { %8515 = vmatmul.mubr.bf16.vlgmr.msra.gmra.mrb[0].mxu0 %v6394_v45  ;;  %8720 = vmatmul.mubr.bf16.vlgmr.msra.gmra.mrb[0].mxu1 %v6394_v45  ;;  %v6710_v45 = vld [vmem:[%s14698_s4] sm:$0xf] }
 0x53d   : > { %9080 = vmatpush1.bf16.msra.mxu0 %v12323_v47  ;;  %9121 = vmatpush1.bf16.msra.mxu1 %v12341_v12  ;;  %v6715_v47 = vrot.slane %v6710_v45, %v13621_v46  ;;  %v6723_v12 = vrot.slane %v6710_v45, %v6326_v49  ;;  %v9163_v49 = vld [vmem:[%s14701_s7] sm:$0xff]  ;;  %v10538_v46 = vld [vmem:[#allocation3] ss:$0 sm:$0xff] }
 0x53e   : > { %9081 = vmatprep.subr.bf16.mxu0 %v12328_v8  ;;  %9122 = vmatprep.subr.bf16.mxu1 %v12349_v9  ;;  %v6719_v8 = vrot.slane %v6710_v45, %v13593_v63  ;;  %v6727_v9 = vrot.slane %v6710_v45, %v6330_v39 }
 0x541   : > { %9082 = vmatpush1.bf16.msra.mxu0 %v12326_v48  ;;  %9123 = vmatpush1.bf16.msra.mxu1 %v12347_v50 }
 0x542   : > { %9083 = vmatprep.subr.bf16.mxu0 %v12331_v16  ;;  %9124 = vmatprep.subr.bf16.mxu1 %v12355_v38 }
 0x545   : > { %9084 = vmatpush1.bf16.msra.mxu0 %v12329_v32  ;;  %9125 = vmatpush1.bf16.msra.mxu1 %v12353_v52 }
 0x546   : > { %9085 = vmatprep.subr.bf16.mxu0 %v12334_v54  ;;  %9126 = vmatprep.subr.bf16.mxu1 %v12361_v57 }
 0x549   : > { %9086 = vmatpush1.bf16.msra.mxu0 %v12332_v4  ;;  %9127 = vmatpush1.bf16.msra.mxu1 %v12359_v22 }
 0x54a   : > { %9087 = vmatprep.subr.bf16.mxu0 %v12337_v58  ;;  %9128 = vmatprep.subr.bf16.mxu1 %v12367_v27 }
 0x54d   : > { %9088 = vmatpush1.bf16.msra.mxu0 %v12335_v61  ;;  %9129 = vmatpush1.bf16.msra.mxu1 %v12365_v18 }
 0x54e   : > { %9089 = vmatprep.subr.bf16.mxu0 %v12340_v21  ;;  %9130 = vmatprep.subr.bf16.mxu1 %v12373_v62 }
 0x551   : > { %9090 = vmatpush1.bf16.msra.mxu0 %v12338_v25  ;;  %9131 = vmatpush1.bf16.msra.mxu1 %v12371_v2  ;;  %v10545_v2 = vpack.c.bf16 %v9164_v60, %v9163_v49 }
 0x552   : > { %9091 = vmatprep.subr.bf16.mxu0 %v12346_v5  ;;  %9132 = vmatprep.subr.bf16.mxu1 %v12379_v6 }
 0x555   : > { %9092 = vmatpush1.bf16.msra.mxu0 %v12344_v7  ;;  %9133 = vmatpush1.bf16.msra.mxu1 %v12377_v43  ;;  %v9165_v7 = vld [vmem:[%s14701_s7 + $0x10] sm:$0xff]  ;;  %v9166_v43 = vld [vmem:[%s14701_s7 + $0x18] sm:$0xff] }
 0x556   : > { %9093 = vmatprep.subr.bf16.mxu0 %v12352_v10  ;;  %9134 = vmatprep.subr.bf16.mxu1 %v12385_v11  ;;  %v10548_v10 = vpack.c.bf16 %v9166_v43, %v9165_v7  ;;  %v9167_v11 = vld [vmem:[%s14701_s7 + $0x20] sm:$0xff] }
 0x559   : > { %9094 = vmatpush1.bf16.msra.mxu0 %v12350_v13  ;;  %9135 = vmatpush1.bf16.msra.mxu1 %v12383_v56  ;;  %v9168_v13 = vld [vmem:[%s14701_s7 + $0x28] sm:$0xff] }
 0x55a   : > { %9095 = vmatprep.subr.bf16.mxu0 %v12358_v15  ;;  %9136 = vmatprep.subr.bf16.mxu1 %v12391_v1  ;;  %v10551_v56 = vpack.c.bf16 %v9168_v13, %v9167_v11  ;;  %v9169_v15 = vld [vmem:[%s14701_s7 + $0x30] sm:$0xff]  ;;  %v9170_v1 = vld [vmem:[%s14701_s7 + $0x38] sm:$0xff] }
 0x55d   : > { %9096 = vmatpush1.bf16.msra.mxu0 %v12356_v59  ;;  %9137 = vmatpush1.bf16.msra.mxu1 %v12389_v40  ;;  %v10554_v59 = vpack.c.bf16 %v9170_v1, %v9169_v15  ;;  %v9171_v40 = vld [vmem:[%s14701_s7 + $0x40] sm:$0xff] }
 0x55e   : > { %9097 = vmatprep.subr.bf16.mxu0 %v12364_v17  ;;  %9138 = vmatprep.subr.bf16.mxu1 %v12397_v31  ;;  %v9172_v17 = vld [vmem:[%s14701_s7 + $0x48] sm:$0xff]  ;;  %v9179_v31 = vld [vmem:[%s14701_s7 + $0x80] sm:$0xff] }
 0x561   : > { %9098 = vmatpush1.bf16.msra.mxu0 %v12362_v55  ;;  %9139 = vmatpush1.bf16.msra.mxu1 %v12395_v53  ;;  %v10557_v55 = vpack.c.bf16 %v9172_v17, %v9171_v40 }
 0x562   : > { %9099 = vmatprep.subr.bf16.mxu0 %v12370_v51  ;;  %9140 = vmatprep.subr.bf16.mxu1 %v9077_v0  ;;  %v9173_v51 = vld [vmem:[%s14701_s7 + $0x50] sm:$0xff] }
 0x565   : > { %9100 = vmatpush1.bf16.msra.mxu0 %v12368_v19  ;;  %9141 = vmatpush1.bf16.msra.mxu1 %v9074_v3  ;;  %v9174_v19 = vld [vmem:[%s14701_s7 + $0x58] sm:$0xff] }
 0x566   : > { %9101 = vmatprep.subr.bf16.mxu0 %v12376_v20  ;;  %10544 = vmatprep.subr.bf16.mxu1 %v12430_v44  ;;  %v10560_v20 = vpack.c.bf16 %v9174_v19, %v9173_v51 }
 0x569   : > { %9102 = vmatpush1.bf16.msra.mxu0 %v12374_v23  ;;  %v9175_v23 = vld [vmem:[%s14701_s7 + $0x60] sm:$0xff] }
 0x56a   : > { %9103 = vmatprep.subr.bf16.mxu0 %v12382_v26  ;;  %v9176_v26 = vld [vmem:[%s14701_s7 + $0x68] sm:$0xff] }
 0x56d   : > { %9104 = vmatpush1.bf16.msra.mxu0 %v12380_v28  ;;  %v10563_v28 = vpack.c.bf16 %v9176_v26, %v9175_v23 }
 0x56e   : > { %9105 = vmatprep.subr.bf16.mxu0 %v12388_v29  ;;  %v9177_v29 = vld [vmem:[%s14701_s7 + $0x70] sm:$0xff] }
 0x571   : > { %9106 = vmatpush1.bf16.msra.mxu0 %v12386_v14  ;;  %v9178_v14 = vld [vmem:[%s14701_s7 + $0x78] sm:$0xff] }
 0x572   : > { %9107 = vmatprep.subr.bf16.mxu0 %v12394_v30  ;;  %v10566_v30 = vpack.c.bf16 %v9178_v14, %v9177_v29 }
 0x575   : > { %9108 = vmatpush1.bf16.msra.mxu0 %v12392_v33  ;;  %v9180_v33 = vld [vmem:[%s14701_s7 + $0x88] sm:$0x7] }
 0x576   : > { %9109 = vmatprep.subr.bf16.mxu0 %v12400_v41  ;;  %v10569_v53 = vpack.c.bf16 %v9180_v33, %v9179_v31 }
 0x579   : > { %9110 = vmatpush1.bf16.msra.mxu0 %v12398_v42 }
 0x60f   : > { %v8516_v48 = vpop.f32.mrb[0].mxu0  ;;  %v8721_v50 = vpop.f32.mrb[0].mxu1 }
 0x610   : > { %v10572_v16 = vadd.f32 %v8516_v48, %v6715_v47  ;;  %v10574_v38 = vadd.f32 %v8721_v50, %v6723_v12  ;;  %v8518_v32 = vpop.f32.mrb[1].mxu0  ;;  %v8723_v52 = vpop.f32.mrb[1].mxu1 }
 0x611   : > { %v10573_v54 = vadd.f32 %v8518_v32, %v6719_v8  ;;  %v10575_v57 = vadd.f32 %v8723_v52, %v6727_v9  ;;  %v8520_v4 = vpop.f32.mrb[2].mxu0  ;;  %v8725_v22 = vpop.f32.mrb[2].mxu1 }
 0x612   : > { %v8728_v58 = vmax.f32 %v10572_v16, 0.0  ;;  %v8730_v27 = vmax.f32 %v10574_v38, 0.0  ;;  %v8521_v61 = vpop.f32.mrb[3].mxu0  ;;  %v8726_v18 = vpop.f32.mrb[3].mxu1 }
 0x613   : > { %v8729_v39 = vmax.f32 %v10573_v54, 0.0  ;;  %v8731_v21 = vmax.f32 %v10575_v57, 0.0 }
 0x614   : > { %v8732_v5 = vpack.c.bf16 %v8728_v58, %v8728_v58  ;;  %v8734_v6 = vpack.c.bf16 %v8730_v27, %v8730_v27 }
 0x615   : > { %v8733_v62 = vpack.c.bf16 %v8729_v39, %v8729_v39  ;;  %v8735_v25 = vpack.c.bf16 %v8731_v21, %v8731_v21 }
 0x617   : > { %9111 = vmatprep.mubr.bf16.mxu0 %v8733_v62  ;;  %10537 = vmatprep.mubr.msk.bf16.mxu1 %vm9066_vm4, %v8735_v25 }
 0x618   : > { %9112 = vmatmul.mubr.bf16.vlgmr.msra.gmra.mrb[4].mxu0 %v8732_v5  ;;  %9153 = vmatmul.mubr.bf16.vlgmr.msra.gmra.mrb[4].mxu1 %v8734_v6 }
 0x619   : > { %10546 = vmatpush1.bf16.msra.mxu1 %v10545_v2 }
 0x61a   : > { %10547 = vmatprep.subr.bf16.mxu1 %v12430_v44 }
 0x61d   : > { %10549 = vmatpush1.bf16.msra.mxu1 %v10548_v10 }
 0x61e   : > { %10550 = vmatprep.subr.bf16.mxu1 %v12430_v44 }
 0x621   : > { %10552 = vmatpush1.bf16.msra.mxu1 %v10551_v56 }
 0x622   : > { %10553 = vmatprep.subr.bf16.mxu1 %v12430_v44 }
 0x625   : > { %10555 = vmatpush1.bf16.msra.mxu1 %v10554_v59 }
 0x626   : > { %10556 = vmatprep.subr.bf16.mxu1 %v12430_v44 }
 0x629   : > { %10558 = vmatpush1.bf16.msra.mxu1 %v10557_v55 }
 0x62a   : > { %10559 = vmatprep.subr.bf16.mxu1 %v12430_v44 }
 0x62d   : > { %10561 = vmatpush1.bf16.msra.mxu1 %v10560_v20 }
 0x62e   : > { %10562 = vmatprep.subr.bf16.mxu1 %v12430_v44 }
 0x631   : > { %10564 = vmatpush1.bf16.msra.mxu1 %v10563_v28 }
 0x632   : > { %10565 = vmatprep.subr.bf16.mxu1 %v12430_v44 }
 0x635   : > { %10567 = vmatpush1.bf16.msra.mxu1 %v10566_v30 }
 0x636   : > { %10568 = vmatprep.subr.bf16.mxu1 %v12430_v44 }
 0x639   : > { %10571 = vmatpush1.bf16.msk.msra.mxu1 %vm10570_vm7, %v10569_v53 }
 0x6eb   : > { %v9113_v37 = vpop.f32.mrb[4].mxu0  ;;  %v9154_v24 = vpop.f32.mrb[4].mxu1 }
 0x6ec   : > { %v9114_v41 = vadd.f32 %v9113_v37, %v8794_v35  ;;  %v9115_v0 = vpop.f32.mrb[5].mxu0  ;;  %v9156_v42 = vpop.f32.mrb[5].mxu1 }
 0x6ed   : > { %v9116_v3 = vadd.f32 %v9115_v0, %v8798_v36  ;;  %v9117_v44 = vpop.f32.mrb[6].mxu0  ;;  %v9158_v45 = vpop.f32.mrb[6].mxu1 }
 0x6ee   : > { %v9155_v47 = vadd.f32 %v9154_v24, %v9114_v41  ;;  %v9118_v12 = vpop.f32.mrb[7].mxu0  ;;  %v9159_v8 = vpop.f32.mrb[7].mxu1 }
 0x6ef   : > { %v9157_v9 = vadd.f32 %v9156_v42, %v9116_v3 }
 0x6f0   : > { %v9161_v50 = vmax.f32 %v9155_v47, 0.0 }
 0x6f1   : > { %v9162_v48 = vmax.f32 %v9157_v9, 0.0 }
 0x6f3   : > { %10540 = vmatprep.mubr.msk.f32.mxu1 %vm9188_vm8, %v9162_v48 }
 0x6f4   : > { %9261 = vmatmul.mubr.f32.vlgmr.msra.gmra.mrb[8].mxu1 %v9161_v50 }
 0x7c7   : > { %v9262_v16 = vpop.f32.mrb[8].mxu1 }
 0x7c8   : > { %v9263_v63 = vadd.f32 %v10538_v46, %v9262_v16  ;;  %v9264_v38 = vpop.f32.mrb[9].mxu1 }
 0x7ca   : > { %9267 = vst.msk [vmem:[%s14703_s9] sm:$0xff] %vm9266_vm9, %v9263_v63 }
 0x7cb PF: > { %s21_s13 = sadd.s32 1, %s12426_s13   ;;  %s14704_s11 = smov %s12422_s12 }
 0x7cc   : > { %p18_p8 = scmp.ge.s32.totalorder %s21_s13, 5   ;;  %s14705_s12 = smov %s14707_s8 }
 0x7ce   :  { %20 = sbr.rel (!%p18_p8) target bundleno = 3 (0x3), region = 97 }

</bundles_post_ra>
